<compile_context>
chip_gen: v7x
topology: tpu7x:2x2x1
jax: 0.10.0
libtpu: 0.0.40
codegen_flags: <defaults>
</compile_context>

<pallas_src>
import jax
import jax.numpy as jnp
from jax.experimental import pallas as pl
from jax.experimental.pallas import tpu as pltpu


def _make_dense_block_kernel(conv_num, H, W, c0, cout, pad):
    """Builds the fused DenseBlock kernel (one batch element per grid step)."""
    HW = H * W
    inv_hw = 1.0 / float(HW)

    def kernel(*args):
        x_ref = args[0]                            # [HW, c0]           (f32)
        layer_p = args[1:1 + 4 * conv_num]         # per layer: w(bf16), shift, se1, se2t
        out_ref = args[1 + 4 * conv_num]           # [HW, c0+conv_num*cout] (f32)
        z_ref = args[2 + 4 * conv_num]             # [HW+2*pad, 9*cout]  (f32) tap scratch

        # Zero ONLY the pad rows of the tap scratch.  Invariant: the kernel never
        # writes these rows; they provide the conv's zero padding in the H (row)
        # direction, while the interior rows are fully overwritten every layer.
        # Done every grid step (cheap: 2*pad rows) because with a "parallel" grid
        # axis each TensorCore owns its own scratch, so a program_id==0 guard
        # would not run on every core.
        z_ref[pl.ds(0, pad), :] = jnp.zeros((pad, 9 * cout), z_ref.dtype)
        z_ref[pl.ds(pad + HW, pad), :] = jnp.zeros((pad, 9 * cout), z_ref.dtype)

        # The output block doubles as the channel-concatenated dense activation:
        # columns [0:c0] = block input, columns [c0+i*cout : c0+(i+1)*cout] =
        # layer i's output.  The full block is written back to HBM once, as a
        # single lane-dense slab, at the end of the grid step.
        out_ref[:, pl.ds(0, c0)] = x_ref[...]

        # Left/right image-border masks (W-direction zero padding), hoisted out of
        # the layer loop.  Row p of the flattened image has x = p % W.
        col = jax.lax.broadcasted_iota(jnp.int32, (HW, 1), 0) % W
        not_left = col != 0            # invalid source when dx == 0 and x == 0
        not_right = col != (W - 1)     # invalid source when dx == 2 and x == W-1

        for i in range(conv_num):
            w_ref, shift_ref, se1_ref, se2_ref = layer_p[4 * i: 4 * i + 4]
            cin = c0 + cout * i

            # Tap-packed conv: one wide matmul per layer.  z[q, t*cout+co] is the
            # contribution of tap t evaluated at source position q; BN scale is
            # already folded into the bf16 weights.
            act = out_ref[:, pl.ds(0, cin)].astype(jnp.bfloat16)
            z_ref[pl.ds(pad, HW), :] = jnp.dot(
                act, w_ref[...], preferred_element_type=jnp.float32)

            # Accumulate the 9 shifted partial slabs.  Vertical (H) padding comes
            # from the zero pad rows of z_ref; horizontal (W) padding is handled
            # by masking each dx group's summed partial once.
            acc = jnp.zeros((HW, cout), jnp.float32)
            for dx in range(3):
                part = jnp.zeros((HW, cout), jnp.float32)
                for dy in range(3):
                    t = dy * 3 + dx
                    off = (dy - 1) * W + (dx - 1)
                    part = part + z_ref[pl.ds(pad + off, HW),
                                        pl.ds(t * cout, cout)]
                if dx == 0:
                    part = jnp.where(not_left, part, 0.0)
                elif dx == 2:
                    part = jnp.where(not_right, part, 0.0)
                acc = acc + part
            y = acc + shift_ref[...]                       # folded BatchNorm shift

            # Squeeze-Excitation: global average pool + two tiny bias-free FCs
            # (the module uses nn.Linear(..., bias=False)) computed as broadcast
            # multiplies + cross-lane/sublane reductions (VPU/XLU); sigmoid on
            # the EUP.  se1_ref: [Cmid, Cout], se2_ref: [Cmid, Cout] (= fc2.T).
            pooled = jnp.sum(y, axis=0, keepdims=True) * inv_hw              # [1, C]
            h = jnp.maximum(
                jnp.sum(pooled * se1_ref[...], axis=1, keepdims=True), 0.0)  # [Cmid,1]
            gate = jax.nn.sigmoid(
                jnp.sum(h * se2_ref[...], axis=0, keepdims=True))            # [1, C]
            y = jnp.maximum(y * gate, 0.0)                 # SE rescale + ReLU

            # Single write of this layer's output into its dense-concat slot.
            out_ref[:, pl.ds(c0 + i * cout, cout)] = y.astype(out_ref.dtype)

    return kernel


def dense_block_forward(x_nchw, params):
    """DenseBlock.forward: for each layer y = Conv-BN-SE-ReLU(x); x = cat([x, y], C)."""
    B, c0, H, W = x_nchw.shape
    conv_num = len(params)
    cout = params[0][0].shape[0]
    cmid = params[0][3].shape[0]
    HW = H * W
    Ctot = c0 + conv_num * cout
    pad = ((W + 1 + 7) // 8) * 8     # sublane-aligned pad rows (>= W+1) for the tap scratch

    # NCHW -> [B, H*W, C0]: channels on lanes for the kernel.
    x_rows = jnp.transpose(x_nchw, (0, 2, 3, 1)).reshape(B, HW, c0)

    inputs = [x_rows]
    in_specs = [pl.BlockSpec((None, HW, c0), lambda b: (b, 0, 0))]
    for i, (conv_w, bn_scale, bn_shift, se_w1, se_w2) in enumerate(params):
        cin = c0 + cout * i
        # Conv weight [Cout, Cin, 3, 3] -> tap-packed [Cin, 9*Cout] (taps along N,
        # tap-major, matching the in-kernel slab order), BN scale folded in, bf16
        # for the MXU.
        w = jnp.transpose(conv_w, (2, 3, 1, 0)).reshape(9, cin, cout)
        w = w * bn_scale.reshape(1, 1, cout)
        w = jnp.transpose(w, (1, 0, 2)).reshape(cin, 9 * cout).astype(jnp.bfloat16)
        inputs += [w, bn_shift.reshape(1, cout), se_w1, se_w2.T]
        in_specs += [
            pl.BlockSpec((cin, 9 * cout), lambda b: (0, 0)),
            pl.BlockSpec((1, cout), lambda b: (0, 0)),
            pl.BlockSpec((cmid, cout), lambda b: (0, 0)),
            pl.BlockSpec((cmid, cout), lambda b: (0, 0)),
        ]

    kernel = _make_dense_block_kernel(conv_num, H, W, c0, cout, pad)

    out_rows = pl.pallas_call(
        kernel,
        out_shape=jax.ShapeDtypeStruct((B, HW, Ctot), jnp.float32),
        grid_spec=pltpu.PrefetchScalarGridSpec(
            num_scalar_prefetch=0,
            grid=(B,),
            in_specs=in_specs,
            out_specs=pl.BlockSpec((None, HW, Ctot), lambda b: (b, 0, 0)),
            scratch_shapes=[pltpu.VMEM((HW + 2 * pad, 9 * cout), jnp.float32)],
        ),
        compiler_params=pltpu.CompilerParams(
            dimension_semantics=("parallel",)),
    )(*inputs)

    # [B, H*W, c0+conv_num*cout] already holds [x | y0 | ... | y_{n-1}] -> NCHW.
    out = jnp.transpose(out_rows.reshape(B, H, W, Ctot), (0, 3, 1, 2))
    # TODO(synk): nn.Dropout(0.2) is identity in eval mode; training-mode dropout
    # (and training-mode BatchNorm batch statistics) are not implemented.
    return out


def _dense_block_reference(x_nchw, params):
    """Pure-JAX (XLA) reference of the same eval-mode DenseBlock, for validation."""
    x = x_nchw
    for conv_w, bn_scale, bn_shift, se_w1, se_w2 in params:
        y = jax.lax.conv_general_dilated(
            x, conv_w, window_strides=(1, 1), padding=((1, 1), (1, 1)),
            dimension_numbers=("NCHW", "OIHW", "NCHW"))
        y = y * bn_scale[None, :, None, None] + bn_shift[None, :, None, None]
        pooled = jnp.mean(y, axis=(2, 3))                       # [B, C]
        h = jnp.maximum(pooled @ se_w1.T, 0.0)                  # [B, Cmid]
        s = jax.nn.sigmoid(h @ se_w2.T)                         # [B, C]
        y = jnp.maximum(y * s[:, :, None, None], 0.0)
        x = jnp.concatenate([x, y], axis=1)
    return x


def init_params(key, conv_num, inchannel, outchannel, reduction=16):
    """Deterministic synthetic parameters matching the PyTorch module shapes."""
    eps = 1e-5
    params = []
    for i in range(conv_num):
        cin = inchannel + outchannel * i
        key, k1, k2, k3, k4, k5, k6, k7 = jax.random.split(key, 8)
        conv_w = jax.random.normal(k1, (outchannel, cin, 3, 3), jnp.float32)
        conv_w = conv_w * (1.0 / jnp.sqrt(float(cin * 9)))
        gamma = 1.0 + 0.1 * jax.random.normal(k2, (outchannel,), jnp.float32)
        beta = 0.1 * jax.random.normal(k3, (outchannel,), jnp.float32)
        running_mean = 0.1 * jax.random.normal(k4, (outchannel,), jnp.float32)
        running_var = jnp.abs(1.0 + 0.1 * jax.random.normal(k5, (outchannel,),
                                                            jnp.float32))
        bn_scale = gamma / jnp.sqrt(running_var + eps)
        bn_shift = beta - running_mean * bn_scale
        cmid = outchannel // reduction
        se_w1 = jax.random.normal(k6, (cmid, outchannel), jnp.float32)
        se_w1 = se_w1 * (1.0 / jnp.sqrt(float(outchannel)))
        se_w2 = jax.random.normal(k7, (outchannel, cmid), jnp.float32)
        se_w2 = se_w2 * (1.0 / jnp.sqrt(float(cmid)))
        params.append((conv_w, bn_scale, bn_shift, se_w1, se_w2))
    return params


if __name__ == "__main__":
    B, Cin, H, W = 2, 8, 16, 16
    conv_num, outchannel = 2, 32

    key = jax.random.PRNGKey(0)
    k_x, k_p = jax.random.split(key)
    x = jax.random.normal(k_x, (B, Cin, H, W), jnp.float32)       # NCHW input
    params = init_params(k_p, conv_num, Cin, outchannel)

    fwd = jax.jit(dense_block_forward)
    out = jax.block_until_ready(fwd(x, params))

    expected_c = Cin + outchannel * conv_num
    assert out.shape == (B, expected_c, H, W), out.shape
    assert bool(jnp.all(jnp.isfinite(out)))

    # Validate against the pure-JAX reference (loose tolerance: bf16 MXU operands
    # in the kernel vs XLA's default-precision f32 conv path).
    ref = jax.block_until_ready(_dense_block_reference(x, params))
    assert bool(jnp.allclose(out, ref, rtol=5e-2, atol=5e-2)), (
        float(jnp.max(jnp.abs(out - ref))))

    print("KERNEL_OK")
</pallas_src>

<mosaic_0001>
module attributes {stable_mosaic.version = 11 : i64} {
  func.func @kernel(%arg0: i32, %arg1: memref<1x256x8xf32, #tpu.memory_space<vmem>>, %arg2: memref<8x288xbf16, #tpu.memory_space<vmem>>, %arg3: memref<1x32xf32, #tpu.memory_space<vmem>>, %arg4: memref<2x32xf32, #tpu.memory_space<vmem>>, %arg5: memref<2x32xf32, #tpu.memory_space<vmem>>, %arg6: memref<40x288xbf16, #tpu.memory_space<vmem>>, %arg7: memref<1x32xf32, #tpu.memory_space<vmem>>, %arg8: memref<2x32xf32, #tpu.memory_space<vmem>>, %arg9: memref<2x32xf32, #tpu.memory_space<vmem>>, %arg10: memref<1x256x72xf32, #tpu.memory_space<vmem>>, %arg11: memref<304x288xf32, #tpu.memory_space<vmem>>) attributes {dimension_semantics = [#tpu.dimension_semantics<parallel>], iteration_bounds = array<i64: 2>, scalar_prefetch = 0 : i64, scratch_operands = 1 : i64, tpu.core_type = #tpu.core_type<tc>, window_params = [{transform_indices = @transform_0, window_bounds = array<i64: 1, 256, 8>}, {pipeline_mode = #tpu.pipeline_mode<synchronous>, transform_indices = @transform_1, window_bounds = array<i64: 8, 288>}, {pipeline_mode = #tpu.pipeline_mode<synchronous>, transform_indices = @transform_2, window_bounds = array<i64: 1, 32>}, {pipeline_mode = #tpu.pipeline_mode<synchronous>, transform_indices = @transform_3, window_bounds = array<i64: 2, 32>}, {pipeline_mode = #tpu.pipeline_mode<synchronous>, transform_indices = @transform_4, window_bounds = array<i64: 2, 32>}, {pipeline_mode = #tpu.pipeline_mode<synchronous>, transform_indices = @transform_5, window_bounds = array<i64: 40, 288>}, {pipeline_mode = #tpu.pipeline_mode<synchronous>, transform_indices = @transform_6, window_bounds = array<i64: 1, 32>}, {pipeline_mode = #tpu.pipeline_mode<synchronous>, transform_indices = @transform_7, window_bounds = array<i64: 2, 32>}, {pipeline_mode = #tpu.pipeline_mode<synchronous>, transform_indices = @transform_8, window_bounds = array<i64: 2, 32>}, {transform_indices = @transform_9, window_bounds = array<i64: 1, 256, 72>}]} {
    %cst = arith.constant 0.000000e+00 : f32
    %0 = vector.broadcast %cst : f32 to vector<24x288xf32>
    %c0 = arith.constant 0 : index
    %c0_0 = arith.constant 0 : index
    %1 = vector.load %arg11[%c0, %c0_0] : memref<304x288xf32, #tpu.memory_space<vmem>>, vector<24x288xf32>
    tpu.vector_store %arg11[%c0, %c0_0], %0 {strides = array<i32>} : memref<304x288xf32, #tpu.memory_space<vmem>>, vector<24x288xf32>,
    %cst_1 = arith.constant 0.000000e+00 : f32
    %2 = vector.broadcast %cst_1 : f32 to vector<24x288xf32>
    %c280 = arith.constant 280 : index
    %c0_2 = arith.constant 0 : index
    %3 = vector.load %arg11[%c280, %c0_2] : memref<304x288xf32, #tpu.memory_space<vmem>>, vector<24x288xf32>
    tpu.vector_store %arg11[%c280, %c0_2], %2 {strides = array<i32>} : memref<304x288xf32, #tpu.memory_space<vmem>>, vector<24x288xf32>,
    %c0_3 = arith.constant 0 : index
    %c0_4 = arith.constant 0 : index
    %c0_5 = arith.constant 0 : index
    %4 = vector.load %arg1[%c0_3, %c0_4, %c0_5] : memref<1x256x8xf32, #tpu.memory_space<vmem>>, vector<1x256x8xf32>
    %5 = vector.shape_cast %4 : vector<1x256x8xf32> to vector<256x8xf32>
    %c0_6 = arith.constant 0 : index
    %c0_7 = arith.constant 0 : index
    %c0_8 = arith.constant 0 : index
    %6 = vector.load %arg10[%c0_6, %c0_7, %c0_8] : memref<1x256x72xf32, #tpu.memory_space<vmem>>, vector<1x256x8xf32>
    %7 = vector.shape_cast %6 : vector<1x256x8xf32> to vector<256x8xf32>
    %8 = vector.shape_cast %5 : vector<256x8xf32> to vector<1x256x8xf32>
    tpu.vector_store %arg10[%c0_6, %c0_7, %c0_8], %8 {strides = array<i32>} : memref<1x256x72xf32, #tpu.memory_space<vmem>>, vector<1x256x8xf32>,
    %9 = tpu.iota {dimensions = array<i32: 0>} : vector<256x1xi32>
    %c16_i32 = arith.constant 16 : i32
    %c0_i32 = arith.constant 0 : i32
    %10 = arith.cmpi eq, %c16_i32, %c0_i32 : i32
    %c1_i32 = arith.constant 1 : i32
    %11 = arith.select %10, %c1_i32, %c16_i32 : i32
    %12 = vector.broadcast %11 : i32 to vector<256x1xi32>
    %13 = arith.remsi %9, %12 : vector<256x1xi32>
    %c0_i32_9 = arith.constant 0 : i32
    %14 = vector.broadcast %c0_i32_9 : i32 to vector<256x1xi32>
    %15 = arith.cmpi ne, %13, %14 : vector<256x1xi32>
    %c0_i32_10 = arith.constant 0 : i32
    %16 = vector.broadcast %c0_i32_10 : i32 to vector<256x1xi32>
    %17 = arith.cmpi slt, %13, %16 : vector<256x1xi32>
    %c0_i32_11 = arith.constant 0 : i32
    %18 = arith.cmpi slt, %11, %c0_i32_11 : i32
    %19 = vector.broadcast %18 : i1 to vector<256x1xi1>
    %20 = vector.broadcast %19 : vector<256x1xi1> to vector<256x1xi1>
    %21 = arith.xori %17, %20 : vector<256x1xi1>
    %22 = arith.andi %21, %15 : vector<256x1xi1>
    %23 = vector.broadcast %11 : i32 to vector<256x1xi32>
    %24 = arith.addi %13, %23 : vector<256x1xi32>
    %25 = arith.select %22, %24, %13 : vector<256x1xi1>, vector<256x1xi32>
    %c0_i32_12 = arith.constant 0 : i32
    %26 = vector.broadcast %c0_i32_12 : i32 to vector<256x1xi32>
    %27 = arith.cmpi ne, %25, %26 : vector<256x1xi32>
    %c15_i32 = arith.constant 15 : i32
    %28 = vector.broadcast %c15_i32 : i32 to vector<256x1xi32>
    %29 = arith.cmpi ne, %25, %28 : vector<256x1xi32>
    %c0_13 = arith.constant 0 : index
    %c0_14 = arith.constant 0 : index
    %c0_15 = arith.constant 0 : index
    %30 = vector.load %arg10[%c0_13, %c0_14, %c0_15] : memref<1x256x72xf32, #tpu.memory_space<vmem>>, vector<1x256x8xf32>
    %31 = vector.shape_cast %30 : vector<1x256x8xf32> to vector<256x8xf32>
    %32 = arith.truncf %31 : vector<256x8xf32> to vector<256x8xbf16>
    %c0_16 = arith.constant 0 : index
    %c0_17 = arith.constant 0 : index
    %33 = vector.load %arg2[%c0_16, %c0_17] : memref<8x288xbf16, #tpu.memory_space<vmem>>, vector<8x288xbf16>
    %cst_18 = arith.constant dense<0.000000e+00> : vector<256x288xf32>
    %34 = tpu.matmul %32, %33, %cst_18 {dimension_numbers = #tpu.dot_dimension_numbers<[1], [0], [0], [1], [0, 0, 1, 1], [], []>} : vector<256x8xbf16>, vector<8x288xbf16>, vector<256x288xf32> -> vector<256x288xf32>
    %c24 = arith.constant 24 : index
    %c0_19 = arith.constant 0 : index
    %35 = vector.load %arg11[%c24, %c0_19] : memref<304x288xf32, #tpu.memory_space<vmem>>, vector<256x288xf32>
    tpu.vector_store %arg11[%c24, %c0_19], %34 {strides = array<i32>} : memref<304x288xf32, #tpu.memory_space<vmem>>, vector<256x288xf32>,
    %cst_20 = arith.constant 0.000000e+00 : f32
    %36 = vector.broadcast %cst_20 : f32 to vector<256x32xf32>
    %cst_21 = arith.constant 0.000000e+00 : f32
    %37 = vector.broadcast %cst_21 : f32 to vector<256x32xf32>
    %c7 = arith.constant 7 : index
    %c0_22 = arith.constant 0 : index
    %38 = vector.load %arg11[%c7, %c0_22] : memref<304x288xf32, #tpu.memory_space<vmem>>, vector<256x32xf32>
    %39 = arith.addf %37, %38 : vector<256x32xf32>
    %c23 = arith.constant 23 : index
    %c96 = arith.constant 96 : index
    %40 = vector.load %arg11[%c23, %c96] : memref<304x288xf32, #tpu.memory_space<vmem>>, vector<256x32xf32>
    %41 = arith.addf %39, %40 : vector<256x32xf32>
    %c39 = arith.constant 39 : index
    %c192 = arith.constant 192 : index
    %42 = vector.load %arg11[%c39, %c192] : memref<304x288xf32, #tpu.memory_space<vmem>>, vector<256x32xf32>
    %43 = arith.addf %41, %42 : vector<256x32xf32>
    %cst_23 = arith.constant 0.000000e+00 : f32
    %44 = vector.shape_cast %27 : vector<256x1xi1> to vector<256x1xi1>
    %45 = vector.broadcast %44 : vector<256x1xi1> to vector<256x32xi1>
    %46 = vector.broadcast %cst_23 : f32 to vector<256x32xf32>
    %47 = arith.select %45, %43, %46 : vector<256x32xi1>, vector<256x32xf32>
    %48 = arith.addf %36, %47 : vector<256x32xf32>
    %cst_24 = arith.constant 0.000000e+00 : f32
    %49 = vector.broadcast %cst_24 : f32 to vector<256x32xf32>
    %c8 = arith.constant 8 : index
    %c32 = arith.constant 32 : index
    %50 = vector.load %arg11[%c8, %c32] : memref<304x288xf32, #tpu.memory_space<vmem>>, vector<256x32xf32>
    %51 = arith.addf %49, %50 : vector<256x32xf32>
    %c24_25 = arith.constant 24 : index
    %c128 = arith.constant 128 : index
    %52 = vector.load %arg11[%c24_25, %c128] : memref<304x288xf32, #tpu.memory_space<vmem>>, vector<256x32xf32>
    %53 = arith.addf %51, %52 : vector<256x32xf32>
    %c40 = arith.constant 40 : index
    %c224 = arith.constant 224 : index
    %54 = vector.load %arg11[%c40, %c224] : memref<304x288xf32, #tpu.memory_space<vmem>>, vector<256x32xf32>
    %55 = arith.addf %53, %54 : vector<256x32xf32>
    %56 = arith.addf %48, %55 : vector<256x32xf32>
    %cst_26 = arith.constant 0.000000e+00 : f32
    %57 = vector.broadcast %cst_26 : f32 to vector<256x32xf32>
    %c9 = arith.constant 9 : index
    %c64 = arith.constant 64 : index
    %58 = vector.load %arg11[%c9, %c64] : memref<304x288xf32, #tpu.memory_space<vmem>>, vector<256x32xf32>
    %59 = arith.addf %57, %58 : vector<256x32xf32>
    %c25 = arith.constant 25 : index
    %c160 = arith.constant 160 : index
    %60 = vector.load %arg11[%c25, %c160] : memref<304x288xf32, #tpu.memory_space<vmem>>, vector<256x32xf32>
    %61 = arith.addf %59, %60 : vector<256x32xf32>
    %c41 = arith.constant 41 : index
    %c256 = arith.constant 256 : index
    %62 = vector.load %arg11[%c41, %c256] : memref<304x288xf32, #tpu.memory_space<vmem>>, vector<256x32xf32>
    %63 = arith.addf %61, %62 : vector<256x32xf32>
    %cst_27 = arith.constant 0.000000e+00 : f32
    %64 = vector.shape_cast %29 : vector<256x1xi1> to vector<256x1xi1>
    %65 = vector.broadcast %64 : vector<256x1xi1> to vector<256x32xi1>
    %66 = vector.broadcast %cst_27 : f32 to vector<256x32xf32>
    %67 = arith.select %65, %63, %66 : vector<256x32xi1>, vector<256x32xf32>
    %68 = arith.addf %56, %67 : vector<256x32xf32>
    %c0_28 = arith.constant 0 : index
    %c0_29 = arith.constant 0 : index
    %69 = vector.load %arg3[%c0_28, %c0_29] : memref<1x32xf32, #tpu.memory_space<vmem>>, vector<1x32xf32>
    %70 = vector.broadcast %69 : vector<1x32xf32> to vector<256x32xf32>
    %71 = arith.addf %68, %70 : vector<256x32xf32>
    %cst_30 = arith.constant dense<0.000000e+00> : vector<32xf32>
    %72 = vector.multi_reduction <add>, %71, %cst_30 [0] : vector<256x32xf32> to vector<32xf32>
    %73 = vector.shape_cast %72 : vector<32xf32> to vector<1x32xf32>
    %cst_31 = arith.constant 3.906250e-03 : f32
    %74 = vector.broadcast %cst_31 : f32 to vector<1x32xf32>
    %75 = arith.mulf %73, %74 : vector<1x32xf32>
    %c0_32 = arith.constant 0 : index
    %c0_33 = arith.constant 0 : index
    %76 = vector.load %arg4[%c0_32, %c0_33] : memref<2x32xf32, #tpu.memory_space<vmem>>, vector<2x32xf32>
    %77 = vector.broadcast %75 : vector<1x32xf32> to vector<2x32xf32>
    %78 = arith.mulf %77, %76 : vector<2x32xf32>
    %cst_34 = arith.constant dense<0.000000e+00> : vector<2xf32>
    %79 = vector.multi_reduction <add>, %78, %cst_34 [1] : vector<2x32xf32> to vector<2xf32>
    %80 = vector.shape_cast %79 : vector<2xf32> to vector<2x1xf32>
    %cst_35 = arith.constant 0.000000e+00 : f32
    %81 = vector.broadcast %cst_35 : f32 to vector<2x1xf32>
    %82 = arith.maximumf %80, %81 : vector<2x1xf32>
    %c0_36 = arith.constant 0 : index
    %c0_37 = arith.constant 0 : index
    %83 = vector.load %arg5[%c0_36, %c0_37] : memref<2x32xf32, #tpu.memory_space<vmem>>, vector<2x32xf32>
    %84 = vector.broadcast %82 : vector<2x1xf32> to vector<2x32xf32>
    %85 = arith.mulf %84, %83 : vector<2x32xf32>
    %cst_38 = arith.constant dense<0.000000e+00> : vector<32xf32>
    %86 = vector.multi_reduction <add>, %85, %cst_38 [0] : vector<2x32xf32> to vector<32xf32>
    %87 = vector.shape_cast %86 : vector<32xf32> to vector<1x32xf32>
    %88 = arith.negf %87 : vector<1x32xf32>
    %89 = math.exp %88 : vector<1x32xf32>
    %cst_39 = arith.constant 1.000000e+00 : f32
    %90 = vector.broadcast %cst_39 : f32 to vector<1x32xf32>
    %91 = arith.addf %90, %89 : vector<1x32xf32>
    %92 = arith.divf %90, %91 : vector<1x32xf32>
    %93 = vector.broadcast %92 : vector<1x32xf32> to vector<256x32xf32>
    %94 = arith.mulf %71, %93 : vector<256x32xf32>
    %cst_40 = arith.constant 0.000000e+00 : f32
    %95 = vector.broadcast %cst_40 : f32 to vector<256x32xf32>
    %96 = arith.maximumf %94, %95 : vector<256x32xf32>
    %c0_41 = arith.constant 0 : index
    %c0_42 = arith.constant 0 : index
    %c8_43 = arith.constant 8 : index
    %97 = vector.load %arg10[%c0_41, %c0_42, %c8_43] : memref<1x256x72xf32, #tpu.memory_space<vmem>>, vector<1x256x32xf32>
    %98 = vector.shape_cast %97 : vector<1x256x32xf32> to vector<256x32xf32>
    %99 = vector.shape_cast %96 : vector<256x32xf32> to vector<1x256x32xf32>
    tpu.vector_store %arg10[%c0_41, %c0_42, %c8_43], %99 {strides = array<i32>} : memref<1x256x72xf32, #tpu.memory_space<vmem>>, vector<1x256x32xf32>,
    %c0_44 = arith.constant 0 : index
    %c0_45 = arith.constant 0 : index
    %c0_46 = arith.constant 0 : index
    %100 = vector.load %arg10[%c0_44, %c0_45, %c0_46] : memref<1x256x72xf32, #tpu.memory_space<vmem>>, vector<1x256x40xf32>
    %101 = vector.shape_cast %100 : vector<1x256x40xf32> to vector<256x40xf32>
    %102 = arith.truncf %101 : vector<256x40xf32> to vector<256x40xbf16>
    %c0_47 = arith.constant 0 : index
    %c0_48 = arith.constant 0 : index
    %103 = vector.load %arg6[%c0_47, %c0_48] : memref<40x288xbf16, #tpu.memory_space<vmem>>, vector<40x288xbf16>
    %cst_49 = arith.constant dense<0.000000e+00> : vector<256x288xf32>
    %104 = tpu.matmul %102, %103, %cst_49 {dimension_numbers = #tpu.dot_dimension_numbers<[1], [0], [0], [1], [0, 0, 1, 1], [], []>} : vector<256x40xbf16>, vector<40x288xbf16>, vector<256x288xf32> -> vector<256x288xf32>
    %c24_50 = arith.constant 24 : index
    %c0_51 = arith.constant 0 : index
    %105 = vector.load %arg11[%c24_50, %c0_51] : memref<304x288xf32, #tpu.memory_space<vmem>>, vector<256x288xf32>
    tpu.vector_store %arg11[%c24_50, %c0_51], %104 {strides = array<i32>} : memref<304x288xf32, #tpu.memory_space<vmem>>, vector<256x288xf32>,
    %cst_52 = arith.constant 0.000000e+00 : f32
    %106 = vector.broadcast %cst_52 : f32 to vector<256x32xf32>
    %cst_53 = arith.constant 0.000000e+00 : f32
    %107 = vector.broadcast %cst_53 : f32 to vector<256x32xf32>
    %c7_54 = arith.constant 7 : index
    %c0_55 = arith.constant 0 : index
    %108 = vector.load %arg11[%c7_54, %c0_55] : memref<304x288xf32, #tpu.memory_space<vmem>>, vector<256x32xf32>
    %109 = arith.addf %107, %108 : vector<256x32xf32>
    %c23_56 = arith.constant 23 : index
    %c96_57 = arith.constant 96 : index
    %110 = vector.load %arg11[%c23_56, %c96_57] : memref<304x288xf32, #tpu.memory_space<vmem>>, vector<256x32xf32>
    %111 = arith.addf %109, %110 : vector<256x32xf32>
    %c39_58 = arith.constant 39 : index
    %c192_59 = arith.constant 192 : index
    %112 = vector.load %arg11[%c39_58, %c192_59] : memref<304x288xf32, #tpu.memory_space<vmem>>, vector<256x32xf32>
    %113 = arith.addf %111, %112 : vector<256x32xf32>
    %cst_60 = arith.constant 0.000000e+00 : f32
    %114 = vector.shape_cast %27 : vector<256x1xi1> to vector<256x1xi1>
    %115 = vector.broadcast %114 : vector<256x1xi1> to vector<256x32xi1>
    %116 = vector.broadcast %cst_60 : f32 to vector<256x32xf32>
    %117 = arith.select %115, %113, %116 : vector<256x32xi1>, vector<256x32xf32>
    %118 = arith.addf %106, %117 : vector<256x32xf32>
    %cst_61 = arith.constant 0.000000e+00 : f32
    %119 = vector.broadcast %cst_61 : f32 to vector<256x32xf32>
    %c8_62 = arith.constant 8 : index
    %c32_63 = arith.constant 32 : index
    %120 = vector.load %arg11[%c8_62, %c32_63] : memref<304x288xf32, #tpu.memory_space<vmem>>, vector<256x32xf32>
    %121 = arith.addf %119, %120 : vector<256x32xf32>
    %c24_64 = arith.constant 24 : index
    %c128_65 = arith.constant 128 : index
    %122 = vector.load %arg11[%c24_64, %c128_65] : memref<304x288xf32, #tpu.memory_space<vmem>>, vector<256x32xf32>
    %123 = arith.addf %121, %122 : vector<256x32xf32>
    %c40_66 = arith.constant 40 : index
    %c224_67 = arith.constant 224 : index
    %124 = vector.load %arg11[%c40_66, %c224_67] : memref<304x288xf32, #tpu.memory_space<vmem>>, vector<256x32xf32>
    %125 = arith.addf %123, %124 : vector<256x32xf32>
    %126 = arith.addf %118, %125 : vector<256x32xf32>
    %cst_68 = arith.constant 0.000000e+00 : f32
    %127 = vector.broadcast %cst_68 : f32 to vector<256x32xf32>
    %c9_69 = arith.constant 9 : index
    %c64_70 = arith.constant 64 : index
    %128 = vector.load %arg11[%c9_69, %c64_70] : memref<304x288xf32, #tpu.memory_space<vmem>>, vector<256x32xf32>
    %129 = arith.addf %127, %128 : vector<256x32xf32>
    %c25_71 = arith.constant 25 : index
    %c160_72 = arith.constant 160 : index
    %130 = vector.load %arg11[%c25_71, %c160_72] : memref<304x288xf32, #tpu.memory_space<vmem>>, vector<256x32xf32>
    %131 = arith.addf %129, %130 : vector<256x32xf32>
    %c41_73 = arith.constant 41 : index
    %c256_74 = arith.constant 256 : index
    %132 = vector.load %arg11[%c41_73, %c256_74] : memref<304x288xf32, #tpu.memory_space<vmem>>, vector<256x32xf32>
    %133 = arith.addf %131, %132 : vector<256x32xf32>
    %cst_75 = arith.constant 0.000000e+00 : f32
    %134 = vector.shape_cast %29 : vector<256x1xi1> to vector<256x1xi1>
    %135 = vector.broadcast %134 : vector<256x1xi1> to vector<256x32xi1>
    %136 = vector.broadcast %cst_75 : f32 to vector<256x32xf32>
    %137 = arith.select %135, %133, %136 : vector<256x32xi1>, vector<256x32xf32>
    %138 = arith.addf %126, %137 : vector<256x32xf32>
    %c0_76 = arith.constant 0 : index
    %c0_77 = arith.constant 0 : index
    %139 = vector.load %arg7[%c0_76, %c0_77] : memref<1x32xf32, #tpu.memory_space<vmem>>, vector<1x32xf32>
    %140 = vector.broadcast %139 : vector<1x32xf32> to vector<256x32xf32>
    %141 = arith.addf %138, %140 : vector<256x32xf32>
    %cst_78 = arith.constant dense<0.000000e+00> : vector<32xf32>
    %142 = vector.multi_reduction <add>, %141, %cst_78 [0] : vector<256x32xf32> to vector<32xf32>
    %143 = vector.shape_cast %142 : vector<32xf32> to vector<1x32xf32>
    %cst_79 = arith.constant 3.906250e-03 : f32
    %144 = vector.broadcast %cst_79 : f32 to vector<1x32xf32>
    %145 = arith.mulf %143, %144 : vector<1x32xf32>
    %c0_80 = arith.constant 0 : index
    %c0_81 = arith.constant 0 : index
    %146 = vector.load %arg8[%c0_80, %c0_81] : memref<2x32xf32, #tpu.memory_space<vmem>>, vector<2x32xf32>
    %147 = vector.broadcast %145 : vector<1x32xf32> to vector<2x32xf32>
    %148 = arith.mulf %147, %146 : vector<2x32xf32>
    %cst_82 = arith.constant dense<0.000000e+00> : vector<2xf32>
    %149 = vector.multi_reduction <add>, %148, %cst_82 [1] : vector<2x32xf32> to vector<2xf32>
    %150 = vector.shape_cast %149 : vector<2xf32> to vector<2x1xf32>
    %cst_83 = arith.constant 0.000000e+00 : f32
    %151 = vector.broadcast %cst_83 : f32 to vector<2x1xf32>
    %152 = arith.maximumf %150, %151 : vector<2x1xf32>
    %c0_84 = arith.constant 0 : index
    %c0_85 = arith.constant 0 : index
    %153 = vector.load %arg9[%c0_84, %c0_85] : memref<2x32xf32, #tpu.memory_space<vmem>>, vector<2x32xf32>
    %154 = vector.broadcast %152 : vector<2x1xf32> to vector<2x32xf32>
    %155 = arith.mulf %154, %153 : vector<2x32xf32>
    %cst_86 = arith.constant dense<0.000000e+00> : vector<32xf32>
    %156 = vector.multi_reduction <add>, %155, %cst_86 [0] : vector<2x32xf32> to vector<32xf32>
    %157 = vector.shape_cast %156 : vector<32xf32> to vector<1x32xf32>
    %158 = arith.negf %157 : vector<1x32xf32>
    %159 = math.exp %158 : vector<1x32xf32>
    %cst_87 = arith.constant 1.000000e+00 : f32
    %160 = vector.broadcast %cst_87 : f32 to vector<1x32xf32>
    %161 = arith.addf %160, %159 : vector<1x32xf32>
    %162 = arith.divf %160, %161 : vector<1x32xf32>
    %163 = vector.broadcast %162 : vector<1x32xf32> to vector<256x32xf32>
    %164 = arith.mulf %141, %163 : vector<256x32xf32>
    %cst_88 = arith.constant 0.000000e+00 : f32
    %165 = vector.broadcast %cst_88 : f32 to vector<256x32xf32>
    %166 = arith.maximumf %164, %165 : vector<256x32xf32>
    %c0_89 = arith.constant 0 : index
    %c0_90 = arith.constant 0 : index
    %c40_91 = arith.constant 40 : index
    %167 = vector.load %arg10[%c0_89, %c0_90, %c40_91] : memref<1x256x72xf32, #tpu.memory_space<vmem>>, vector<1x256x32xf32>
    %168 = vector.shape_cast %167 : vector<1x256x32xf32> to vector<256x32xf32>
    %169 = vector.shape_cast %166 : vector<256x32xf32> to vector<1x256x32xf32>
    tpu.vector_store %arg10[%c0_89, %c0_90, %c40_91], %169 {strides = array<i32>} : memref<1x256x72xf32, #tpu.memory_space<vmem>>, vector<1x256x32xf32>,
    return
  }
  func.func @transform_0(%arg0: i32) -> (i32, i32, i32) {
    %c0_i32 = arith.constant 0 : i32
    %c0_i32_0 = arith.constant 0 : i32
    %c0_i32_1 = arith.constant 0 : i32
    return %arg0, %c0_i32, %c0_i32_0 : i32, i32, i32
  }
  func.func @transform_1(%arg0: i32) -> (i32, i32) {
    %c0_i32 = arith.constant 0 : i32
    %c0_i32_0 = arith.constant 0 : i32
    %c0_i32_1 = arith.constant 0 : i32
    return %c0_i32, %c0_i32_0 : i32, i32
  }
  func.func @transform_2(%arg0: i32) -> (i32, i32) {
    %c0_i32 = arith.constant 0 : i32
    %c0_i32_0 = arith.constant 0 : i32
    %c0_i32_1 = arith.constant 0 : i32
    return %c0_i32, %c0_i32_0 : i32, i32
  }
  func.func @transform_3(%arg0: i32) -> (i32, i32) {
    %c0_i32 = arith.constant 0 : i32
    %c0_i32_0 = arith.constant 0 : i32
    %c0_i32_1 = arith.constant 0 : i32
    return %c0_i32, %c0_i32_0 : i32, i32
  }
  func.func @transform_4(%arg0: i32) -> (i32, i32) {
    %c0_i32 = arith.constant 0 : i32
    %c0_i32_0 = arith.constant 0 : i32
    %c0_i32_1 = arith.constant 0 : i32
    return %c0_i32, %c0_i32_0 : i32, i32
  }
  func.func @transform_5(%arg0: i32) -> (i32, i32) {
    %c0_i32 = arith.constant 0 : i32
    %c0_i32_0 = arith.constant 0 : i32
    %c0_i32_1 = arith.constant 0 : i32
    return %c0_i32, %c0_i32_0 : i32, i32
  }
  func.func @transform_6(%arg0: i32) -> (i32, i32) {
    %c0_i32 = arith.constant 0 : i32
    %c0_i32_0 = arith.constant 0 : i32
    %c0_i32_1 = arith.constant 0 : i32
    return %c0_i32, %c0_i32_0 : i32, i32
  }
  func.func @transform_7(%arg0: i32) -> (i32, i32) {
    %c0_i32 = arith.constant 0 : i32
    %c0_i32_0 = arith.constant 0 : i32
    %c0_i32_1 = arith.constant 0 : i32
    return %c0_i32, %c0_i32_0 : i32, i32
  }
  func.func @transform_8(%arg0: i32) -> (i32, i32) {
    %c0_i32 = arith.constant 0 : i32
    %c0_i32_0 = arith.constant 0 : i32
    %c0_i32_1 = arith.constant 0 : i32
    return %c0_i32, %c0_i32_0 : i32, i32
  }
  func.func @transform_9(%arg0: i32) -> (i32, i32, i32) {
    %c0_i32 = arith.constant 0 : i32
    %c0_i32_0 = arith.constant 0 : i32
    %c0_i32_1 = arith.constant 0 : i32
    return %arg0, %c0_i32, %c0_i32_0 : i32, i32, i32
  }
}

</mosaic_0001>

<bundles_post_ra>
// kernel: dense_block_forward.1
= control target key start
LH: loop header
LB: loop body
LE: loop exit
PB: predicated region body
PF: predicated region fallthrough
CT: control target
= control target key end

     0   :  { %14 = vsyncpa [#allocation4], 0  ;;  %s9918_s0 = inlined_call_operand.vmem [shape: f32[2,256,8], index: 0, kind: input, shape index: {}]   ;;  %s9919_s1 = inlined_call_operand.vmem [shape: bf16[8,288], index: 1, kind: input, shape index: {}]   ;;  %s9920_s2 = inlined_call_operand.vmem [shape: f32[1,32], index: 2, kind: input, shape index: {}]   ;;  %s9921_s3 = inlined_call_operand.vmem [shape: f32[2,32], index: 3, kind: input, shape index: {}]   ;;  %s9922_s4 = inlined_call_operand.vmem [shape: f32[2,32], index: 4, kind: input, shape index: {}]   ;;  %s9923_s5 = inlined_call_operand.vmem [shape: bf16[40,288], index: 5, kind: input, shape index: {}]   ;;  %s9924_s6 = inlined_call_operand.vmem [shape: f32[1,32], index: 6, kind: input, shape index: {}]   ;;  %s9925_s7 = inlined_call_operand.vmem [shape: f32[2,32], index: 7, kind: input, shape index: {}]   ;;  %s9926_s8 = inlined_call_operand.vmem [shape: f32[2,32], index: 8, kind: input, shape index: {}]   ;;  %s9927_s9 = inlined_call_operand.hbm [shape: f32[2,256,72], index: 9, kind: output, shape index: {}]  }
   0x1   :  { %16 = vsyncpa [#allocation4 + $0x1], 0  ;;  %s6287_s30 = smov 0   ;;  %s6289_s10 = smov 0  }
   0x2   :  { %s6291_s11 = smov 0   ;;  %s6293_s12 = smov 0  }
   0x3 LB: > { %s6308_s13 = sadd.s32 4294967295, %s6226_s12   ;;  %s5844_s14 = sadd.s32 4294967294, %s6226_s12   ;;  %s6226_s12 = sphi %s6293_s12, %s10547_s12   ;;  %s6222_s11 = sphi %s6291_s11, %s10546_s11   ;;  %s6218_s10 = sphi %s6289_s10, %s10545_s10   ;;  %s6214_s30 = sphi %s6287_s30, %s10544_s30  }
   0x4   : > { %s6312_s15 = sadd.s32 1, %s6226_s12   ;;  %s223_s16 = sadd.s32 1, %s6222_s11 }
   0x5   : > { %s220_s17 = ssub.s32 %s6226_s12, %s6312_s15  ;;  %p233_p0 = scmp.ne.s32.totalorder %s6222_s11, %s6218_s10 }
   0x6   : > { %p221_p1 = scmp.eq.s32.totalorder %s220_s17, 0  ;;  %p234_p2 = scmp.eq.s32.totalorder %s6308_s13, 1 }
   0x7   : > { %p239_p3 = scmp.ne.s32.totalorder %s6218_s10, %s6214_s30  ;;  %p240_p4 = scmp.eq.s32.totalorder %s5844_s14, 1 }
   0x8   : > { %s6323_s18 = scalar_select %p221_p1, %s6222_s11, %s223_s16  }
   0x9   : > { %p6325_p5 = por %p234_p2, %p233_p0  ;;  %p6329_p6 = por %p240_p4, %p239_p3 }
   0xa   : > { %p5847_p7 = scmp.ge.s32.totalorder %s6226_s12, 1  ;;  %p290_p8 = scmp.lt.s32.totalorder %s6226_s12, 3 }
   0xc   : > { %p291_p9 = pnand %p5847_p7, %p290_p8 }
   0xe   : > { %294 = sbr.rel (%p291_p9) target bundleno = 2288 (0x8f0), region = 56 }
  0x15   : > { %v945_v0 = vld [vmem:[%s9919_s1] sm:$0xff]  ;;  %vm9985_vm0 = vcmask 1043456   ;;  %s10014_s23 = sand.u32 1, %s6218_s10   ;;  %p326_p10 = scmp.lt.s32.totalorder %s6308_s13, 1  ;;  %v9928_v3 = vmov 0   ;;  %vm383_vm1 = vcmask 64512  }
  0x16   : > { %v5852_v1 = vcombine.high %v945_v0, %v945_v0  ;;  %v5851_v2 = vcombine.low %v945_v0, %v945_v0  ;;  %1045 = vmatprep.mubr.bf16.mxu0 %v9928_v3  ;;  %v6119_v4 = vld [vmem:[%s9919_s1 + $0x8] ss:$0 sps:$4 sm:$0xff]   ;;  %s5848_s26 = sshll.u32 %s10014_s23, 8  ;;  %vm9993_vm2 = vcmask 261120   ;;  %v6229_v22 = vmov 0.0   ;;  %s6230_s21 = smov 64  }
  0x17   : > { %s327_s27 = scalar_select %p326_p10, %s6308_s13, 1  ;;  %6048 = vmatprep.subr.msk.bf16.mxu1 %vm9985_vm0, %v6119_v4  ;;  %v1011_v6 = vsel %vm9985_vm0, %v6119_v4, 0  ;;  %344 = vst.msk [vmem:[#allocation2 + $0x358] sm:$0xff] %vm9993_vm2, %v6229_v22  ;;  %345 = vst [vmem:[#allocation2 + $0x360] sm:$0xff] %v6229_v22  ;;  %vm9980_vm3 = vcmask 1046528   ;;  %vm9986_vm4 = vcmask 1040384  }
  0x18   : > { %5854 = vmatprep.subr.msk.bf16.mxu0 %vm9985_vm0, %v5852_v1  ;;  %v1005_v5 = vsel %vm9985_vm0, %v5851_v2, 0  ;;  %5977 = vmatpush3.bf16.msra.mxu1 %v1011_v6  ;;  %s6359_s17 = scalar_lea.vmem [#allocation3], %s5848_s26  ;;  %332 = vst [vmem:[#allocation2] sm:$0xff] %v6229_v22  ;;  %336 = vst [vmem:[#allocation2 + $0x18] sm:$0xff] %v6229_v22  ;;  %s6231_s22 = smov 32  }
  0x19   : > { %1014 = vmatpush1.bf16.msra.mxu0 %v1005_v5  ;;  %s5938_s28 = sshll.u32 %s327_s27, 8  ;;  %339 = vst [vmem:[#allocation2 + $0x30] sm:$0xff] %v6229_v22  ;;  %343 = vst [vmem:[#allocation2 + $0x350] sm:$0xff] %v6229_v22  ;;  %s6232_s24 = smov 96  }
  0x1a   : > { %s6354_s16 = scalar_lea.vmem %s9918_s0, %s5938_s28  ;;  %346 = vst [vmem:[#allocation2 + $0x368] sm:$0xff] %v6229_v22  ;;  %347 = vst.msk [vmem:[#allocation2 + $0x370] sm:$0xff] %vm9993_vm2, %v6229_v22  ;;  %s6234_s27 = smov 40  }
  0x1b   : > { %v351_v7 = vld [vmem:[%s6354_s16] sm:$0xff]  ;;  %v352_v8 = vld [vmem:[%s6354_s16 + $0x8] sm:$0xff]  ;;  %v353_v9 = vld [vmem:[%s6354_s16 + $0x10] sm:$0xff]  ;;  %350 = vst.msk [vmem:[#allocation2 + $0x388] sm:$0xff] %vm9993_vm2, %v6229_v22  ;;  %s5939_s28 = sshll.u32 %s6308_s13, 12  ;;  %s5782_s29 = sshll.u32 %s6359_s17, 4  ;;  %s9870_s29 = int_to_ptr.vmem [resolvable:$true] %s5782_s29 }
  0x1c   : > { %384 = vst.msk [vmem:[%s6359_s17] sm:$0xff] %vm383_vm1, %v351_v7  ;;  %385 = vst.msk [vmem:[%s6359_s17 + $0x8] sm:$0xff] %vm383_vm1, %v352_v8  ;;  %v354_v10 = vld [vmem:[%s6354_s16 + $0x18] sm:$0xff]  ;;  %v355_v11 = vld [vmem:[%s6354_s16 + $0x20] sm:$0xff]  ;;  %s6164_s13 = scalar_lea.vmem %s9870_s29, 4096  ;;  %s6235_s23 = smov [#allocation3]  }
  0x1d   : > { %386 = vst.msk [vmem:[%s6359_s17 + $0x10] sm:$0xff] %vm383_vm1, %v353_v9  ;;  %v356_v12 = vld [vmem:[%s6354_s16 + $0x28] sm:$0xff]  ;;  %387 = vst.msk [vmem:[%s6359_s17 + $0x18] sm:$0xff] %vm383_vm1, %v354_v10  ;;  %v357_v13 = vld [vmem:[%s6354_s16 + $0x30] sm:$0xff]  ;;  %p6165_p11 = scmp.ne.s32.totalorder %s9870_s29, %s6164_s13  ;;  %s6168_s26 = sshll.u32 %s6235_s23, 4  ;;  %s6169_s26 = int_to_ptr.vmem [resolvable:$false] %s6168_s26 }
  0x1e   : > { %388 = vst.msk [vmem:[%s6359_s17 + $0x20] sm:$0xff] %vm383_vm1, %v355_v11  ;;  %389 = vst.msk [vmem:[%s6359_s17 + $0x28] sm:$0xff] %vm383_vm1, %v356_v12  ;;  %v358_v14 = vld [vmem:[%s6354_s16 + $0x38] sm:$0xff]  ;;  %v359_v15 = vld [vmem:[%s6354_s16 + $0x40] sm:$0xff]  ;;  %p6171_p0 = scmp.lt.s32.totalorder %s9870_s29, %s6169_s26 }
  0x1f   : > { %390 = vst.msk [vmem:[%s6359_s17 + $0x30] sm:$0xff] %vm383_vm1, %v357_v13  ;;  %391 = vst.msk [vmem:[%s6359_s17 + $0x38] sm:$0xff] %vm383_vm1, %v358_v14  ;;  %v360_v16 = vld [vmem:[%s6354_s16 + $0x48] sm:$0xff]  ;;  %v361_v17 = vld [vmem:[%s6354_s16 + $0x50] sm:$0xff]  ;;  %p6166_p12 = pnand %p6165_p11, %p6325_p5 }
  0x20   : > { %392 = vst.msk [vmem:[%s6359_s17 + $0x40] sm:$0xff] %vm383_vm1, %v359_v15  ;;  %v362_v18 = vld [vmem:[%s6354_s16 + $0x58] sm:$0xff]  ;;  %393 = vst.msk [vmem:[%s6359_s17 + $0x48] sm:$0xff] %vm383_vm1, %v360_v16  ;;  %v363_v19 = vld [vmem:[%s6354_s16 + $0x60] sm:$0xff] }
  0x21   : > { %394 = vst.msk [vmem:[%s6359_s17 + $0x50] sm:$0xff] %vm383_vm1, %v361_v17  ;;  %395 = vst.msk [vmem:[%s6359_s17 + $0x58] sm:$0xff] %vm383_vm1, %v362_v18  ;;  %v364_v20 = vld [vmem:[%s6354_s16 + $0x68] sm:$0xff]  ;;  %v365_v21 = vld [vmem:[%s6354_s16 + $0x70] sm:$0xff]  ;;  %p6167_p13 = pneg %p6166_p12 }
  0x22   : > { %396 = vst.msk [vmem:[%s6359_s17 + $0x60] sm:$0xff] %vm383_vm1, %v363_v19  ;;  %397 = vst.msk [vmem:[%s6359_s17 + $0x68] sm:$0xff] %vm383_vm1, %v364_v20  ;;  %v366_v23 = vld [vmem:[%s6354_s16 + $0x78] sm:$0xff]  ;;  %v367_v24 = vld [vmem:[%s6354_s16 + $0x80] sm:$0xff] }
  0x23   : > { %398 = vst.msk [vmem:[%s6359_s17 + $0x70] sm:$0xff] %vm383_vm1, %v365_v21  ;;  %v368_v25 = vld [vmem:[%s6354_s16 + $0x88] sm:$0xff]  ;;  %399 = vst.msk [vmem:[%s6359_s17 + $0x78] sm:$0xff] %vm383_vm1, %v366_v23  ;;  %v369_v26 = vld [vmem:[%s6354_s16 + $0x90] sm:$0xff] }
  0x24   : > { %400 = vst.msk [vmem:[%s6359_s17 + $0x80] sm:$0xff] %vm383_vm1, %v367_v24  ;;  %401 = vst.msk [vmem:[%s6359_s17 + $0x88] sm:$0xff] %vm383_vm1, %v368_v25  ;;  %v370_v27 = vld [vmem:[%s6354_s16 + $0x98] sm:$0xff]  ;;  %v371_v28 = vld [vmem:[%s6354_s16 + $0xa0] sm:$0xff] }
  0x25   : > { %402 = vst.msk [vmem:[%s6359_s17 + $0x90] sm:$0xff] %vm383_vm1, %v369_v26  ;;  %403 = vst.msk [vmem:[%s6359_s17 + $0x98] sm:$0xff] %vm383_vm1, %v370_v27  ;;  %v372_v29 = vld [vmem:[%s6354_s16 + $0xa8] sm:$0xff]  ;;  %v373_v30 = vld [vmem:[%s6354_s16 + $0xb0] sm:$0xff] }
  0x26   : > { %404 = vst.msk [vmem:[%s6359_s17 + $0xa0] sm:$0xff] %vm383_vm1, %v371_v28  ;;  %v374_v31 = vld [vmem:[%s6354_s16 + $0xb8] sm:$0xff]  ;;  %v897_v32 = vld [vmem:[%s6359_s17] sm:$0xff]  ;;  %v899_v34 = vld [vmem:[%s6359_s17 + $0x10] sm:$0xff] }
  0x27   : > { %v898_v33 = vld [vmem:[%s6359_s17 + $0x8] sm:$0xff]  ;;  %405 = vst.msk [vmem:[%s6359_s17 + $0xa8] sm:$0xff] %vm383_vm1, %v372_v29  ;;  %406 = vst.msk [vmem:[%s6359_s17 + $0xb0] sm:$0xff] %vm383_vm1, %v373_v30  ;;  %v900_v36 = vld [vmem:[%s6359_s17 + $0x18] sm:$0xff] }
  0x28   : > { %407 = vst.msk [vmem:[%s6359_s17 + $0xb8] sm:$0xff] %vm383_vm1, %v374_v31  ;;  %v929_v35 = vpack.c.bf16 %v898_v33, %v897_v32  ;;  %v901_v37 = vld [vmem:[%s6359_s17 + $0x20] sm:$0xff]  ;;  %v902_v38 = vld [vmem:[%s6359_s17 + $0x28] sm:$0xff]  ;;  %v930_v39 = vpack.c.bf16 %v900_v36, %v899_v34  ;;  %v903_v41 = vld [vmem:[%s6359_s17 + $0x30] sm:$0xff] }
  0x29   : > { %v931_v40 = vpack.c.bf16 %v902_v38, %v901_v37  ;;  %v904_v42 = vld [vmem:[%s6359_s17 + $0x38] sm:$0xff]  ;;  %v905_v43 = vld [vmem:[%s6359_s17 + $0x40] sm:$0xff]  ;;  %v906_v44 = vld [vmem:[%s6359_s17 + $0x48] sm:$0xff] }
  0x2a   : > { %5855 = vmatmul.mubr.msk.bf16.vlgmr.msra.gmra.mrb[0].mxu0 %vm383_vm1, %v929_v35  ;;  %5978 = vmatprep.mubr.msk.bf16.mxu1 %vm383_vm1, %v929_v35  ;;  %v932_v45 = vpack.c.bf16 %v904_v42, %v903_v41  ;;  %v375_v46 = vld [vmem:[%s6354_s16 + $0xc0] sm:$0xff]  ;;  %v376_v47 = vld [vmem:[%s6354_s16 + $0xc8] sm:$0xff]  ;;  %v377_v48 = vld [vmem:[%s6354_s16 + $0xd0] sm:$0xff]  ;;  %v933_v55 = vpack.c.bf16 %v906_v44, %v905_v43 }
  0x2b   : > { %5979 = vmatmul.mubr.msk.bf16.vlgmr.msra.gmra.mrb[0].mxu1 %vm383_vm1, %v930_v39  ;;  %1055 = vmatprep.mubr.bf16.mxu0 %v9928_v3  ;;  %408 = vst.msk [vmem:[%s6359_s17 + $0xc0] sm:$0xff] %vm383_vm1, %v375_v46  ;;  %409 = vst.msk [vmem:[%s6359_s17 + $0xc8] sm:$0xff] %vm383_vm1, %v376_v47  ;;  %v378_v49 = vld [vmem:[%s6354_s16 + $0xd8] sm:$0xff]  ;;  %v379_v50 = vld [vmem:[%s6354_s16 + $0xe0] sm:$0xff] }
  0x2c   : > { %5982 = vmatprep.mubr.msk.bf16.mxu1 %vm383_vm1, %v931_v40  ;;  %410 = vst.msk [vmem:[%s6359_s17 + $0xd0] sm:$0xff] %vm383_vm1, %v377_v48  ;;  %v380_v51 = vld [vmem:[%s6354_s16 + $0xe8] sm:$0xff]  ;;  %411 = vst.msk [vmem:[%s6359_s17 + $0xd8] sm:$0xff] %vm383_vm1, %v378_v49  ;;  %v381_v52 = vld [vmem:[%s6354_s16 + $0xf0] sm:$0xff] }
  0x2d   : > { %412 = vst.msk [vmem:[%s6359_s17 + $0xe0] sm:$0xff] %vm383_vm1, %v379_v50  ;;  %413 = vst.msk [vmem:[%s6359_s17 + $0xe8] sm:$0xff] %vm383_vm1, %v380_v51  ;;  %v382_v53 = vld [vmem:[%s6354_s16 + $0xf8] sm:$0xff]  ;;  %v2532_v56 = vld [vmem:[#allocation2 + $0x370] sm:$0xff]  ;;  %s6233_s16 = smov 8  }
  0x2e   : > { %v2531_v54 = vld [vmem:[#allocation2 + $0x358] sm:$0xff]  ;;  %414 = vst.msk [vmem:[%s6359_s17 + $0xf0] sm:$0xff] %vm383_vm1, %v381_v52  ;;  %415 = vst.msk [vmem:[%s6359_s17 + $0xf8] sm:$0xff] %vm383_vm1, %v382_v53  ;;  %v907_v57 = vld [vmem:[%s6359_s17 + $0x50] sm:$0xff] }
  0x2f   : > { %2627 = vrot.lane.b32.xlu0 %v2531_v54, %s6230_s21  ;;  %v908_v58 = vld [vmem:[%s6359_s17 + $0x58] sm:$0xff]  ;;  %v909_v59 = vld [vmem:[%s6359_s17 + $0x60] sm:$0xff]  ;;  %v910_v60 = vld [vmem:[%s6359_s17 + $0x68] sm:$0xff] }
  0x30   : > { %v934_v61 = vpack.c.bf16 %v908_v58, %v907_v57  ;;  %v935_v62 = vpack.c.bf16 %v910_v60, %v909_v59  ;;  %v911_v63 = vld [vmem:[%s6359_s17 + $0x70] sm:$0xff]  ;;  %v912_v0 = vld [vmem:[%s6359_s17 + $0x78] sm:$0xff]  ;;  %v913_v1 = vld [vmem:[%s6359_s17 + $0x80] sm:$0xff] }
  0x31   : > { %v914_v2 = vld [vmem:[%s6359_s17 + $0x88] sm:$0xff]  ;;  %v936_v4 = vpack.c.bf16 %v912_v0, %v911_v63  ;;  %v915_v6 = vld [vmem:[%s6359_s17 + $0x90] sm:$0xff]  ;;  %v916_v7 = vld [vmem:[%s6359_s17 + $0x98] sm:$0xff] }
  0x32   : > { %5856 = vmatmul.mubr.msk.bf16.gmra.mrb[4].mxu0 %vm383_vm1, %v930_v39  ;;  %v937_v5 = vpack.c.bf16 %v914_v2, %v913_v1  ;;  %v917_v8 = vld [vmem:[%s6359_s17 + $0xa0] sm:$0xff]  ;;  %v918_v9 = vld [vmem:[%s6359_s17 + $0xa8] sm:$0xff]  ;;  %v938_v10 = vpack.c.bf16 %v916_v7, %v915_v6  ;;  %v919_v12 = vld [vmem:[%s6359_s17 + $0xb0] sm:$0xff] }
  0x33   : > { %1065 = vmatprep.mubr.bf16.mxu0 %v9928_v3  ;;  %5983 = vmatmul.mubr.msk.bf16.gmra.mrb[4].mxu1 %vm383_vm1, %v932_v45  ;;  %v939_v11 = vpack.c.bf16 %v918_v9, %v917_v8  ;;  %v920_v13 = vld [vmem:[%s6359_s17 + $0xb8] sm:$0xff]  ;;  %v921_v14 = vld [vmem:[%s6359_s17 + $0xc0] sm:$0xff]  ;;  %v922_v15 = vld [vmem:[%s6359_s17 + $0xc8] sm:$0xff] }
  0x34   : > { %5986 = vmatprep.mubr.msk.bf16.mxu1 %vm383_vm1, %v933_v55  ;;  %2629 = vrot.lane.b32.xlu0 %v2532_v56, %s6230_s21  ;;  %v940_v16 = vpack.c.bf16 %v920_v13, %v919_v12  ;;  %v941_v17 = vpack.c.bf16 %v922_v15, %v921_v14  ;;  %v923_v18 = vld [vmem:[%s6359_s17 + $0xd0] sm:$0xff]  ;;  %v924_v19 = vld [vmem:[%s6359_s17 + $0xd8] sm:$0xff]  ;;  %v925_v20 = vld [vmem:[%s6359_s17 + $0xe0] sm:$0xff] }
  0x35   : > { %v926_v21 = vld [vmem:[%s6359_s17 + $0xe8] sm:$0xff]  ;;  %v942_v23 = vpack.c.bf16 %v924_v19, %v923_v18  ;;  %v927_v25 = vld [vmem:[%s6359_s17 + $0xf0] sm:$0xff]  ;;  %v928_v26 = vld [vmem:[%s6359_s17 + $0xf8] sm:$0xff] }
  0x36   : > { %v943_v24 = vpack.c.bf16 %v926_v21, %v925_v20  ;;  %v944_v27 = vpack.c.bf16 %v928_v26, %v927_v25  ;;  %v1730_v28 = vld [vmem:[#allocation2 + $0x368] sm:$0x7f]  ;;  %v1529_v29 = vld [vmem:[#allocation2 + $0x30] sm:$0x80]  ;;  %v2490_v30 = vld [vmem:[#allocation2 + $0x350] sm:$0x1] }
  0x37   : > { %v6097_v31 = vpack.i.bf16 %v2490_v30, %v1529_v29  ;;  %v2533_v32 = vld [vmem:[#allocation2 + $0x388] sm:$0x1] }
  0x38   : > { %6103 = vrot.lane.b32.xlu0 %v6229_v22, %s6230_s21 }
  0x39   : > { %6098 = vrot.lane.b32.xlu1 %v6097_v31, %s6231_s22 }
  0x3a   : > { %5857 = vmatmul.mubr.msk.bf16.gmra.mrb[8].mxu0 %vm383_vm1, %v931_v40 }
  0x3b   : > { %1075 = vmatprep.mubr.bf16.mxu0 %v9928_v3  ;;  %5987 = vmatmul.mubr.msk.bf16.gmra.mrb[8].mxu1 %vm383_vm1, %v934_v61 }
  0x3c   : > { %5990 = vmatprep.mubr.msk.bf16.mxu1 %vm383_vm1, %v935_v62  ;;  %1828 = vrot.lane.b32.xlu0 %v1730_v28, %s6230_s21 }
  0x3d   : > { %2631 = vrot.lane.b32.xlu1 %v2533_v32, %s6230_s21 }
  0x42   : > { %5858 = vmatmul.mubr.msk.bf16.gmra.mrb[12].mxu0 %vm383_vm1, %v932_v45 }
  0x43   : > { %1085 = vmatprep.mubr.bf16.mxu0 %v9928_v3  ;;  %5991 = vmatmul.mubr.msk.bf16.gmra.mrb[12].mxu1 %vm383_vm1, %v936_v4 }
  0x44   : > { %5994 = vmatprep.mubr.msk.bf16.mxu1 %vm383_vm1, %v937_v5 }
  0x4a   : > { %5859 = vmatmul.mubr.msk.bf16.gmra.mrb[16].mxu0 %vm383_vm1, %v933_v55 }
  0x4b   : > { %1095 = vmatprep.mubr.bf16.mxu0 %v9928_v3  ;;  %5995 = vmatmul.mubr.msk.bf16.gmra.mrb[16].mxu1 %vm383_vm1, %v938_v10 }
  0x4c   : > { %5998 = vmatprep.mubr.msk.bf16.mxu1 %vm383_vm1, %v939_v11 }
  0x52   : > { %5860 = vmatmul.mubr.msk.bf16.gmra.mrb[20].mxu0 %vm383_vm1, %v934_v61 }
  0x53   : > { %1105 = vmatprep.mubr.bf16.mxu0 %v9928_v3  ;;  %5999 = vmatmul.mubr.msk.bf16.gmra.mrb[20].mxu1 %vm383_vm1, %v940_v16 }
  0x54   : > { %6002 = vmatprep.mubr.msk.bf16.mxu1 %vm383_vm1, %v941_v17 }
  0x5a   : > { %5861 = vmatmul.mubr.msk.bf16.gmra.mrb[24].mxu0 %vm383_vm1, %v935_v62 }
  0x5b   : > { %1115 = vmatprep.mubr.bf16.mxu0 %v9928_v3  ;;  %6003 = vmatmul.mubr.msk.bf16.gmra.mrb[24].mxu1 %vm383_vm1, %v942_v23 }
  0x5c   : > { %6006 = vmatprep.mubr.msk.bf16.mxu1 %vm383_vm1, %v943_v24 }
  0x62   : > { %5862 = vmatmul.mubr.msk.bf16.gmra.mrb[28].mxu0 %vm383_vm1, %v936_v4 }
  0x63   : > { %1125 = vmatprep.mubr.bf16.mxu0 %v9928_v3  ;;  %6007 = vmatmul.mubr.msk.bf16.gmra.mrb[28].mxu1 %vm383_vm1, %v944_v27 }
  0x64   : > { %3566 = vmatprep.mubr.bf16.mxu1 %v9928_v3 }
  0x6a   : > { %5863 = vmatmul.mubr.msk.bf16.gmra.mrb[32].mxu0 %vm383_vm1, %v937_v5 }
  0x6b   : > { %1135 = vmatprep.mubr.bf16.mxu0 %v9928_v3 }
  0x72   : > { %5864 = vmatmul.mubr.msk.bf16.gmra.mrb[36].mxu0 %vm383_vm1, %v938_v10 }
  0x73   : > { %1145 = vmatprep.mubr.bf16.mxu0 %v9928_v3 }
  0x7a   : > { %5865 = vmatmul.mubr.msk.bf16.gmra.mrb[40].mxu0 %vm383_vm1, %v939_v11 }
  0x7b   : > { %1155 = vmatprep.mubr.bf16.mxu0 %v9928_v3 }
  0x82   : > { %5866 = vmatmul.mubr.msk.bf16.gmra.mrb[44].mxu0 %vm383_vm1, %v940_v16 }
  0x83   : > { %1165 = vmatprep.mubr.bf16.mxu0 %v9928_v3 }
  0x8a   : > { %5867 = vmatmul.mubr.msk.bf16.gmra.mrb[48].mxu0 %vm383_vm1, %v941_v17 }
  0x8b   : > { %1175 = vmatprep.mubr.bf16.mxu0 %v9928_v3 }
  0x92   : > { %5868 = vmatmul.mubr.msk.bf16.gmra.mrb[52].mxu0 %vm383_vm1, %v942_v23 }
  0x93   : > { %1185 = vmatprep.mubr.bf16.mxu0 %v9928_v3 }
  0x9a   : > { %5869 = vmatmul.mubr.msk.bf16.gmra.mrb[56].mxu0 %vm383_vm1, %v943_v24 }
  0x9b   : > { %1195 = vmatprep.mubr.bf16.mxu0 %v9928_v3 }
  0xa2   : > { %5870 = vmatmul.mubr.msk.bf16.gmra.mrb[60].mxu0 %vm383_vm1, %v944_v27 }
  0xfd   : > { %v6553_v22 = vpop.f32.mrb[0].mxu0 }
  0xfe   : > { %v1049_v33 = vpop.f32.mrb[1].mxu0  ;;  %v5980_v34 = vpop.f32.mrb[0].mxu1  ;;  %1568 = vrot.lane.b32.xlu0 %v6553_v22, %s6231_s22 }
  0xff   : > { %1368 = vst [vmem:[#allocation2 + $0x50] sm:$0xff] %v1049_v33  ;;  %v6557_v35 = vpop.f32.mrb[2].mxu0  ;;  %1375 = vst.msk [vmem:[#allocation2 + $0x88] sm:$0xff] %vm9993_vm2, %v5980_v34  ;;  %v1240_v36 = vpop.f32.mrb[1].mxu1 }
 0x100   : > { %v1053_v37 = vpop.f32.mrb[3].mxu0  ;;  %v5981_v38 = vpop.f32.mrb[2].mxu1 }
 0x101   : > { %1371 = vst [vmem:[#allocation2 + $0x68] sm:$0xff] %v1053_v37  ;;  %1378 = vst.msk [vmem:[#allocation2 + $0xa0] sm:$0xff] %vm9993_vm2, %v5981_v38  ;;  %v1243_v39 = vpop.f32.mrb[3].mxu1 }
 0x102   : > { %2162 = vrot.lane.b32.xlu0 %v1053_v37, %s6231_s22 }
 0x105   : > { %v6562_v40 = vpop.f32.mrb[4].mxu0 }
 0x106   : > { %v2489_v41 = vld [vmem:[#allocation2 + $0x50] sm:$0xfe]  ;;  %v1059_v42 = vpop.f32.mrb[5].mxu0  ;;  %v5984_v43 = vpop.f32.mrb[4].mxu1  ;;  %v2501_v50 = vld [vmem:[#allocation2 + $0x88] sm:$0xfe] }
 0x107   : > { %2493 = vrot.lane.b32.xlu1 %v2489_v41, %s6231_s22  ;;  %v6565_v44 = vpop.f32.mrb[6].mxu0  ;;  %1387 = vst.msk [vmem:[#allocation2 + $0xe8] sm:$0xff] %vm9993_vm2, %v5984_v43  ;;  %v1256_v45 = vpop.f32.mrb[5].mxu1 }
 0x108   : > { %v2502_v46 = vld [vmem:[#allocation2 + $0xa0] sm:$0xff]  ;;  %v6568_v47 = vpop.f32.mrb[7].mxu0  ;;  %1381 = vst.msk [vmem:[#allocation2 + $0xb8] sm:$0xff] %vm9993_vm2, %v1256_v45  ;;  %v5985_v48 = vpop.f32.mrb[6].mxu1  ;;  %v1698_v51 = vld [vmem:[#allocation2 + $0x68] sm:$0x80] }
 0x109   : > { %2569 = vrot.lane.b32.xlu0 %v2502_v46, %s6230_s21  ;;  %1390 = vst.msk [vmem:[#allocation2 + $0x100] sm:$0xff] %vm9993_vm2, %v5985_v48  ;;  %v1259_v49 = vpop.f32.mrb[7].mxu1 }
 0x10a   : > { %1384 = vst.msk [vmem:[#allocation2 + $0xd0] sm:$0xff] %vm9993_vm2, %v1259_v49 }
 0x10b   : > { %2160 = vrot.lane.b32.xlu1 %v1049_v33, %s6231_s22 }
 0x10d   : > { %1764 = vrot.lane.b32.xlu0 %v1698_v51, %s6230_s21  ;;  %v6576_v52 = vpop.f32.mrb[8].mxu0 }
 0x10e   : > { %v1069_v53 = vpop.f32.mrb[9].mxu0  ;;  %v5988_v54 = vpop.f32.mrb[8].mxu1  ;;  %v2505_v1 = vld [vmem:[#allocation2 + $0xe8] sm:$0xff] }
 0x10f   : > { %2567 = vrot.lane.b32.xlu1 %v2501_v50, %s6230_s21  ;;  %v6579_v55 = vpop.f32.mrb[10].mxu0  ;;  %1399 = vst.msk [vmem:[#allocation2 + $0x148] sm:$0xff] %vm9993_vm2, %v5988_v54  ;;  %v1272_v56 = vpop.f32.mrb[9].mxu1  ;;  %v2503_v7 = vld [vmem:[#allocation2 + $0xb8] sm:$0xff] }
 0x110   : > { %v6582_v57 = vpop.f32.mrb[11].mxu0  ;;  %1393 = vst.msk [vmem:[#allocation2 + $0x118] sm:$0xff] %vm9993_vm2, %v1272_v56  ;;  %v5989_v58 = vpop.f32.mrb[10].mxu1  ;;  %v2506_v24 = vld [vmem:[#allocation2 + $0x100] sm:$0xff] }
 0x111   : > { %2164 = vrot.lane.b32.xlu0 %v1059_v42, %s6231_s22  ;;  %1402 = vst.msk [vmem:[#allocation2 + $0x160] sm:$0xff] %vm9993_vm2, %v5989_v58  ;;  %v1275_v59 = vpop.f32.mrb[11].mxu1  ;;  %v2504_v26 = vld [vmem:[#allocation2 + $0xd0] sm:$0xff] }
 0x112   : > { %1396 = vst.msk [vmem:[#allocation2 + $0x130] sm:$0xff] %vm9993_vm2, %v1275_v59 }
 0x113   : > { %1570 = vrot.lane.b32.xlu1 %v6557_v35, %s6231_s22 }
 0x115   : > { %1766 = vrot.lane.b32.xlu0 %v1059_v42, %s6230_s21  ;;  %v6591_v60 = vpop.f32.mrb[12].mxu0 }
 0x116   : > { %v6593_v61 = vpop.f32.mrb[13].mxu0  ;;  %v5992_v62 = vpop.f32.mrb[12].mxu1  ;;  %v2509_v34 = vld [vmem:[#allocation2 + $0x148] sm:$0xff] }
 0x117   : > { %1572 = vrot.lane.b32.xlu1 %v6562_v40, %s6231_s22  ;;  %v6597_v63 = vpop.f32.mrb[14].mxu0  ;;  %1411 = vst.msk [vmem:[#allocation2 + $0x1a8] sm:$0xff] %vm9993_vm2, %v5992_v62  ;;  %v1288_v0 = vpop.f32.mrb[13].mxu1  ;;  %v2507_v46 = vld [vmem:[#allocation2 + $0x118] sm:$0xff] }
 0x118   : > { %v6600_v2 = vpop.f32.mrb[15].mxu0  ;;  %1405 = vst.msk [vmem:[#allocation2 + $0x178] sm:$0xff] %vm9993_vm2, %v1288_v0  ;;  %v5993_v4 = vpop.f32.mrb[14].mxu1  ;;  %v2510_v51 = vld [vmem:[#allocation2 + $0x160] sm:$0xff] }
 0x119   : > { %2166 = vrot.lane.b32.xlu0 %v6568_v47, %s6231_s22  ;;  %1414 = vst.msk [vmem:[#allocation2 + $0x1c0] sm:$0xff] %vm9993_vm2, %v5993_v4  ;;  %v1291_v5 = vpop.f32.mrb[15].mxu1  ;;  %v2508_v54 = vld [vmem:[#allocation2 + $0x130] sm:$0xff] }
 0x11a   : > { %1408 = vst.msk [vmem:[#allocation2 + $0x190] sm:$0xff] %vm9993_vm2, %v1291_v5 }
 0x11b   : > { %2575 = vrot.lane.b32.xlu1 %v2505_v1, %s6230_s21 }
 0x11d   : > { %2168 = vrot.lane.b32.xlu0 %v1069_v53, %s6231_s22  ;;  %v6609_v6 = vpop.f32.mrb[16].mxu0 }
 0x11e   : > { %v6611_v8 = vpop.f32.mrb[17].mxu0  ;;  %v5996_v9 = vpop.f32.mrb[16].mxu1  ;;  %v2513_v58 = vld [vmem:[#allocation2 + $0x1a8] sm:$0xff] }
 0x11f   : > { %2571 = vrot.lane.b32.xlu1 %v2503_v7, %s6230_s21  ;;  %v6614_v10 = vpop.f32.mrb[18].mxu0  ;;  %1423 = vst.msk [vmem:[#allocation2 + $0x208] sm:$0xff] %vm9993_vm2, %v5996_v9  ;;  %v1304_v11 = vpop.f32.mrb[17].mxu1  ;;  %v2511_v62 = vld [vmem:[#allocation2 + $0x178] sm:$0xff] }
 0x120   : > { %v6617_v12 = vpop.f32.mrb[19].mxu0  ;;  %1417 = vst.msk [vmem:[#allocation2 + $0x1d8] sm:$0xff] %vm9993_vm2, %v1304_v11  ;;  %v5997_v13 = vpop.f32.mrb[18].mxu1 }
 0x121   : > { %1770 = vrot.lane.b32.xlu0 %v1069_v53, %s6230_s21  ;;  %1426 = vst.msk [vmem:[#allocation2 + $0x220] sm:$0xff] %vm9993_vm2, %v5997_v13  ;;  %v1307_v14 = vpop.f32.mrb[19].mxu1  ;;  %v6739_v11 = vpop.permute.xlu0 %2627  ;;  %v2514_v13 = vld [vmem:[#allocation2 + $0x1c0] sm:$0xff] }
 0x122   : > { %1420 = vst.msk [vmem:[#allocation2 + $0x1f0] sm:$0xff] %vm9993_vm2, %v1307_v14  ;;  %10070 = vst [vmem:[#allocation10_spill] sm:$0xff] %v6739_v11 }
 0x123   : > { %1574 = vrot.lane.b32.xlu1 %v6565_v44, %s6231_s22 }
 0x125   : > { %1578 = vrot.lane.b32.xlu0 %v6579_v55, %s6231_s22  ;;  %v6627_v15 = vpop.f32.mrb[20].mxu0 }
 0x126   : > { %v6629_v16 = vpop.f32.mrb[21].mxu0  ;;  %v6000_v17 = vpop.f32.mrb[20].mxu1 }
 0x127   : > { %1768 = vrot.lane.b32.xlu1 %v6568_v47, %s6230_s21  ;;  %v6633_v18 = vpop.f32.mrb[22].mxu0  ;;  %1435 = vst.msk [vmem:[#allocation2 + $0x268] sm:$0xff] %vm9993_vm2, %v6000_v17  ;;  %v1320_v19 = vpop.f32.mrb[21].mxu1 }
 0x128   : > { %v6636_v20 = vpop.f32.mrb[23].mxu0  ;;  %1429 = vst.msk [vmem:[#allocation2 + $0x238] sm:$0xff] %vm9993_vm2, %v1320_v19  ;;  %v6001_v21 = vpop.f32.mrb[22].mxu1 }
 0x129   : > { %2170 = vrot.lane.b32.xlu0 %v6582_v57, %s6231_s22  ;;  %1438 = vst.msk [vmem:[#allocation2 + $0x280] sm:$0xff] %vm9993_vm2, %v6001_v21  ;;  %v1323_v23 = vpop.f32.mrb[23].mxu1  ;;  %v6751_v19 = vpop.permute.xlu0 %2629 }
 0x12a   : > { %1432 = vst.msk [vmem:[#allocation2 + $0x250] sm:$0xff] %vm9993_vm2, %v1323_v23  ;;  %10071 = vst [vmem:[#allocation11_spill] sm:$0xff] %v6751_v19  ;;  %v2517_v23 = vld [vmem:[#allocation2 + $0x208] sm:$0xff] }
 0x12b   : > { %2577 = vrot.lane.b32.xlu1 %v2506_v24, %s6230_s21 }
 0x12d   : > { %1580 = vrot.lane.b32.xlu0 %v6591_v60, %s6231_s22  ;;  %v6646_v25 = vpop.f32.mrb[24].mxu0 }
 0x12e   : > { %10066 = vst [vmem:[#allocation6_spill] sm:$0xff] %v6646_v25  ;;  %v6648_v27 = vpop.f32.mrb[25].mxu0  ;;  %v6004_v28 = vpop.f32.mrb[24].mxu1 }
 0x12f   : > { %2573 = vrot.lane.b32.xlu1 %v2504_v26, %s6230_s21  ;;  %v6651_v29 = vpop.f32.mrb[26].mxu0  ;;  %1447 = vst.msk [vmem:[#allocation2 + $0x2c8] sm:$0xff] %vm9993_vm2, %v6004_v28  ;;  %v1336_v30 = vpop.f32.mrb[25].mxu1 }
 0x130   : > { %10067 = vst [vmem:[#allocation7_spill] sm:$0xff] %v6651_v29  ;;  %v6654_v31 = vpop.f32.mrb[27].mxu0  ;;  %1441 = vst.msk [vmem:[#allocation2 + $0x298] sm:$0xff] %vm9993_vm2, %v1336_v30  ;;  %v6005_v32 = vpop.f32.mrb[26].mxu1  ;;  %v2522_v11 = vld [vmem:[#allocation2 + $0x280] sm:$0xff] }
 0x131   : > { %2172 = vrot.lane.b32.xlu0 %v6593_v61, %s6231_s22  ;;  %1450 = vst.msk [vmem:[#allocation2 + $0x2e0] sm:$0xff] %vm9993_vm2, %v6005_v32  ;;  %v1339_v33 = vpop.f32.mrb[27].mxu1  ;;  %v6763_v26 = vpop.permute.xlu0 %6103  ;;  %v2515_v32 = vld [vmem:[#allocation2 + $0x1d8] sm:$0xff] }
 0x132   : > { %1444 = vst.msk [vmem:[#allocation2 + $0x2b0] sm:$0xff] %vm9993_vm2, %v1339_v33  ;;  %10074 = vst [vmem:[#allocation14_spill] sm:$0xff] %v6763_v26 }
 0x133   : > { %1576 = vrot.lane.b32.xlu1 %v6576_v52, %s6231_s22 }
 0x135   : > { %1774 = vrot.lane.b32.xlu0 %v6593_v61, %s6230_s21  ;;  %v6665_v36 = vpop.f32.mrb[28].mxu0 }
 0x136   : > { %v6667_v37 = vpop.f32.mrb[29].mxu0  ;;  %v6008_v38 = vpop.f32.mrb[28].mxu1 }
 0x137   : > { %2583 = vrot.lane.b32.xlu1 %v2509_v34, %s6230_s21  ;;  %v6670_v39 = vpop.f32.mrb[30].mxu0  ;;  %1459 = vst.msk [vmem:[#allocation2 + $0x328] sm:$0xff] %vm9993_vm2, %v6008_v38  ;;  %v1352_v41 = vpop.f32.mrb[29].mxu1 }
 0x138   : > { %v6673_v42 = vpop.f32.mrb[31].mxu0  ;;  %1453 = vst.msk [vmem:[#allocation2 + $0x2f8] sm:$0xff] %vm9993_vm2, %v1352_v41  ;;  %v6009_v43 = vpop.f32.mrb[30].mxu1 }
 0x139   : > { %2174 = vrot.lane.b32.xlu0 %v6600_v2, %s6231_s22  ;;  %1462 = vst.msk [vmem:[#allocation2 + $0x340] sm:$0xff] %vm9993_vm2, %v6009_v43  ;;  %v1355_v45 = vpop.f32.mrb[31].mxu1  ;;  %v6775_v34 = vpop.permute.xlu0 %1828 }
 0x13a   : > { %1456 = vst.msk [vmem:[#allocation2 + $0x310] sm:$0xff] %vm9993_vm2, %v1355_v45  ;;  %10076 = vst [vmem:[#allocation16_spill] sm:$0xff] %v6775_v34 }
 0x13b   : > { %2579 = vrot.lane.b32.xlu1 %v2507_v46, %s6230_s21 }
 0x13d   : > { %2176 = vrot.lane.b32.xlu0 %v6611_v8, %s6231_s22  ;;  %v6683_v47 = vpop.f32.mrb[32].mxu0 }
 0x13e   : > { %v6685_v48 = vpop.f32.mrb[33].mxu0 }
 0x13f   : > { %1772 = vrot.lane.b32.xlu1 %v6582_v57, %s6230_s21  ;;  %v6689_v49 = vpop.f32.mrb[34].mxu0 }
 0x140   : > { %v6691_v50 = vpop.f32.mrb[35].mxu0  ;;  %v2530_v33 = vld [vmem:[#allocation2 + $0x340] sm:$0xff] }
 0x141   : > { %1778 = vrot.lane.b32.xlu0 %v6611_v8, %s6230_s21 }
 0x143   : > { %2585 = vrot.lane.b32.xlu1 %v2510_v51, %s6230_s21 }
 0x145   : > { %2178 = vrot.lane.b32.xlu0 %v6617_v12, %s6231_s22  ;;  %v6698_v53 = vpop.f32.mrb[36].mxu0 }
 0x146   : > { %v6700_v56 = vpop.f32.mrb[37].mxu0 }
 0x147   : > { %2581 = vrot.lane.b32.xlu1 %v2508_v54, %s6230_s21  ;;  %v6703_v57 = vpop.f32.mrb[38].mxu0 }
 0x148   : > { %10068 = vst [vmem:[#allocation8_spill] sm:$0xff] %v6703_v57  ;;  %v6705_v59 = vpop.f32.mrb[39].mxu0 }
 0x149   : > { %2180 = vrot.lane.b32.xlu0 %v6629_v16, %s6231_s22 }
 0x14b   : > { %2591 = vrot.lane.b32.xlu1 %v2513_v58, %s6230_s21  ;;  %v2518_v58 = vld [vmem:[#allocation2 + $0x220] sm:$0xff] }
 0x14d   : > { %1782 = vrot.lane.b32.xlu0 %v6629_v16, %s6230_s21  ;;  %v6712_v61 = vpop.f32.mrb[40].mxu0  ;;  %v2512_v16 = vld [vmem:[#allocation2 + $0x190] sm:$0xff] }
 0x14e   : > { %10069 = vst [vmem:[#allocation9_spill] sm:$0xff] %v6712_v61  ;;  %v6714_v0 = vpop.f32.mrb[41].mxu0 }
 0x14f   : > { %2587 = vrot.lane.b32.xlu1 %v2511_v62, %s6230_s21  ;;  %v6717_v1 = vpop.f32.mrb[42].mxu0 }
 0x150   : > { %v6719_v4 = vpop.f32.mrb[43].mxu0 }
 0x151   : > { %2182 = vrot.lane.b32.xlu0 %v6636_v20, %s6231_s22 }
 0x153   : > { %1582 = vrot.lane.b32.xlu1 %v6597_v63, %s6231_s22 }
 0x155   : > { %2184 = vrot.lane.b32.xlu0 %v6648_v27, %s6231_s22  ;;  %v6727_v5 = vpop.f32.mrb[44].mxu0 }
 0x156   : > { %v6729_v7 = vpop.f32.mrb[45].mxu0 }
 0x157   : > { %1776 = vrot.lane.b32.xlu1 %v6600_v2, %s6230_s21  ;;  %v6733_v8 = vpop.f32.mrb[46].mxu0 }
 0x158   : > { %v6735_v9 = vpop.f32.mrb[47].mxu0 }
 0x159   : > { %1786 = vrot.lane.b32.xlu0 %v6648_v27, %s6230_s21 }
 0x15b   : > { %2593 = vrot.lane.b32.xlu1 %v2514_v13, %s6230_s21 }
 0x15d   : > { %2186 = vrot.lane.b32.xlu0 %v6654_v31, %s6231_s22  ;;  %v6744_v14 = vpop.f32.mrb[48].mxu0 }
 0x15e   : > { %v6746_v17 = vpop.f32.mrb[49].mxu0 }
 0x15f   : > { %2589 = vrot.lane.b32.xlu1 %v2512_v16, %s6230_s21  ;;  %v6749_v2 = vpop.f32.mrb[50].mxu0 }
 0x160   : > { %v6753_v21 = vpop.f32.mrb[51].mxu0 }
 0x161   : > { %10072 = vst [vmem:[#allocation12_spill] sm:$0xff] %v6753_v21  ;;  %2188 = vrot.lane.b32.xlu0 %v6667_v37, %s6231_s22 }
 0x163   : > { %1584 = vrot.lane.b32.xlu1 %v6609_v6, %s6231_s22 }
 0x165   : > { %1790 = vrot.lane.b32.xlu0 %v6667_v37, %s6230_s21  ;;  %v6761_v24 = vpop.f32.mrb[52].mxu0  ;;  %v6777_v37 = vpop.permute.xlu1 %6098 }
 0x166   : > { %10073 = vst [vmem:[#allocation13_spill] sm:$0xff] %v6761_v24  ;;  %v6765_v27 = vpop.f32.mrb[53].mxu0  ;;  %10077 = vst [vmem:[#allocation17_spill] sm:$0xff] %v6777_v37  ;;  %v2523_v24 = vld [vmem:[#allocation2 + $0x298] sm:$0xff] }
 0x167   : > { %2599 = vrot.lane.b32.xlu1 %v2517_v23, %s6230_s21  ;;  %v6768_v28 = vpop.f32.mrb[54].mxu0 }
 0x168   : > { %10075 = vst [vmem:[#allocation15_spill] sm:$0xff] %v6768_v28  ;;  %v6770_v30 = vpop.f32.mrb[55].mxu0 }
 0x169   : > { %2190 = vrot.lane.b32.xlu0 %v6673_v42, %s6231_s22  ;;  %v6797_v51 = vpop.permute.xlu1 %2631 }
 0x16a   : > { %10082 = vst [vmem:[#allocation22_spill] sm:$0xff] %v6797_v51 }
 0x16b   : > { %2595 = vrot.lane.b32.xlu1 %v2515_v32, %s6230_s21  ;;  %v2516_v32 = vld [vmem:[#allocation2 + $0x1f0] sm:$0xff] }
 0x16d   : > { %v6779_v38 = vpop.f32.mrb[56].mxu0  ;;  %2625 = vrot.lane.b32.xlu0 %v2530_v33, %s6230_s21 }
 0x16e   : > { %10078 = vst [vmem:[#allocation18_spill] sm:$0xff] %v6779_v38  ;;  %v6782_v41 = vpop.f32.mrb[57].mxu0 }
 0x16f   : > { %1586 = vrot.lane.b32.xlu1 %v6614_v10, %s6231_s22  ;;  %v6786_v43 = vpop.f32.mrb[58].mxu0 }
 0x170   : > { %10079 = vst [vmem:[#allocation19_spill] sm:$0xff] %v6786_v43  ;;  %1454 = vst [vmem:[#allocation2 + $0x300] sm:$0xff] %v6786_v43  ;;  %v6789_v45 = vpop.f32.mrb[59].mxu0  ;;  %v6793_v46 = vpop.permute.xlu0 %1568 }
 0x171   : > { %10080 = vst [vmem:[#allocation20_spill] sm:$0xff] %v6789_v45  ;;  %2192 = vrot.lane.b32.xlu0 %v6685_v48, %s6231_s22  ;;  %10081 = vst [vmem:[#allocation21_spill] sm:$0xff] %v6793_v46  ;;  %v2519_v46 = vld [vmem:[#allocation2 + $0x238] sm:$0xff] }
 0x173   : > { %1780 = vrot.lane.b32.xlu1 %v6617_v12, %s6230_s21 }
 0x174   : > { %v6807_v13 = vpop.permute.xlu0 %2162 }
 0x175   : > { %v6799_v54 = vpop.f32.mrb[60].mxu0  ;;  %1794 = vrot.lane.b32.xlu0 %v6685_v48, %s6230_s21  ;;  %10085 = vst [vmem:[#allocation25_spill] sm:$0xff] %v6807_v13 }
 0x176   : > { %10083 = vst [vmem:[#allocation23_spill] sm:$0xff] %v6799_v54  ;;  %1457 = vst [vmem:[#allocation2 + $0x318] sm:$0xff] %v6799_v54  ;;  %v6804_v62 = vpop.f32.mrb[61].mxu0 }
 0x177   : > { %10084 = vst [vmem:[#allocation24_spill] sm:$0xff] %v6804_v62  ;;  %2601 = vrot.lane.b32.xlu1 %v2518_v58, %s6230_s21  ;;  %v1201_v16 = vpop.f32.mrb[62].mxu0 }
 0x178   : > { %1460 = vst [vmem:[#allocation2 + $0x330] sm:$0xff] %v1201_v16  ;;  %v6809_v23 = vpop.f32.mrb[63].mxu0  ;;  %v2521_v16 = vld [vmem:[#allocation2 + $0x268] sm:$0xff] }
 0x179   : > { %v6811_v12 = vpop.permute.xlu1 %2493  ;;  %2194 = vrot.lane.b32.xlu0 %v6691_v50, %s6231_s22 }
 0x17b   : > { %2597 = vrot.lane.b32.xlu1 %v2516_v32, %s6230_s21  ;;  %v2570_v48 = vpop.permute.xlu0 %2569 }
 0x17d   : > { %v6816_v33 = vpop.permute.xlu1 %2160  ;;  %2196 = vrot.lane.b32.xlu0 %v6700_v56, %s6231_s22 }
 0x17f   : > { %1588 = vrot.lane.b32.xlu1 %v6627_v15, %s6231_s22  ;;  %v6822_v58 = vpop.permute.xlu0 %1764 }
 0x180   : > { %10086 = vst [vmem:[#allocation26_spill] sm:$0xff] %v6822_v58 }
 0x181   : > { %v6824_v3 = vpop.permute.xlu1 %2567  ;;  %1798 = vrot.lane.b32.xlu0 %v6700_v56, %s6230_s21 }
 0x183   : > { %2607 = vrot.lane.b32.xlu1 %v2521_v16, %s6230_s21  ;;  %v2165_v32 = vpop.permute.xlu0 %2164 }
 0x184   : > { %v6850_v19 = vadd.f32 %v2165_v32, %v6553_v22 }
 0x185   : > { %v6829_v34 = vpop.permute.xlu1 %1570  ;;  %2198 = vrot.lane.b32.xlu0 %v6705_v59, %s6231_s22 }
 0x186   : > { %10087 = vst [vmem:[#allocation27_spill] sm:$0xff] %v6829_v34  ;;  %10089 = vst [vmem:[#allocation29_spill] sm:$0xff] %v6850_v19 }
 0x187   : > { %2603 = vrot.lane.b32.xlu1 %v2519_v46, %s6230_s21  ;;  %v6834_v51 = vpop.permute.xlu0 %1766  ;;  %v6847_v46 = vadd.f32 %v2570_v48, %v6807_v13  ;;  %v2520_v48 = vld [vmem:[#allocation2 + $0x250] sm:$0xff] }
 0x188   : > { %10088 = vst [vmem:[#allocation28_spill] sm:$0xff] %v6834_v51 }
 0x189   : > { %v6836_v58 = vpop.permute.xlu1 %1572  ;;  %2200 = vrot.lane.b32.xlu0 %v6714_v0, %s6231_s22 }
 0x18b   : > { %1590 = vrot.lane.b32.xlu1 %v6633_v18, %s6231_s22  ;;  %v2167_v56 = vpop.permute.xlu0 %2166 }
 0x18d   : > { %v2576_v16 = vpop.permute.xlu1 %2575  ;;  %1802 = vrot.lane.b32.xlu0 %v6714_v0, %s6230_s21 }
 0x18f   : > { %1784 = vrot.lane.b32.xlu1 %v6636_v20, %s6230_s21  ;;  %v2169_v34 = vpop.permute.xlu0 %2168  ;;  %v9936_v20 = vrot.slane %v6847_v46, 1 }
 0x191   : > { %v2572_v37 = vpop.permute.xlu1 %2571  ;;  %2202 = vrot.lane.b32.xlu0 %v6719_v4, %s6231_s22 }
 0x192   : > { %v2668_v26 = vadd.f32 %v2572_v37, %v6850_v19 }
 0x193   : > { %2609 = vrot.lane.b32.xlu1 %v2522_v11, %s6230_s21  ;;  %v6856_v0 = vpop.permute.xlu0 %1770  ;;  %v6870_v11 = vadd.f32 %v2169_v34, %v6562_v40  ;;  %v2525_v34 = vld [vmem:[#allocation2 + $0x2c8] sm:$0xff] }
 0x194   : > { %10090 = vst [vmem:[#allocation30_spill] sm:$0xff] %v6856_v0  ;;  %v2800_v54 = vrot.slane %v2668_v26, 1 }
 0x195   : > { %v1575_v43 = vpop.permute.xlu1 %1574  ;;  %2204 = vrot.lane.b32.xlu0 %v6729_v7, %s6231_s22  ;;  %v2670_v13 = vadd.f32 %v2576_v16, %v6870_v11 }
 0x196   : > { %v6864_v32 = vsel %vm9980_vm3, %v9936_v20, %v2800_v54 }
 0x197   : > { %10091 = vst [vmem:[#allocation31_spill] sm:$0xff] %v6864_v32  ;;  %2605 = vrot.lane.b32.xlu1 %v2520_v48, %s6230_s21  ;;  %v6867_v37 = vpop.permute.xlu0 %1578  ;;  %v2804_v38 = vrot.slane %v2670_v13, 1 }
 0x199   : > { %v6872_v19 = vpop.permute.xlu1 %1768  ;;  %1806 = vrot.lane.b32.xlu0 %v6729_v7, %s6230_s21  ;;  %v6889_v7 = vadd.f32 %v2167_v56, %v6557_v35 }
 0x19a   : > { %10092 = vst [vmem:[#allocation32_spill] sm:$0xff] %v6872_v19 }
 0x19b   : > { %1592 = vrot.lane.b32.xlu1 %v6646_v25, %s6231_s22  ;;  %v2171_v26 = vpop.permute.xlu0 %2170  ;;  %10094 = vst [vmem:[#allocation34_spill] sm:$0xff] %v6889_v7 }
 0x19c   : > { %v6880_v20 = vadd.f32 %v2171_v26, %v6565_v44 }
 0x19d   : > { %v2578_v48 = vpop.permute.xlu1 %2577  ;;  %2206 = vrot.lane.b32.xlu0 %v6735_v9, %s6231_s22 }
 0x19e   : > { %10093 = vst [vmem:[#allocation33_spill] sm:$0xff] %v6880_v20  ;;  %v2671_v32 = vadd.f32 %v2578_v48, %v6880_v20 }
 0x19f   : > { %2615 = vrot.lane.b32.xlu1 %v2525_v34, %s6230_s21  ;;  %v6886_v19 = vpop.permute.xlu0 %1580 }
 0x1a0   : > { %v2806_v28 = vrot.slane %v2671_v32, 1 }
 0x1a1   : > { %v2574_v16 = vpop.permute.xlu1 %2573  ;;  %2208 = vrot.lane.b32.xlu0 %v6746_v17, %s6231_s22 }
 0x1a2   : > { %v2669_v26 = vadd.f32 %v2574_v16, %v6889_v7  ;;  %v6895_v25 = vsel %vm9980_vm3, %v2804_v38, %v2806_v28  ;;  %v2526_v7 = vld [vmem:[#allocation2 + $0x2e0] sm:$0xff] }
 0x1a3   : > { %2611 = vrot.lane.b32.xlu1 %v2523_v24, %s6230_s21  ;;  %v2173_v48 = vpop.permute.xlu0 %2172 }
 0x1a4   : > { %v2802_v34 = vrot.slane %v2669_v26, 1  ;;  %v1668_v26 = vadd.f32 %v6836_v58, %v6553_v22  ;;  %v2524_v58 = vld [vmem:[#allocation2 + $0x2b0] sm:$0xff] }
 0x1a5   : > { %v1577_v20 = vpop.permute.xlu1 %1576  ;;  %1810 = vrot.lane.b32.xlu0 %v6746_v17, %s6230_s21 }
 0x1a6   : > { %v6901_v13 = vsel %vm9980_vm3, %v2800_v54, %v2802_v34  ;;  %v6904_v56 = vsel %vm9980_vm3, %v2802_v34, %v2804_v38  ;;  %v1670_v17 = vadd.f32 %v1577_v20, %v6562_v40  ;;  %v6916_v54 = vadd.f32 %v2173_v48, %v6576_v52 }
 0x1a7   : > { %1594 = vrot.lane.b32.xlu1 %v6651_v29, %s6231_s22  ;;  %v6908_v32 = vpop.permute.xlu0 %1774  ;;  %v6926_v40 = vadd.f32 %v6856_v0, %v1668_v26 }
 0x1a8   : > { %v6929_v20 = vadd.f32 %v6908_v32, %v1670_v17 }
 0x1a9   : > { %v2584_v16 = vpop.permute.xlu1 %2583  ;;  %2210 = vrot.lane.b32.xlu0 %v6753_v21, %s6231_s22  ;;  %10095 = vst [vmem:[#allocation35_spill] sm:$0xff] %v6926_v40 }
 0x1aa   : > { %v2003_v17 = vrot.slane %v6929_v20, 7 }
 0x1ab   : > { %1788 = vrot.lane.b32.xlu1 %v6654_v31, %s6230_s21  ;;  %v2175_v24 = vpop.permute.xlu0 %2174  ;;  %v1669_v31 = vadd.f32 %v1575_v43, %v6557_v35  ;;  %v9948_v43 = vrot.slane %v6926_v40, 7 }
 0x1ad   : > { %v2580_v38 = vpop.permute.xlu1 %2579  ;;  %2212 = vrot.lane.b32.xlu0 %v6765_v27, %s6231_s22 }
 0x1ae   : > { %v2672_v34 = vadd.f32 %v2580_v38, %v6916_v54 }
 0x1af   : > { %2617 = vrot.lane.b32.xlu1 %v2526_v7, %s6230_s21  ;;  %v2177_v29 = vpop.permute.xlu0 %2176 }
 0x1b0   : > { %v2808_v48 = vrot.slane %v2672_v34, 1  ;;  %v6945_v26 = vadd.f32 %v2177_v29, %v6591_v60  ;;  %v6964_v29 = vadd.f32 %v2175_v24, %v6579_v55 }
 0x1b1   : > { %v6931_v21 = vpop.permute.xlu1 %1772  ;;  %1814 = vrot.lane.b32.xlu0 %v6765_v27, %s6230_s21 }
 0x1b2   : > { %10096 = vst [vmem:[#allocation36_spill] sm:$0xff] %v6931_v21  ;;  %v1867_v22 = vadd.f32 %v6931_v21, %v1669_v31  ;;  %v6937_v7 = vsel %vm9980_vm3, %v2806_v28, %v2808_v48  ;;  %10099 = vst [vmem:[#allocation39_spill] sm:$0xff] %v6964_v29  ;;  %v6967_v20 = vadd.f32 %v2584_v16, %v6945_v26  ;;  %v2527_v16 = vld [vmem:[#allocation2 + $0x2f8] sm:$0xff] }
 0x1b3   : > { %2613 = vrot.lane.b32.xlu1 %v2524_v58, %s6230_s21  ;;  %v6940_v35 = vpop.permute.xlu0 %1778 }
 0x1b4   : > { %v2001_v38 = vrot.slane %v1867_v22, 7 }
 0x1b5   : > { %v6947_v34 = vpop.permute.xlu1 %2585  ;;  %2214 = vrot.lane.b32.xlu0 %v6770_v30, %s6231_s22 }
 0x1b6   : > { %v6952_v27 = vsel %vm9986_vm4, %v2001_v38, %v2003_v17  ;;  %v6957_v28 = vsel %vm9986_vm4, %v9948_v43, %v2001_v38  ;;  %v9951_v43 = vrot.slane %v6967_v20, 1 }
 0x1b7   : > { %10097 = vst [vmem:[#allocation37_spill] sm:$0xff] %v6952_v27  ;;  %10098 = vst [vmem:[#allocation38_spill] sm:$0xff] %v6957_v28  ;;  %1596 = vrot.lane.b32.xlu1 %v6665_v36, %s6231_s22  ;;  %v6961_v31 = vpop.permute.xlu0 %2178  ;;  %v2529_v27 = vld [vmem:[#allocation2 + $0x328] sm:$0xff] }
 0x1b9   : > { %v2582_v22 = vpop.permute.xlu1 %2581  ;;  %2216 = vrot.lane.b32.xlu0 %v6782_v41, %s6231_s22 }
 0x1ba   : > { %v2673_v58 = vadd.f32 %v2582_v22, %v6964_v29 }
 0x1bb   : > { %2623 = vrot.lane.b32.xlu1 %v2529_v27, %s6230_s21  ;;  %v6973_v38 = vpop.permute.xlu0 %2180  ;;  %v2485_v27 = vld [vmem:[#allocation2 + $0x18] sm:$0xfe] }
 0x1bc   : > { %v2810_v28 = vrot.slane %v2673_v58, 1 }
 0x1bd   : > { %v6976_v40 = vpop.permute.xlu1 %2591  ;;  %1818 = vrot.lane.b32.xlu0 %v6782_v41, %s6230_s21  ;;  %v2499_v41 = vadd.f32 %v6811_v12, %v2485_v27  ;;  %v1671_v27 = vadd.f32 %v6867_v37, %v6565_v44  ;;  %v7023_v37 = vld [vmem:[#allocation2 + $0x360] sm:$0xff] }
 0x1be   : > { %v6981_v24 = vsel %vm9980_vm3, %v2808_v48, %v2810_v28  ;;  %v6986_v22 = vsel %vm9980_vm3, %v2810_v28, %v9951_v43  ;;  %10101 = vst [vmem:[#allocation40_spill] sm:$0xff] %v7023_v37 }
 0x1bf   : > { %2619 = vrot.lane.b32.xlu1 %v2527_v16, %s6230_s21  ;;  %v6989_v29 = vpop.permute.xlu0 %1782  ;;  %v2666_v28 = vadd.f32 %v6824_v3, %v2499_v41  ;;  %v1672_v16 = vadd.f32 %v6886_v19, %v6576_v52  ;;  %v2528_v41 = vld [vmem:[#allocation2 + $0x310] sm:$0xff] }
 0x1c1   : > { %v6991_v58 = vpop.permute.xlu1 %2587  ;;  %2218 = vrot.lane.b32.xlu0 %v6789_v45, %s6231_s22  ;;  %v2797_v12 = vrot.slane %v2666_v28, 1  ;;  %v1870_v0 = vadd.f32 %v6940_v35, %v1672_v16  ;;  %v10100_v28 = vrot.slane %v6847_v46, 1  ;;  %v2256_v16 = vadd.f32 %v7023_v37, %v6816_v33 }
 0x1c3   : > { %1598 = vrot.lane.b32.xlu1 %v6670_v39, %s6231_s22  ;;  %v6998_v48 = vpop.permute.xlu0 %2182  ;;  %v2799_v44 = vsel %vm9980_vm3, %v2797_v12, %v10100_v28 }
 0x1c5   : > { %v1583_v43 = vpop.permute.xlu1 %1582  ;;  %2220 = vrot.lane.b32.xlu0 %v6804_v62, %s6231_s22 }
 0x1c7   : > { %1792 = vrot.lane.b32.xlu1 %v6673_v42, %s6230_s21  ;;  %v7007_v21 = vpop.permute.xlu0 %2184  ;;  %v2007_v42 = vrot.slane %v1870_v0, 7  ;;  %v2293_v0 = vadd.f32 %v2256_v16, %v6834_v51 }
 0x1c9   : > { %v7012_v45 = vpop.permute.xlu1 %1776  ;;  %1824 = vrot.lane.b32.xlu0 %v6809_v23, %s6230_s21 }
 0x1ca   : > { %v1869_v3 = vadd.f32 %v7012_v45, %v1671_v27 }
 0x1cb   : > { %2621 = vrot.lane.b32.xlu1 %v2528_v41, %s6230_s21  ;;  %v7018_v52 = vpop.permute.xlu0 %1786 }
 0x1cc   : > { %v2005_v19 = vrot.slane %v1869_v3, 7 }
 0x1cd   : > { %v7027_v62 = vpop.permute.xlu1 %2593  ;;  %2862 = vrot.lane.b32.xlu0 %v2799_v44, %s6230_s21 }
 0x1ce   : > { %v7031_v27 = vsel %vm9986_vm4, %v2005_v19, %v2007_v42  ;;  %v7034_v41 = vsel %vm9986_vm4, %v2003_v17, %v2005_v19 }
 0x1cf   : > { %10102 = vst [vmem:[#allocation41_spill] sm:$0xff] %v7031_v27  ;;  %10103 = vst [vmem:[#allocation42_spill] sm:$0xff] %v7034_v41  ;;  %1600 = vrot.lane.b32.xlu1 %v6683_v47, %s6231_s22  ;;  %v7039_v46 = vpop.permute.xlu0 %2186 }
 0x1d1   : > { %v7041_v12 = vpop.permute.xlu1 %2589  ;;  %2357 = vrot.lane.b32.xlu0 %v2293_v0, %s6232_s24 }
 0x1d3   : > { %1602 = vrot.lane.b32.xlu1 %v6689_v49, %s6231_s22  ;;  %v7046_v33 = vpop.permute.xlu0 %2188 }
 0x1d5   : > { %v1585_v3 = vpop.permute.xlu1 %1584  ;;  %2866 = vrot.lane.b32.xlu0 %v6901_v13, %s6230_s21  ;;  %v2297_v13 = vadd.f32 %v6870_v11, %v6908_v32 }
 0x1d7   : > { %1796 = vrot.lane.b32.xlu1 %v6691_v50, %s6230_s21  ;;  %v7052_v17 = vpop.permute.xlu0 %1790 }
 0x1d9   : > { %v2600_v19 = vpop.permute.xlu1 %2599  ;;  %2868 = vrot.lane.b32.xlu0 %v6904_v56, %s6230_s21  ;;  %v1674_v56 = vadd.f32 %v1585_v3, %v6591_v60 }
 0x1db   : > { %1604 = vrot.lane.b32.xlu1 %v6698_v53, %s6231_s22  ;;  %v7058_v28 = vpop.permute.xlu0 %2190  ;;  %v7078_v27 = vadd.f32 %v6989_v29, %v1674_v56 }
 0x1dd   : > { %v7060_v44 = vpop.permute.xlu1 %2595  ;;  %2870 = vrot.lane.b32.xlu0 %v6895_v25, %s6230_s21  ;;  %v1673_v25 = vadd.f32 %v1583_v43, %v6579_v55  ;;  %v9956_v55 = vrot.slane %v7078_v27, 7 }
 0x1df   : > { %1606 = vrot.lane.b32.xlu1 %v6703_v57, %s6231_s22  ;;  %v7068_v50 = vpop.permute.xlu0 %2625 }
 0x1e1   : > { %v7071_v16 = vpop.permute.xlu1 %1586  ;;  %2365 = vrot.lane.b32.xlu0 %v2297_v13, %s6232_s24 }
 0x1e3   : > { %1800 = vrot.lane.b32.xlu1 %v6705_v59, %s6230_s21  ;;  %v2193_v0 = vpop.permute.xlu0 %2192  ;;  %v7091_v59 = vadd.f32 %v6961_v31, %v6597_v63  ;;  %v2299_v31 = vadd.f32 %v6916_v54, %v6940_v35 }
 0x1e4   : > { %v7095_v3 = vadd.f32 %v2193_v0, %v6665_v36 }
 0x1e5   : > { %v7080_v11 = vpop.permute.xlu1 %1780  ;;  %2872 = vrot.lane.b32.xlu0 %v6937_v7, %s6230_s21 }
 0x1e6   : > { %v1871_v60 = vadd.f32 %v7080_v11, %v1673_v25  ;;  %v2675_v25 = vadd.f32 %v6947_v34, %v7091_v59 }
 0x1e7   : > { %1608 = vrot.lane.b32.xlu1 %v6712_v61, %s6231_s22  ;;  %v7087_v32 = vpop.permute.xlu0 %1794 }
 0x1e8   : > { %v2009_v43 = vrot.slane %v1871_v60, 7  ;;  %v2814_v35 = vrot.slane %v2675_v25, 1 }
 0x1e9   : > { %v2602_v13 = vpop.permute.xlu1 %2601  ;;  %2874 = vrot.lane.b32.xlu0 %v6981_v24, %s6230_s21  ;;  %v7114_v24 = vadd.f32 %v2600_v19, %v7095_v3  ;;  %v2266_v19 = vadd.f32 %v6973_v38, %v6609_v6  ;;  %v7146_v38 = vadd.f32 %v6998_v48, %v6614_v10 }
 0x1ea   : > { %v7102_v7 = vsel %vm9986_vm4, %v2009_v43, %v9956_v55  ;;  %v7105_v56 = vsel %vm9986_vm4, %v2007_v42, %v2009_v43 }
 0x1eb   : > { %10104 = vst [vmem:[#allocation43_spill] sm:$0xff] %v7102_v7  ;;  %10105 = vst [vmem:[#allocation44_spill] sm:$0xff] %v7105_v56  ;;  %1610 = vrot.lane.b32.xlu1 %v6717_v1, %s6231_s22  ;;  %v2195_v0 = vpop.permute.xlu0 %2194  ;;  %v9957_v43 = vrot.slane %v7114_v24, 1 }
 0x1ec   : > { %v7117_v60 = vadd.f32 %v2195_v0, %v6670_v39  ;;  %v10106_v0 = vrot.slane %v6967_v20, 1  ;;  %v2677_v20 = vadd.f32 %v7041_v12, %v7146_v38  ;;  %v2268_v12 = vadd.f32 %v7007_v21, %v6627_v15 }
 0x1ed   : > { %v7119_v55 = vpop.permute.xlu1 %2597  ;;  %2369 = vrot.lane.b32.xlu0 %v2299_v31, %s6232_s24 }
 0x1ee   : > { %v2683_v42 = vadd.f32 %v2602_v13, %v7117_v60  ;;  %v2676_v13 = vadd.f32 %v6991_v58, %v2266_v19  ;;  %v2815_v25 = vsel %vm9980_vm3, %v10106_v0, %v2814_v35 }
 0x1ef   : > { %1804 = vrot.lane.b32.xlu1 %v6719_v4, %s6230_s21  ;;  %v2197_v54 = vpop.permute.xlu0 %2196 }
 0x1f0   : > { %v2830_v34 = vrot.slane %v2683_v42, 1  ;;  %v2301_v42 = vadd.f32 %v6945_v26, %v6989_v29  ;;  %v2816_v56 = vrot.slane %v2676_v13, 1  ;;  %v7155_v58 = vadd.f32 %v2197_v54, %v6683_v47 }
 0x1f1   : > { %v1589_v7 = vpop.permute.xlu1 %1588  ;;  %2876 = vrot.lane.b32.xlu0 %v6986_v22, %s6230_s21  ;;  %v2818_v29 = vrot.slane %v2677_v20, 1 }
 0x1f2   : > { %v7133_v31 = vsel %vm9980_vm3, %v9957_v43, %v2830_v34  ;;  %v2817_v13 = vsel %vm9980_vm3, %v2814_v35, %v2816_v56 }
 0x1f3   : > { %1612 = vrot.lane.b32.xlu1 %v6727_v5, %s6231_s22  ;;  %v7137_v4 = vpop.permute.xlu0 %1798 }
 0x1f5   : > { %v2608_v22 = vpop.permute.xlu1 %2607  ;;  %2878 = vrot.lane.b32.xlu0 %v2815_v25, %s6230_s21  ;;  %v1676_v25 = vadd.f32 %v1589_v7, %v6609_v6  ;;  %v1675_v7 = vadd.f32 %v7071_v16, %v6597_v63 }
 0x1f7   : > { %1614 = vrot.lane.b32.xlu1 %v6733_v8, %s6231_s22  ;;  %v2199_v43 = vpop.permute.xlu0 %2198  ;;  %v7182_v35 = vadd.f32 %v7018_v52, %v1676_v25 }
 0x1f9   : > { %v2604_v0 = vpop.permute.xlu1 %2603  ;;  %2373 = vrot.lane.b32.xlu0 %v2301_v42, %s6232_s24 }
 0x1fa   : > { %v2684_v48 = vadd.f32 %v2604_v0, %v7155_v58  ;;  %v2303_v0 = vadd.f32 %v2266_v19, %v7018_v52  ;;  %v10109_v19 = vrot.slane %v7078_v27, 7 }
 0x1fb   : > { %1808 = vrot.lane.b32.xlu1 %v6735_v9, %s6230_s21  ;;  %v2201_v26 = vpop.permute.xlu0 %2200  ;;  %v7173_v9 = vadd.f32 %v7039_v46, %v6633_v18  ;;  %v2678_v46 = vadd.f32 %v6976_v40, %v2268_v12 }
 0x1fc   : > { %v2832_v41 = vrot.slane %v2684_v48, 1  ;;  %v7185_v21 = vadd.f32 %v2201_v26, %v6698_v53  ;;  %v9961_v48 = vrot.slane %v7182_v35, 7 }
 0x1fd   : > { %v7163_v51 = vpop.permute.xlu1 %1590  ;;  %2880 = vrot.lane.b32.xlu0 %v2817_v13, %s6230_s21  ;;  %v2679_v63 = vadd.f32 %v7027_v62, %v7173_v9  ;;  %v2820_v13 = vrot.slane %v2678_v46, 1 }
 0x1fe   : > { %v7169_v54 = vsel %vm9980_vm3, %v2830_v34, %v2832_v41  ;;  %v2819_v34 = vsel %vm9980_vm3, %v2816_v56, %v2818_v29  ;;  %v2686_v56 = vadd.f32 %v2608_v22, %v7185_v21 }
 0x1ff   : > { %1616 = vrot.lane.b32.xlu1 %v6744_v14, %s6231_s22  ;;  %v7177_v6 = vpop.permute.xlu0 %1802  ;;  %v2822_v22 = vrot.slane %v2679_v63, 1 }
 0x200   : > { %v2836_v46 = vrot.slane %v2686_v56, 1 }
 0x201   : > { %v7188_v42 = vpop.permute.xlu1 %1784  ;;  %2882 = vrot.lane.b32.xlu0 %v2819_v34, %s6230_s21  ;;  %v10111_v34 = vld [vmem:[#allocation12_spill] sm:$0xff] }
 0x202   : > { %v1873_v20 = vadd.f32 %v7188_v42, %v1675_v7 }
 0x203   : > { %1618 = vrot.lane.b32.xlu1 %v6749_v2, %s6231_s22  ;;  %v2203_v16 = vpop.permute.xlu0 %2202 }
 0x204   : > { %v2013_v26 = vrot.slane %v1873_v20, 7  ;;  %v7201_v25 = vadd.f32 %v2203_v16, %v6703_v57 }
 0x205   : > { %v2610_v40 = vpop.permute.xlu1 %2609  ;;  %2377 = vrot.lane.b32.xlu0 %v2303_v0, %s6232_s24  ;;  %v7218_v0 = vadd.f32 %v2199_v43, %v6689_v49 }
 0x206   : > { %10107 = vst [vmem:[#allocation45_spill] sm:$0xff] %v7201_v25  ;;  %v2687_v52 = vadd.f32 %v2610_v40, %v7201_v25  ;;  %v7208_v62 = vsel %vm9986_vm4, %v2013_v26, %v9961_v48  ;;  %v7213_v7 = vsel %vm9986_vm4, %v10109_v19, %v2013_v26  ;;  %v2821_v40 = vsel %vm9980_vm3, %v2818_v29, %v2820_v13  ;;  %v10113_v48 = vld [vmem:[#allocation6_spill] sm:$0xff]  ;;  %v10114_v19 = vld [vmem:[#allocation13_spill] sm:$0xff] }
 0x207   : > { %10108 = vst [vmem:[#allocation46_spill] sm:$0xff] %v7208_v62  ;;  %10110 = vst [vmem:[#allocation47_spill] sm:$0xff] %v7213_v7  ;;  %1812 = vrot.lane.b32.xlu1 %v10111_v34, %s6230_s21  ;;  %v2205_v20 = vpop.permute.xlu0 %2204  ;;  %v2270_v27 = vadd.f32 %v7046_v33, %v10113_v48  ;;  %v2823_v29 = vsel %vm9980_vm3, %v2820_v13, %v2822_v22  ;;  %v2305_v7 = vadd.f32 %v2268_v12, %v7052_v17 }
 0x208   : > { %10112 = vst [vmem:[#allocation12_spill] sm:$0xff] %v7218_v0  ;;  %v2838_v16 = vrot.slane %v2687_v52, 1 }
 0x209   : > { %v2606_v37 = vpop.permute.xlu1 %2605  ;;  %2884 = vrot.lane.b32.xlu0 %v2821_v40, %s6230_s21  ;;  %v2680_v56 = vadd.f32 %v7060_v44, %v2270_v27  ;;  %v10115_v40 = vld [vmem:[#allocation7_spill] sm:$0xff] }
 0x20a   : > { %v2685_v26 = vadd.f32 %v2606_v37, %v7218_v0  ;;  %v7226_v63 = vsel %vm9980_vm3, %v2836_v46, %v2838_v16  ;;  %v7237_v33 = vadd.f32 %v7058_v28, %v10115_v40  ;;  %v10116_v44 = vld [vmem:[#allocation15_spill] sm:$0xff] }
 0x20b   : > { %1620 = vrot.lane.b32.xlu1 %v10114_v19, %s6231_s22  ;;  %v7230_v43 = vpop.permute.xlu0 %1806  ;;  %v2824_v13 = vrot.slane %v2680_v56, 1 }
 0x20c   : > { %v2834_v52 = vrot.slane %v2685_v26, 1 }
 0x20d   : > { %v1593_v34 = vpop.permute.xlu1 %1592  ;;  %2886 = vrot.lane.b32.xlu0 %v2823_v29, %s6230_s21  ;;  %v2681_v29 = vadd.f32 %v7119_v55, %v7237_v33  ;;  %v2825_v12 = vsel %vm9980_vm3, %v2822_v22, %v2824_v13  ;;  %v10117_v55 = vld [vmem:[#allocation18_spill] sm:$0xff] }
 0x20e   : > { %v7240_v37 = vsel %vm9980_vm3, %v2832_v41, %v2834_v52  ;;  %v7243_v62 = vsel %vm9980_vm3, %v2834_v52, %v2836_v46  ;;  %v7254_v46 = vadd.f32 %v2205_v20, %v6712_v61  ;;  %v2307_v20 = vadd.f32 %v2270_v27, %v7087_v32  ;;  %v10119_v27 = vld [vmem:[#allocation20_spill] sm:$0xff] }
 0x20f   : > { %1622 = vrot.lane.b32.xlu1 %v10116_v44, %s6231_s22  ;;  %v2207_v26 = vpop.permute.xlu0 %2206  ;;  %v2826_v28 = vrot.slane %v2681_v29, 1  ;;  %v1677_v61 = vadd.f32 %v7163_v51, %v6614_v10 }
 0x211   : > { %v2616_v25 = vpop.permute.xlu1 %2615  ;;  %2381 = vrot.lane.b32.xlu0 %v2305_v7, %s6232_s24  ;;  %v1678_v7 = vadd.f32 %v1593_v34, %v6627_v15  ;;  %v2827_v29 = vsel %vm9980_vm3, %v2824_v13, %v2826_v28 }
 0x213   : > { %1816 = vrot.lane.b32.xlu1 %v6770_v30, %s6230_s21  ;;  %v2209_v41 = vpop.permute.xlu0 %2208  ;;  %v7277_v15 = vadd.f32 %v7052_v17, %v1678_v7 }
 0x214   : > { %v7280_v34 = vadd.f32 %v2209_v41, %v6727_v5 }
 0x215   : > { %v2612_v52 = vpop.permute.xlu1 %2611  ;;  %2888 = vrot.lane.b32.xlu0 %v2825_v12, %s6230_s21  ;;  %v10118_v12 = vld [vmem:[#allocation19_spill] sm:$0xff]  ;;  %v9966_v51 = vrot.slane %v7277_v15, 7 }
 0x216   : > { %v2688_v56 = vadd.f32 %v2612_v52, %v7254_v46  ;;  %v2690_v17 = vadd.f32 %v2616_v25, %v7280_v34  ;;  %v10124_v25 = vld [vmem:[#allocation23_spill] sm:$0xff] }
 0x217   : > { %1624 = vrot.lane.b32.xlu1 %v10117_v55, %s6231_s22  ;;  %v7261_v57 = vpop.permute.xlu0 %1810 }
 0x218   : > { %v2840_v30 = vrot.slane %v2688_v56, 1 }
 0x219   : > { %v7265_v0 = vpop.permute.xlu1 %1594  ;;  %2890 = vrot.lane.b32.xlu0 %v2827_v29, %s6230_s21  ;;  %v10120_v29 = vrot.slane %v7114_v24, 1  ;;  %v10122_v24 = vrot.slane %v7182_v35, 7 }
 0x21a   : > { %v7269_v22 = vsel %vm9980_vm3, %v2838_v16, %v2840_v30 }
 0x21b   : > { %1626 = vrot.lane.b32.xlu1 %v10118_v12, %s6231_s22  ;;  %v2211_v52 = vpop.permute.xlu0 %2210  ;;  %v2829_v10 = vsel %vm9980_vm3, %v2826_v28, %v10120_v29 }
 0x21c   : > { %v7294_v7 = vadd.f32 %v2211_v52, %v6733_v8 }
 0x21d   : > { %v7282_v13 = vpop.permute.xlu1 %1788  ;;  %2385 = vrot.lane.b32.xlu0 %v2307_v20, %s6232_s24 }
 0x21e   : > { %v1875_v16 = vadd.f32 %v7282_v13, %v1677_v61 }
 0x21f   : > { %1820 = vrot.lane.b32.xlu1 %v10119_v27, %s6230_s21  ;;  %v2213_v56 = vpop.permute.xlu0 %2212  ;;  %v2844_v27 = vrot.slane %v2690_v17, 1  ;;  %v1532_v17 = vld [vmem:[#allocation2 + $0x330] sm:$0x7f] }
 0x220   : > { %v2017_v41 = vrot.slane %v1875_v16, 7  ;;  %v7313_v16 = vadd.f32 %v2207_v26, %v6717_v1 }
 0x221   : > { %v2618_v12 = vpop.permute.xlu1 %2617  ;;  %2892 = vrot.lane.b32.xlu0 %v2829_v10, %s6230_s21 }
 0x222   : > { %v2691_v61 = vadd.f32 %v2618_v12, %v7294_v7  ;;  %v7301_v20 = vsel %vm9986_vm4, %v2017_v41, %v9966_v51  ;;  %v7306_v28 = vsel %vm9986_vm4, %v10122_v24, %v2017_v41  ;;  %v2309_v41 = vadd.f32 %v7095_v3, %v7137_v4  ;;  %v10125_v24 = vld [vmem:[#allocation24_spill] sm:$0xff] }
 0x223   : > { %10121 = vst [vmem:[#allocation6_spill] sm:$0xff] %v7301_v20  ;;  %10123 = vst [vmem:[#allocation7_spill] sm:$0xff] %v7306_v28  ;;  %1628 = vrot.lane.b32.xlu1 %v10124_v25, %s6231_s22  ;;  %v7310_v52 = vpop.permute.xlu0 %1814 }
 0x224   : > { %v2846_v29 = vrot.slane %v2691_v61, 1 }
 0x225   : > { %v2614_v10 = vpop.permute.xlu1 %2613  ;;  %2894 = vrot.lane.b32.xlu0 %v7133_v31, %s6230_s21 }
 0x226   : > { %v2689_v12 = vadd.f32 %v2614_v10, %v7313_v16  ;;  %v7319_v35 = vsel %vm9980_vm3, %v2844_v27, %v2846_v29 }
 0x227   : > { %1822 = vrot.lane.b32.xlu1 %v10125_v24, %s6230_s21  ;;  %v2215_v25 = vpop.permute.xlu0 %2214 }
 0x228   : > { %v2842_v26 = vrot.slane %v2689_v12, 1  ;;  %v7340_v12 = vadd.f32 %v2213_v56, %v6744_v14 }
 0x229   : > { %v1597_v51 = vpop.permute.xlu1 %1596  ;;  %2389 = vrot.lane.b32.xlu0 %v2309_v41, %s6232_s24  ;;  %v10127_v41 = vld [vmem:[#allocation25_spill] sm:$0xff] }
 0x22a   : > { %v7327_v61 = vsel %vm9980_vm3, %v2840_v30, %v2842_v26  ;;  %v7330_v31 = vsel %vm9980_vm3, %v2842_v26, %v2844_v27  ;;  %v10126_v30 = vld [vmem:[#allocation32_spill] sm:$0xff]  ;;  %v1680_v56 = vadd.f32 %v1597_v51, %v10113_v48  ;;  %v1679_v48 = vadd.f32 %v7265_v0, %v6633_v18 }
 0x22b   : > { %1630 = vrot.lane.b32.xlu1 %v1532_v17, %s6231_s22  ;;  %v2217_v10 = vpop.permute.xlu0 %2216  ;;  %v2294_v24 = vadd.f32 %v10127_v41, %v10126_v30 }
 0x22c   : > { %v7345_v27 = vadd.f32 %v2217_v10, %v10114_v19  ;;  %v1878_v51 = vadd.f32 %v7087_v32, %v1680_v56  ;;  %v7387_v56 = vadd.f32 %v2215_v25, %v6749_v2 }
 0x22d   : > { %v2624_v20 = vpop.permute.xlu1 %2623  ;;  %2896 = vrot.lane.b32.xlu0 %v7169_v54, %s6230_s21 }
 0x22e   : > { %10128 = vst [vmem:[#allocation15_spill] sm:$0xff] %v7345_v27  ;;  %v2694_v10 = vadd.f32 %v2624_v20, %v7345_v27  ;;  %v2023_v0 = vrot.slane %v1878_v51, 7  ;;  %v10137_v51 = vrot.slane %v7277_v15, 7 }
 0x22f   : > { %2222 = vrot.lane.b32.xlu1 %v6809_v23, %s6231_s22  ;;  %v7337_v3 = vpop.permute.xlu0 %1818  ;;  %v2311_v23 = vadd.f32 %v7155_v58, %v7177_v6  ;;  %v10130_v58 = vld [vmem:[#allocation31_spill] sm:$0xff] }
 0x231   : > { %v2620_v26 = vpop.permute.xlu1 %2619  ;;  %2898 = vrot.lane.b32.xlu0 %v7240_v37, %s6230_s21 }
 0x232   : > { %v2692_v54 = vadd.f32 %v2620_v26, %v7340_v12 }
 0x233   : > { %2359 = vrot.lane.b32.xlu1 %v2294_v24, %s6232_s24  ;;  %v2219_v17 = vpop.permute.xlu0 %2218 }
 0x234   : > { %v2848_v28 = vrot.slane %v2692_v54, 1  ;;  %v7355_v41 = vadd.f32 %v2219_v17, %v10116_v44  ;;  %v10132_v17 = vld [vmem:[#allocation29_spill] sm:$0xff] }
 0x235   : > { %v1599_v30 = vpop.permute.xlu1 %1598  ;;  %2393 = vrot.lane.b32.xlu0 %v2311_v23, %s6232_s24  ;;  %v10131_v23 = vld [vmem:[#allocation30_spill] sm:$0xff] }
 0x236   : > { %10129 = vst [vmem:[#allocation18_spill] sm:$0xff] %v7355_v41  ;;  %v2695_v37 = vadd.f32 %v7068_v50, %v7355_v41  ;;  %v7362_v26 = vsel %vm9980_vm3, %v2846_v29, %v2848_v28  ;;  %v2295_v27 = vadd.f32 %v10132_v17, %v10131_v23  ;;  %v2852_v50 = vrot.slane %v2694_v10, 1 }
 0x237   : > { %2864 = vrot.lane.b32.xlu1 %v10130_v58, %s6230_s21  ;;  %v2221_v24 = vpop.permute.xlu0 %2220  ;;  %v10133_v58 = vld [vmem:[#allocation10_spill] sm:$0xff] }
 0x238   : > { %v2854_v54 = vrot.slane %v2695_v37, 1  ;;  %v7370_v20 = vadd.f32 %v2221_v24, %v10117_v55  ;;  %v10135_v24 = vld [vmem:[#allocation34_spill] sm:$0xff] }
 0x239   : > { %v1793_v41 = vpop.permute.xlu1 %1792  ;;  %2900 = vrot.lane.b32.xlu0 %v7243_v62, %s6230_s21  ;;  %v10134_v62 = vld [vmem:[#allocation36_spill] sm:$0xff] }
 0x23a   : > { %v1877_v29 = vadd.f32 %v1793_v41, %v1679_v48  ;;  %v7378_v19 = vadd.f32 %v10133_v58, %v7370_v20  ;;  %v7384_v32 = vsel %vm9980_vm3, %v2852_v50, %v2854_v54  ;;  %v2296_v48 = vadd.f32 %v10135_v24, %v10134_v62  ;;  %v10138_v24 = vld [vmem:[#allocation33_spill] sm:$0xff] }
 0x23b   : > { %2361 = vrot.lane.b32.xlu1 %v2295_v27, %s6232_s24  ;;  %v7381_v18 = vpop.permute.xlu0 %1824  ;;  %v2313_v58 = vadd.f32 %v7185_v21, %v7230_v43 }
 0x23c   : > { %v2021_v10 = vrot.slane %v1877_v29, 7  ;;  %v2856_v37 = vrot.slane %v7378_v19, 1 }
 0x23d   : > { %v2622_v23 = vpop.permute.xlu1 %2621  ;;  %2902 = vrot.lane.b32.xlu0 %v7226_v63, %s6230_s21 }
 0x23e   : > { %v2693_v27 = vadd.f32 %v2622_v23, %v7387_v56  ;;  %v7396_v17 = vsel %vm9986_vm4, %v2021_v10, %v2023_v0  ;;  %v7401_v25 = vsel %vm9980_vm3, %v2854_v54, %v2856_v37  ;;  %v7406_v29 = vsel %vm9986_vm4, %v10137_v51, %v2021_v10 }
 0x23f   : > { %10136 = vst [vmem:[#allocation19_spill] sm:$0xff] %v7396_v17  ;;  %2363 = vrot.lane.b32.xlu1 %v2296_v48, %s6232_s24  ;;  %v7411_v63 = vpop.permute.xlu0 %2862  ;;  %v2298_v23 = vadd.f32 %v10138_v24, %v7012_v45  ;;  %v10139_v48 = vld [vmem:[#allocation39_spill] sm:$0xff] }
 0x240   : > { %v2850_v62 = vrot.slane %v2693_v27, 1  ;;  %v2300_v27 = vadd.f32 %v10139_v48, %v7080_v11  ;;  %v2315_v11 = vadd.f32 %v7254_v46, %v7261_v57 }
 0x241   : > { %v1601_v17 = vpop.permute.xlu1 %1600  ;;  %2397 = vrot.lane.b32.xlu0 %v2313_v58, %s6232_s24  ;;  %v2302_v58 = vadd.f32 %v7091_v59, %v7188_v42 }
 0x242   : > { %v2851_v54 = vsel %vm9980_vm3, %v2848_v28, %v2850_v62  ;;  %v7418_v15 = vsel %vm9980_vm3, %v2850_v62, %v2852_v50  ;;  %v1682_v21 = vadd.f32 %v1601_v17, %v6665_v36  ;;  %v1681_v28 = vadd.f32 %v1599_v30, %v10115_v40 }
 0x243   : > { %2367 = vrot.lane.b32.xlu1 %v2298_v23, %s6232_s24  ;;  %v7421_v10 = vpop.permute.xlu0 %2357  ;;  %v2306_v30 = vadd.f32 %v7173_v9, %v1793_v41  ;;  %v2317_v9 = vadd.f32 %v7280_v34, %v7310_v52 }
 0x244   : > { %v1880_v50 = vadd.f32 %v7137_v4, %v1682_v21  ;;  %v2304_v4 = vadd.f32 %v7146_v38, %v7282_v13 }
 0x245   : > { %v1603_v51 = vpop.permute.xlu1 %1602  ;;  %2904 = vrot.lane.b32.xlu0 %v7269_v22, %s6230_s21 }
 0x246   : > { %v2027_v17 = vrot.slane %v1880_v50, 7  ;;  %v1683_v13 = vadd.f32 %v1603_v51, %v6670_v39 }
 0x247   : > { %2371 = vrot.lane.b32.xlu1 %v2300_v27, %s6232_s24  ;;  %v7429_v45 = vpop.permute.xlu0 %2866 }
 0x249   : > { %v1797_v62 = vpop.permute.xlu1 %1796  ;;  %2906 = vrot.lane.b32.xlu0 %v7327_v61, %s6230_s21 }
 0x24a   : > { %v1879_v36 = vadd.f32 %v1797_v62, %v1681_v28  ;;  %v2308_v21 = vadd.f32 %v7237_v33, %v1797_v62 }
 0x24b   : > { %2375 = vrot.lane.b32.xlu1 %v2302_v58, %s6232_s24  ;;  %v7440_v22 = vpop.permute.xlu0 %2868 }
 0x24c   : > { %v2025_v24 = vrot.slane %v1879_v36, 7 }
 0x24d   : > { %v1605_v40 = vpop.permute.xlu1 %1604  ;;  %2401 = vrot.lane.b32.xlu0 %v2315_v11, %s6232_s24  ;;  %v10140_v11 = vld [vmem:[#allocation12_spill] sm:$0xff] }
 0x24e   : > { %v7446_v59 = vsel %vm9986_vm4, %v2025_v24, %v2027_v17  ;;  %v7449_v42 = vsel %vm9986_vm4, %v2023_v0, %v2025_v24  ;;  %v1684_v61 = vadd.f32 %v1605_v40, %v6683_v47  ;;  %v2319_v24 = vadd.f32 %v7340_v12, %v7337_v3 }
 0x24f   : > { %2379 = vrot.lane.b32.xlu1 %v2304_v4, %s6232_s24  ;;  %v7452_v46 = vpop.permute.xlu0 %2870 }
 0x250   : > { %v1882_v0 = vadd.f32 %v7177_v6, %v1684_v61  ;;  %v10141_v61 = vld [vmem:[#allocation9_spill] sm:$0xff] }
 0x251   : > { %v1607_v23 = vpop.permute.xlu1 %1606  ;;  %2908 = vrot.lane.b32.xlu0 %v7330_v31, %s6230_s21 }
 0x252   : > { %v2031_v41 = vrot.slane %v1882_v0, 7  ;;  %v1685_v50 = vadd.f32 %v1607_v23, %v6689_v49 }
 0x253   : > { %2383 = vrot.lane.b32.xlu1 %v2306_v30, %s6232_s24  ;;  %v7459_v38 = vpop.permute.xlu0 %2365 }
 0x255   : > { %v1801_v48 = vpop.permute.xlu1 %1800  ;;  %2910 = vrot.lane.b32.xlu0 %v7319_v35, %s6230_s21 }
 0x256   : > { %v1881_v47 = vadd.f32 %v1801_v48, %v1683_v13  ;;  %v2310_v39 = vadd.f32 %v7117_v60, %v1801_v48  ;;  %v10142_v13 = vld [vmem:[#allocation8_spill] sm:$0xff]  ;;  %v10143_v48 = vld [vmem:[#allocation14_spill] sm:$0xff] }
 0x257   : > { %2387 = vrot.lane.b32.xlu1 %v2308_v21, %s6232_s24  ;;  %v7469_v31 = vpop.permute.xlu0 %2872 }
 0x258   : > { %v2029_v27 = vrot.slane %v1881_v47, 7  ;;  %v6105_v47 = vunpack.i.l.bf16 %v10143_v48 }
 0x259   : > { %v1609_v51 = vpop.permute.xlu1 %1608  ;;  %2405 = vrot.lane.b32.xlu0 %v2317_v9, %s6232_s24 }
 0x25a   : > { %v7474_v6 = vsel %vm9986_vm4, %v2029_v27, %v2031_v41  ;;  %v7477_v33 = vsel %vm9986_vm4, %v2027_v17, %v2029_v27  ;;  %v1686_v35 = vadd.f32 %v1609_v51, %v6698_v53  ;;  %v10144_v27 = vld [vmem:[#allocation45_spill] sm:$0xff]  ;;  %v2323_v51 = vadd.f32 %v6105_v47, %v7370_v20 }
 0x25b   : > { %2391 = vrot.lane.b32.xlu1 %v2310_v39, %s6232_s24  ;;  %v7480_v34 = vpop.permute.xlu0 %2874 }
 0x25c   : > { %v1884_v58 = vadd.f32 %v7230_v43, %v1686_v35 }
 0x25d   : > { %v1611_v28 = vpop.permute.xlu1 %1610  ;;  %2912 = vrot.lane.b32.xlu0 %v7362_v26, %s6230_s21 }
 0x25e   : > { %v2035_v4 = vrot.slane %v1884_v58, 7  ;;  %v1687_v0 = vadd.f32 %v1611_v28, %v10142_v13 }
 0x25f   : > { %v7485_v60 = vpop.permute.xlu0 %2369 }
 0x261   : > { %v1805_v62 = vpop.permute.xlu1 %1804  ;;  %2914 = vrot.lane.b32.xlu0 %v2851_v54, %s6230_s21 }
 0x262   : > { %v1883_v36 = vadd.f32 %v1805_v62, %v1685_v50  ;;  %v2312_v17 = vadd.f32 %v10140_v11, %v1805_v62 }
 0x263   : > { %v7493_v53 = vpop.permute.xlu0 %2876 }
 0x264   : > { %v2033_v40 = vrot.slane %v1883_v36, 7  ;;  %2395 = vrot.lane.b32.xlu1 %v2312_v17, %s6232_s24 }
 0x265   : > { %v1613_v26 = vpop.permute.xlu1 %1612  ;;  %2409 = vrot.lane.b32.xlu0 %v2319_v24, %s6232_s24 }
 0x266   : > { %v7498_v49 = vsel %vm9986_vm4, %v2033_v40, %v2035_v4  ;;  %v7501_v43 = vsel %vm9986_vm4, %v2031_v41, %v2033_v40  ;;  %v1688_v30 = vadd.f32 %v1613_v26, %v10141_v61 }
 0x267   : > { %v7503_v54 = vpop.permute.xlu0 %2878 }
 0x268   : > { %v1886_v21 = vadd.f32 %v7261_v57, %v1688_v30 }
 0x269   : > { %v1615_v12 = vpop.permute.xlu1 %1614  ;;  %2916 = vrot.lane.b32.xlu0 %v7418_v15, %s6230_s21 }
 0x26a   : > { %v2039_v15 = vrot.slane %v1886_v21, 7  ;;  %v1689_v11 = vadd.f32 %v1615_v12, %v6717_v1 }
 0x26b   : > { %v7508_v23 = vpop.permute.xlu0 %2373 }
 0x26d   : > { %v1809_v9 = vpop.permute.xlu1 %1808  ;;  %2918 = vrot.lane.b32.xlu0 %v7384_v32, %s6230_s21 }
 0x26e   : > { %v1885_v41 = vadd.f32 %v1809_v9, %v1687_v0  ;;  %v2314_v39 = vadd.f32 %v10144_v27, %v1809_v9 }
 0x26f   : > { %v7517_v35 = vpop.permute.xlu0 %2880 }
 0x270   : > { %v2037_v50 = vrot.slane %v1885_v41, 7  ;;  %2399 = vrot.lane.b32.xlu1 %v2314_v39, %s6232_s24 }
 0x271   : > { %v1617_v28 = vpop.permute.xlu1 %1616  ;;  %2417 = vrot.lane.b32.xlu0 %v2323_v51, %s6232_s24 }
 0x272   : > { %v7522_v57 = vsel %vm9986_vm4, %v2037_v50, %v2039_v15  ;;  %v7525_v58 = vsel %vm9986_vm4, %v2035_v4, %v2037_v50  ;;  %v1690_v62 = vadd.f32 %v1617_v28, %v6727_v5 }
 0x273   : > { %v7527_v32 = vpop.permute.xlu0 %2882 }
 0x274   : > { %v1888_v17 = vadd.f32 %v7310_v52, %v1690_v62 }
 0x275   : > { %v1619_v20 = vpop.permute.xlu1 %1618 }
 0x276   : > { %v2043_v30 = vrot.slane %v1888_v17, 7 }
 0x277   : > { %v7530_v36 = vpop.permute.xlu0 %2377 }
 0x279   : > { %v1813_v24 = vpop.permute.xlu1 %1812 }
 0x27a   : > { %v1887_v40 = vadd.f32 %v1813_v24, %v1689_v11  ;;  %v2316_v26 = vadd.f32 %v7313_v16, %v1813_v24  ;;  %v1691_v16 = vadd.f32 %v1619_v20, %v6733_v8 }
 0x27b   : > { %v7535_v61 = vpop.permute.xlu0 %2884 }
 0x27c   : > { %v2041_v4 = vrot.slane %v1887_v40, 7  ;;  %2403 = vrot.lane.b32.xlu1 %v2316_v26, %s6232_s24 }
 0x27d   : > { %v1621_v13 = vpop.permute.xlu1 %1620 }
 0x27e   : > { %v7539_v5 = vsel %vm9986_vm4, %v2041_v4, %v2043_v30  ;;  %v7542_v0 = vsel %vm9986_vm4, %v2039_v15, %v2041_v4  ;;  %v1692_v1 = vadd.f32 %v1621_v13, %v6744_v14 }
 0x27f   : > { %v7545_v12 = vpop.permute.xlu0 %2886 }
 0x280   : > { %v1890_v21 = vadd.f32 %v7337_v3, %v1692_v1 }
 0x281   : > { %v1623_v52 = vpop.permute.xlu1 %1622 }
 0x282   : > { %v2047_v51 = vrot.slane %v1890_v21, 7  ;;  %v1693_v62 = vadd.f32 %v1623_v52, %v6749_v2  ;;  %v10145_v2 = vld [vmem:[#allocation13_spill] sm:$0xff] }
 0x283   : > { %v7550_v39 = vpop.permute.xlu0 %2381 }
 0x285   : > { %v1817_v9 = vpop.permute.xlu1 %1816 }
 0x286   : > { %v1889_v41 = vadd.f32 %v1817_v9, %v1691_v16  ;;  %v2318_v27 = vadd.f32 %v7294_v7, %v1817_v9 }
 0x287   : > { %v7559_v8 = vpop.permute.xlu0 %2888 }
 0x288   : > { %v2045_v50 = vrot.slane %v1889_v41, 7  ;;  %2407 = vrot.lane.b32.xlu1 %v2318_v27, %s6232_s24  ;;  %v10147_v41 = vld [vmem:[#allocation15_spill] sm:$0xff] }
 0x289   : > { %v1625_v15 = vpop.permute.xlu1 %1624 }
 0x28a   : > { %v7554_v14 = vsel %vm9986_vm4, %v2045_v50, %v2047_v51  ;;  %v7557_v28 = vsel %vm9986_vm4, %v2043_v30, %v2045_v50  ;;  %v1694_v1 = vadd.f32 %v1625_v15, %v10145_v2 }
 0x28b   : > { %v7564_v24 = vpop.permute.xlu0 %2890 }
 0x28d   : > { %v1627_v3 = vpop.permute.xlu1 %1626 }
 0x28e   : > { %v1695_v7 = vadd.f32 %v1627_v3, %v10116_v44 }
 0x28f   : > { %v7575_v44 = vpop.permute.xlu0 %2385 }
 0x290   : > { %v1893_v30 = vadd.f32 %v7381_v18, %v1695_v7  ;;  %v2486_v7 = vld [vmem:[#allocation2 + $0x318] sm:$0x1] }
 0x291   : > { %v1821_v20 = vpop.permute.xlu1 %1820 }
 0x292   : > { %v1891_v11 = vadd.f32 %v1821_v20, %v1693_v62  ;;  %v2320_v17 = vadd.f32 %v7387_v56, %v1821_v20  ;;  %v2053_v16 = vrot.slane %v1893_v30, 7  ;;  %v10152_v30 = vld [vmem:[#allocation17_spill] sm:$0xff] }
 0x293   : > { %v7595_v20 = vpop.permute.xlu0 %2892 }
 0x294   : > { %v2049_v40 = vrot.slane %v1891_v11, 7  ;;  %2411 = vrot.lane.b32.xlu1 %v2320_v17, %s6232_s24  ;;  %v6140_v17 = vld [vmem:[#allocation2 + $0x300] sm:$0xff] }
 0x295   : > { %v1629_v26 = vpop.permute.xlu1 %1628 }
 0x296   : > { %v1696_v4 = vadd.f32 %v1629_v26, %v10117_v55  ;;  %v7570_v13 = vsel %vm9986_vm4, %v2047_v51, %v2049_v40 }
 0x298   : > { %v7573_v52 = vadd.f32 %v6105_v47, %v1696_v4  ;;  %v10150_v47 = vld [vmem:[#allocation18_spill] sm:$0xff]  ;;  %v6158_v4 = vadd.high.f32.bf16 %v2486_v7, %v10152_v30  ;;  %v10156_v7 = vld [vmem:[#allocation40_spill] sm:$0xff] }
 0x299   : > { %v1823_v56 = vpop.permute.xlu1 %1822  ;;  %v2322_v15 = vadd.f32 %v10150_v47, %v7381_v18  ;;  %v1463_v47 = vld [vmem:[#allocation2] sm:$0x80] }
 0x29a   : > { %10146 = vst [vmem:[#allocation20_spill] sm:$0xff] %v7573_v52  ;;  %v9970_v21 = vrot.slane %v7573_v52, 7  ;;  %v1892_v9 = vadd.f32 %v1823_v56, %v1694_v1  ;;  %v2321_v27 = vadd.f32 %v10147_v41, %v1823_v56  ;;  %v10153_v1 = vld [vmem:[#allocation11_spill] sm:$0xff]  ;;  %v416_v56 = vlaneseq  ;;  %v10154_v41 = vld [vmem:[#allocation22_spill] sm:$0xff] }
 0x29c   : > { %v2051_v50 = vrot.slane %v1892_v9, 7  ;;  %2413 = vrot.lane.b32.xlu1 %v2321_v27, %s6232_s24  ;;  %v7583_v55 = vsel %vm9986_vm4, %v2053_v16, %v9970_v21  ;;  %v2698_v27 = vadd.f32 %v6158_v4, %v10154_v41  ;;  %v10159_v41 = vld [vmem:[#allocation32_spill] sm:$0xff] }
 0x29d   : > { %10148 = vst [vmem:[#allocation23_spill] sm:$0xff] %v7583_v55  ;;  %v7585_v51 = vpop.permute.xlu1 %1630 }
 0x29e   : > { %10149 = vst [vmem:[#allocation24_spill] sm:$0xff] %v7585_v51  ;;  %v7590_v3 = vsel %vm9986_vm4, %v2049_v40, %v2051_v50  ;;  %v7593_v62 = vsel %vm9986_vm4, %v2051_v50, %v2053_v16  ;;  %v7601_v40 = vpop.permute.xlu0 %2894 }
 0x29f   : > { %10151 = vst [vmem:[#allocation25_spill] sm:$0xff] %v7593_v62 }
 0x2a0   : > { %2415 = vrot.lane.b32.xlu1 %v2322_v15, %s6232_s24  ;;  %v7608_v15 = vshrl.u32 %v416_v56, 7 }
 0x2a1   : > { %v2223_v11 = vpop.permute.xlu1 %2222 }
 0x2a2   : > { %v2287_v26 = vadd.f32 %v6140_v17, %v2223_v11  ;;  %v10157_v17 = vld [vmem:[#allocation27_spill] sm:$0xff]  ;;  %v419_v19 = vadd.s32 16, %v7608_v15 }
 0x2a4   : > { %v6159_v2 = vadd.high.f32.bf16 %v2287_v26, %v10143_v48  ;;  %v2697_v18 = vadd.f32 %v10153_v1, %v2287_v26  ;;  %v10155_v48 = vld [vmem:[#allocation21_spill] sm:$0xff]  ;;  %v1667_v26 = vadd.f32 %v10156_v7, %v10157_v17  ;;  %v6160_v1 = vadd.low.f32.bf16 %v1463_v47, %v10152_v30 }
 0x2a5   : > { %v2360_v9 = vpop.permute.xlu1 %2359  ;;  %v1666_v11 = vadd.f32 %v10156_v7, %v10155_v48  ;;  %v418_v48 = vadd.s32 8, %v7608_v15  ;;  %v10160_v7 = vld [vmem:[#allocation26_spill] sm:$0xff]  ;;  %v467_v52 = vand.u32 15, %v419_v19  ;;  %v421_v19 = vadd.s32 32, %v7608_v15 }
 0x2a6   : > { %v2858_v16 = vrot.slane %v2697_v18, 1  ;;  %2419 = vrot.lane.b32.xlu1 %v6159_v2, %s6232_s24  ;;  %v7617_v2 = vpop.permute.xlu0 %2389  ;;  %v10158_v18 = vld [vmem:[#allocation28_spill] sm:$0xff]  ;;  %v1863_v17 = vadd.f32 %v6160_v1, %v10160_v7  ;;  %v10170_v1 = vld [vmem:[#allocation35_spill] sm:$0xff] }
 0x2a7   : > { %v1864_v56 = vadd.f32 %v10158_v18, %v1666_v11  ;;  %v420_v11 = vadd.s32 24, %v7608_v15  ;;  %vm7635_vm6 = vcmp.ne.s32.totalorder %v467_v52, 0  ;;  %v10171_v18 = vrot.slane %v10170_v1, 7 }
 0x2a8   : > { %v2859_v50 = vsel %vm9980_vm3, %v2856_v37, %v2858_v16  ;;  %v2860_v37 = vrot.slane %v2698_v27, 1  ;;  %v460_v27 = vand.u32 15, %v418_v48  ;;  %v1994_v47 = vrot.slane %v1863_v17, 7 }
 0x2a9   : > { %2922 = vrot.lane.b32.xlu0 %v2859_v50, %s6230_s21  ;;  %v2865_v4 = vpop.permute.xlu1 %2864  ;;  %v1865_v50 = vadd.f32 %v10159_v41, %v1667_v26  ;;  %v1995_v62 = vrot.slane %v1864_v56, 7  ;;  %v10161_v26 = vmov 0  ;;  %v474_v41 = vand.u32 15, %v420_v11 }
 0x2aa   : > { %2920 = vrot.lane.b32.xlu1 %v7401_v25, %s6230_s21  ;;  %v2861_v21 = vsel %vm9980_vm3, %v2858_v16, %v2860_v37  ;;  %v453_v25 = vand.u32 15, %v7608_v15  ;;  %v7628_v51 = vpop.permute.xlu0 %2896  ;;  %v10164_v16 = vmov 0  ;;  %vm7641_vm7 = vcmp.ne.s32.totalorder %v460_v27, 15 }
 0x2ab   : > { %v1997_v55 = vrot.slane %v1865_v50, 7  ;;  %v10165_v16 = vsel %vm7635_vm6, 4294967295, %v10164_v16  ;;  %v10167_v37 = vmov 0  ;;  %v2959_v7 = vsel %vm7641_vm7, %v2865_v4, 0.0 }
 0x2ac   : > { %vm7631_vm5 = vcmp.ne.s32.totalorder %v453_v25, 0  ;;  %10166 = vst [vmem:[#allocation30_spill] sm:$0xff] %v10165_v16  ;;  %v10168_v37 = vsel %vm7641_vm7, 4294967295, %v10167_v37  ;;  %v422_v11 = vadd.s32 40, %v7608_v15  ;;  %vm7659_vm8 = vcmp.ne.s32.totalorder %v474_v41, 15 }
 0x2ad   : > { %v2362_v30 = vpop.permute.xlu1 %2361  ;;  %v10162_v26 = vsel %vm7631_vm5, 4294967295, %v10161_v26  ;;  %10169 = vst [vmem:[#allocation29_spill] sm:$0xff] %v10168_v37  ;;  %v2000_v56 = vsel %vm9986_vm4, %v1997_v55, %v10171_v18  ;;  %v1998_v52 = vsel %vm9986_vm4, %v1995_v62, %v1997_v55  ;;  %v423_v4 = vadd.s32 48, %v7608_v15 }
 0x2ae   : > { %2924 = vrot.lane.b32.xlu1 %v2861_v21, %s6230_s21  ;;  %10163 = vst [vmem:[#allocation31_spill] sm:$0xff] %v10162_v26  ;;  %v1996_v21 = vsel %vm9986_vm4, %v1994_v47, %v1995_v62  ;;  %v7651_v48 = vpop.permute.xlu0 %2898  ;;  %v2093_v17 = vsel %vm7635_vm6, %v2000_v56, 0.0  ;;  %v481_v47 = vand.u32 15, %v421_v19  ;;  %v2454_v1 = vadd.f32 %v2360_v9, %v1998_v52  ;;  %v10175_v62 = vld [vmem:[#allocation38_spill] sm:$0xff]  ;;  %v7674_v9 = vld [vmem:[%s9920_s2] ss:$0 sm:$0xff] }
 0x2af   : > { %v2091_v50 = vsel %vm7631_vm5, %v1996_v21, 0.0  ;;  %v2455_v18 = vadd.f32 %v2362_v30, %v2093_v17  ;;  %v10172_v21 = vmov 0  ;;  %v10176_v56 = vmov 0  ;;  %v10179_v52 = vld [vmem:[#allocation37_spill] sm:$0xff] }
 0x2b0   : > { %v2453_v27 = vadd.f32 %v7421_v10, %v2091_v50  ;;  %v10173_v21 = vsel %vm7659_vm8, 4294967295, %v10172_v21  ;;  %v2991_v55 = vadd.f32 %v2959_v7, %v2454_v1  ;;  %vm7666_vm9 = vcmp.ne.s32.totalorder %v481_v47, 0 }
 0x2b1   : > { %v2364_v25 = vpop.permute.xlu1 %2363  ;;  %10174 = vst [vmem:[#allocation10_spill] sm:$0xff] %v10173_v21  ;;  %v10177_v56 = vsel %vm7666_vm9, 4294967295, %v10176_v56  ;;  %v2992_v10 = vadd.f32 %v7429_v45, %v2455_v18  ;;  %v2961_v30 = vsel %vm7659_vm8, %v7440_v22, 0.0  ;;  %v488_v19 = vand.u32 15, %v422_v11  ;;  %v10183_v11 = vld [vmem:[#allocation42_spill] sm:$0xff] }
 0x2b2   : > { %v2456_v26 = vadd.f32 %v2364_v25, %v10175_v62  ;;  %v2990_v16 = vadd.f32 %v7411_v63, %v2453_v27  ;;  %10178 = vst [vmem:[#allocation36_spill] sm:$0xff] %v10177_v56  ;;  %v7679_v41 = vpop.permute.xlu0 %2393  ;;  %v7682_v63 = vadd.f32 %v7674_v9, %v2991_v55  ;;  %v2095_v45 = vsel %vm7666_vm9, %v10179_v52, 0.0 }
 0x2b3   : > { %v495_v7 = vand.u32 15, %v423_v4  ;;  %v2457_v27 = vadd.f32 %v7459_v38, %v2095_v45  ;;  %v7692_v22 = vadd.f32 %v7674_v9, %v2992_v10  ;;  %vm7694_vm10 = vcmp.ne.s32.totalorder %v488_v19, 15 }
 0x2b4   : > { %v2993_v50 = vadd.f32 %v2961_v30, %v2456_v26  ;;  %v7688_v25 = vadd.f32 %v7674_v9, %v2990_v16  ;;  %v10180_v47 = vmov 0  ;;  %v424_v26 = vadd.s32 56, %v7608_v15 }
 0x2b5   : > { %v2368_v17 = vpop.permute.xlu1 %2367  ;;  %v10181_v47 = vsel %vm7694_vm10, 4294967295, %v10180_v47  ;;  %v3062_v1 = vsel %vm9993_vm2, %v7682_v63, 0.0  ;;  %vm7705_vm11 = vcmp.ne.s32.totalorder %v495_v7, 0  ;;  %v10184_v55 = vmov 0 }
 0x2b6   : > { %10182 = vst [vmem:[#allocation34_spill] sm:$0xff] %v10181_v47  ;;  %v7702_v18 = vadd.f32 %v7674_v9, %v2993_v50  ;;  %v2458_v16 = vadd.f32 %v2368_v17, %v10183_v11  ;;  %v10185_v55 = vsel %vm7705_vm11, 4294967295, %v10184_v55  ;;  %v7709_v38 = vpop.permute.xlu0 %2900  ;;  %v3061_v62 = vsel %vm9993_vm2, %v7688_v25, 0.0  ;;  %v10187_v17 = vld [vmem:[#allocation41_spill] sm:$0xff] }
 0x2b7   : > { %10186 = vst [vmem:[#allocation33_spill] sm:$0xff] %v10185_v55  ;;  %v2994_v4 = vadd.f32 %v7452_v46, %v2457_v27  ;;  %v425_v10 = vadd.s32 64, %v7608_v15  ;;  %v3064_v30 = vsel %vm9993_vm2, %v7692_v22, 0.0  ;;  %v2963_v19 = vsel %vm7694_vm10, %v7469_v31, 0.0 }
 0x2b8   : > { %v3063_v50 = vadd.f32 %v3062_v1, %v3061_v62  ;;  %v502_v52 = vand.u32 15, %v424_v26  ;;  %v3066_v45 = vsel %vm9993_vm2, %v7702_v18, 0.0  ;;  %v2995_v7 = vadd.f32 %v2963_v19, %v2458_v16  ;;  %v10191_v62 = vld [vmem:[#allocation44_spill] sm:$0xff] }
 0x2b9   : > { %v2097_v11 = vsel %vm7705_vm11, %v10187_v17, 0.0  ;;  %v2372_v27 = vpop.permute.xlu1 %2371  ;;  %v7726_v56 = vadd.f32 %v7674_v9, %v2994_v4  ;;  %v509_v37 = vand.u32 15, %v425_v10  ;;  %v10188_v26 = vmov 0 }
 0x2ba   : > { %v3065_v46 = vadd.f32 %v3064_v30, %v3063_v50  ;;  %v2459_v21 = vadd.f32 %v7485_v60, %v2097_v11  ;;  %v7729_v31 = vpop.permute.xlu0 %2902  ;;  %vm7731_vm12 = vcmp.ne.s32.totalorder %v502_v52, 15  ;;  %v426_v1 = vadd.s32 72, %v7608_v15  ;;  %v10195_v11 = vld [vmem:[#allocation43_spill] sm:$0xff] }
 0x2bb   : > { %v10189_v26 = vsel %vm7731_vm12, 4294967295, %v10188_v26  ;;  %v7737_v16 = vadd.f32 %v7674_v9, %v2995_v7  ;;  %v2460_v30 = vadd.f32 %v2372_v27, %v10191_v62  ;;  %v3068_v4 = vsel %vm9993_vm2, %v7726_v56, 0.0 }
 0x2bc   : > { %v3067_v47 = vadd.f32 %v3066_v45, %v3065_v46  ;;  %10190 = vst [vmem:[#allocation39_spill] sm:$0xff] %v10189_v26  ;;  %v2996_v60 = vadd.f32 %v7480_v34, %v2459_v21  ;;  %vm7743_vm13 = vcmp.ne.s32.totalorder %v509_v37, 0  ;;  %v10192_v10 = vmov 0 }
 0x2bd   : > { %v10193_v10 = vsel %vm7743_vm13, 4294967295, %v10192_v10  ;;  %v427_v19 = vadd.s32 80, %v7608_v15  ;;  %v2965_v50 = vsel %vm7731_vm12, %v7493_v53, 0.0  ;;  %v516_v45 = vand.u32 15, %v426_v1  ;;  %v2376_v21 = vpop.permute.xlu1 %2375 }
 0x2be   : > { %10194 = vst [vmem:[#allocation12_spill] sm:$0xff] %v10193_v10  ;;  %v3069_v52 = vadd.f32 %v3068_v4, %v3067_v47  ;;  %v3070_v7 = vsel %vm9993_vm2, %v7737_v16, 0.0  ;;  %v2997_v17 = vadd.f32 %v2965_v50, %v2460_v30  ;;  %v2099_v34 = vsel %vm7743_vm13, %v10195_v11, 0.0  ;;  %v7756_v37 = vpop.permute.xlu0 %2397  ;;  %v10199_v4 = vld [vmem:[#allocation47_spill] sm:$0xff] }
 0x2bf   : > { %v7759_v46 = vadd.f32 %v7674_v9, %v2996_v60  ;;  %v2461_v27 = vadd.f32 %v7508_v23, %v2099_v34  ;;  %v523_v62 = vand.u32 15, %v427_v19  ;;  %vm7762_vm14 = vcmp.ne.s32.totalorder %v516_v45, 15 }
 0x2c0   : > { %v3071_v53 = vadd.f32 %v3070_v7, %v3069_v52  ;;  %v10196_v47 = vmov 0  ;;  %v428_v1 = vadd.s32 88, %v7608_v15  ;;  %v7768_v30 = vadd.f32 %v7674_v9, %v2997_v17 }
 0x2c1   : > { %v10197_v47 = vsel %vm7762_vm14, 4294967295, %v10196_v47  ;;  %v2462_v50 = vadd.f32 %v2376_v21, %v10199_v4  ;;  %v3072_v11 = vsel %vm9993_vm2, %v7759_v46, 0.0  ;;  %v2998_v60 = vadd.f32 %v7503_v54, %v2461_v27  ;;  %v10203_v4 = vld [vmem:[#allocation46_spill] sm:$0xff]  ;;  %v2380_v27 = vpop.permute.xlu1 %2379 }
 0x2c2   : > { %10198 = vst [vmem:[#allocation9_spill] sm:$0xff] %v10197_v47  ;;  %vm7774_vm15 = vcmp.ne.s32.totalorder %v523_v62, 0  ;;  %v10200_v23 = vmov 0  ;;  %v429_v19 = vadd.s32 96, %v7608_v15  ;;  %v2967_v52 = vsel %vm7762_vm14, %v7517_v35, 0.0  ;;  %v7782_v7 = vpop.permute.xlu0 %2904 }
 0x2c3   : > { %v10201_v23 = vsel %vm7774_vm15, 4294967295, %v10200_v23  ;;  %v3073_v45 = vadd.f32 %v3072_v11, %v3071_v53  ;;  %v530_v17 = vand.u32 15, %v428_v1  ;;  %v3074_v34 = vsel %vm9993_vm2, %v7768_v30, 0.0  ;;  %v10207_v11 = vld [vmem:[#allocation7_spill] sm:$0xff] }
 0x2c4   : > { %10202 = vst [vmem:[#allocation8_spill] sm:$0xff] %v10201_v23  ;;  %v2999_v21 = vadd.f32 %v2967_v52, %v2462_v50  ;;  %v2101_v54 = vsel %vm7774_vm15, %v10203_v4, 0.0  ;;  %v7790_v62 = vadd.f32 %v7674_v9, %v2998_v60  ;;  %v537_v47 = vand.u32 15, %v429_v19 }
 0x2c5   : > { %v2463_v10 = vadd.f32 %v7530_v36, %v2101_v54  ;;  %v3075_v35 = vadd.f32 %v3074_v34, %v3073_v45  ;;  %vm7793_vm1 = vcmp.ne.s32.totalorder %v530_v17, 15  ;;  %v10204_v53 = vmov 0 }
 0x2c6   : > { %v10205_v53 = vsel %vm7793_vm1, 4294967295, %v10204_v53  ;;  %v430_v1 = vadd.s32 104, %v7608_v15  ;;  %v7799_v50 = vadd.f32 %v7674_v9, %v2999_v21  ;;  %v2464_v52 = vadd.f32 %v2380_v27, %v10207_v11  ;;  %v7802_v4 = vpop.permute.xlu0 %2906  ;;  %v10211_v11 = vld [vmem:[#allocation6_spill] sm:$0xff] }
 0x2c7   : > { %10206 = vst [vmem:[#allocation14_spill] sm:$0xff] %v10205_v53  ;;  %v3076_v60 = vsel %vm9993_vm2, %v7790_v62, 0.0  ;;  %v3000_v36 = vadd.f32 %v7527_v32, %v2463_v10  ;;  %vm7807_vm3 = vcmp.ne.s32.totalorder %v537_v47, 0  ;;  %v10208_v19 = vmov 0  ;;  %v2384_v10 = vpop.permute.xlu1 %2383 }
 0x2c8   : > { %v10209_v19 = vsel %vm7807_vm3, 4294967295, %v10208_v19  ;;  %v431_v45 = vadd.s32 112, %v7608_v15  ;;  %v2969_v17 = vsel %vm7793_vm1, %v7535_v61, 0.0  ;;  %v3077_v34 = vadd.f32 %v3076_v60, %v3075_v35 }
 0x2c9   : > { %10210 = vst [vmem:[#allocation45_spill] sm:$0xff] %v10209_v19  ;;  %v544_v21 = vand.u32 15, %v430_v1  ;;  %v3078_v54 = vsel %vm9993_vm2, %v7799_v50, 0.0  ;;  %v3001_v27 = vadd.f32 %v2969_v17, %v2464_v52  ;;  %v2103_v32 = vsel %vm7807_vm3, %v10211_v11, 0.0 }
 0x2ca   : > { %v7821_v47 = vadd.f32 %v7674_v9, %v3000_v36  ;;  %v2465_v23 = vadd.f32 %v7550_v39, %v2103_v32  ;;  %v551_v26 = vand.u32 15, %v431_v45  ;;  %v3079_v55 = vadd.f32 %v3078_v54, %v3077_v34  ;;  %v7824_v53 = vpop.permute.xlu0 %2401 }
 0x2cb   : > { %vm7826_vm0 = vcmp.ne.s32.totalorder %v544_v21, 15  ;;  %v10212_v61 = vmov 0  ;;  %v432_v35 = vadd.s32 120, %v7608_v15  ;;  %v7832_v1 = vadd.f32 %v7674_v9, %v3001_v27  ;;  %v10218_v27 = vld [vmem:[#allocation19_spill] sm:$0xff] }
 0x2cc   : > { %v10213_v61 = vsel %vm7826_vm0, 4294967295, %v10212_v61  ;;  %v2466_v52 = vadd.f32 %v2384_v10, %v7406_v29  ;;  %v3080_v60 = vsel %vm9993_vm2, %v7821_v47, 0.0  ;;  %v3002_v39 = vadd.f32 %v7545_v12, %v2465_v23  ;;  %v2388_v23 = vpop.permute.xlu1 %2387 }
 0x2cd   : > { %10214 = vst [vmem:[#allocation13_spill] sm:$0xff] %v10213_v61  ;;  %vm7838_vm4 = vcmp.ne.s32.totalorder %v551_v26, 0  ;;  %v10215_v36 = vmov 0  ;;  %v433_v45 = vadd.s32 128, %v7608_v15  ;;  %v2971_v17 = vsel %vm7826_vm0, %v7559_v8, 0.0 }
 0x2ce   : > { %v10216_v36 = vsel %vm7838_vm4, 4294967295, %v10215_v36  ;;  %v3081_v34 = vadd.f32 %v3080_v60, %v3079_v55  ;;  %v558_v21 = vand.u32 15, %v432_v35  ;;  %v3082_v29 = vsel %vm9993_vm2, %v7832_v1, 0.0  ;;  %v7851_v26 = vpop.permute.xlu0 %2908 }
 0x2cf   : > { %10217 = vst [vmem:[#allocation15_spill] sm:$0xff] %v10216_v36  ;;  %v3003_v54 = vadd.f32 %v2971_v17, %v2466_v52  ;;  %v2105_v12 = vsel %vm7838_vm4, %v10218_v27, 0.0  ;;  %v7854_v11 = vadd.f32 %v7674_v9, %v3002_v39  ;;  %v565_v10 = vand.u32 15, %v433_v45 }
 0x2d0   : > { %v2467_v32 = vadd.f32 %v7575_v44, %v2105_v12  ;;  %v3083_v8 = vadd.f32 %v3082_v29, %v3081_v34  ;;  %vm7857_vm0 = vcmp.ne.s32.totalorder %v558_v21, 15  ;;  %v10219_v55 = vmov 0  ;;  %v2392_v12 = vpop.permute.xlu1 %2391 }
 0x2d1   : > { %v10220_v55 = vsel %vm7857_vm0, 4294967295, %v10219_v55  ;;  %v434_v35 = vadd.s32 136, %v7608_v15  ;;  %v7863_v52 = vadd.f32 %v7674_v9, %v3003_v54  ;;  %v2468_v60 = vadd.f32 %v2388_v23, %v7449_v42 }
 0x2d2   : > { %10221 = vst [vmem:[#allocation18_spill] sm:$0xff] %v10220_v55  ;;  %v3084_v17 = vsel %vm9993_vm2, %v7854_v11, 0.0  ;;  %v3004_v39 = vadd.f32 %v7564_v24, %v2467_v32  ;;  %vm7869_vm4 = vcmp.ne.s32.totalorder %v565_v10, 0  ;;  %v10222_v44 = vmov 0  ;;  %v7877_v29 = vpop.permute.xlu0 %2910 }
 0x2d3   : > { %v10223_v44 = vsel %vm7869_vm4, 4294967295, %v10222_v44  ;;  %v435_v45 = vadd.s32 144, %v7608_v15  ;;  %v2973_v34 = vsel %vm7857_vm0, %v7595_v20, 0.0  ;;  %v3085_v21 = vadd.f32 %v3084_v17, %v3083_v8 }
 0x2d4   : > { %10224 = vst [vmem:[#allocation17_spill] sm:$0xff] %v10223_v44  ;;  %v572_v54 = vand.u32 15, %v434_v35  ;;  %v3086_v42 = vsel %vm9993_vm2, %v7863_v52, 0.0  ;;  %v3005_v27 = vadd.f32 %v2973_v34, %v2468_v60  ;;  %v2107_v24 = vsel %vm7869_vm4, %v7446_v59, 0.0 }
 0x2d5   : > { %v7885_v23 = vadd.f32 %v7674_v9, %v3004_v39  ;;  %v2469_v32 = vadd.f32 %v7617_v2, %v2107_v24  ;;  %v579_v10 = vand.u32 15, %v435_v45  ;;  %v436_v20 = vadd.s32 152, %v7608_v15 }
 0x2d6   : > { %v3087_v8 = vadd.f32 %v3086_v42, %v3085_v21  ;;  %vm7889_vm0 = vcmp.ne.s32.totalorder %v572_v54, 15  ;;  %v10225_v35 = vmov 0  ;;  %v437_v60 = vadd.s32 160, %v7608_v15  ;;  %v7898_v34 = vpop.permute.xlu0 %2405 }
 0x2d7   : > { %v10226_v35 = vsel %vm7889_vm0, 4294967295, %v10225_v35  ;;  %v7895_v17 = vadd.f32 %v7674_v9, %v3005_v27  ;;  %v2470_v59 = vadd.f32 %v2392_v12, %v7477_v33  ;;  %v3088_v2 = vsel %vm9993_vm2, %v7885_v23, 0.0  ;;  %v2396_v27 = vpop.permute.xlu1 %2395 }
 0x2d8   : > { %10227 = vst [vmem:[#allocation11_spill] sm:$0xff] %v10226_v35  ;;  %v3006_v39 = vadd.f32 %v7601_v40, %v2469_v32  ;;  %vm7903_vm4 = vcmp.ne.s32.totalorder %v579_v10, 0  ;;  %v10228_v45 = vmov 0  ;;  %v586_v21 = vand.u32 15, %v436_v20 }
 0x2d9   : > { %v10229_v45 = vsel %vm7903_vm4, 4294967295, %v10228_v45  ;;  %v2975_v54 = vsel %vm7889_vm0, %v7628_v51, 0.0  ;;  %v3089_v42 = vadd.f32 %v3088_v2, %v3087_v8  ;;  %v593_v24 = vand.u32 15, %v437_v60 }
 0x2da   : > { %10230 = vst [vmem:[#allocation22_spill] sm:$0xff] %v10229_v45  ;;  %v438_v33 = vadd.s32 168, %v7608_v15  ;;  %v3090_v12 = vsel %vm9993_vm2, %v7895_v17, 0.0  ;;  %v3007_v44 = vadd.f32 %v2975_v54, %v2470_v59  ;;  %v2109_v40 = vsel %vm7903_vm4, %v7474_v6, 0.0  ;;  %v7926_v2 = vpop.permute.xlu0 %2912 }
 0x2db   : > { %v439_v32 = vadd.s32 176, %v7608_v15  ;;  %v7918_v10 = vadd.f32 %v7674_v9, %v3006_v39  ;;  %v2471_v51 = vadd.f32 %v7679_v41, %v2109_v40  ;;  %vm7921_vm0 = vcmp.ne.s32.totalorder %v586_v21, 15 }
 0x2dc   : > { %v10231_v20 = vmov 0  ;;  %v2472_v8 = vadd.f32 %v2396_v27, %v7501_v43  ;;  %v3091_v60 = vadd.f32 %v3090_v12, %v3089_v42  ;;  %vm7928_vm2 = vcmp.ne.s32.totalorder %v593_v24, 0 }
 0x2dd   : > { %v10232_v20 = vsel %vm7921_vm0, 4294967295, %v10231_v20  ;;  %v10234_v59 = vmov 0  ;;  %v600_v6 = vand.u32 15, %v438_v33  ;;  %v7933_v54 = vadd.f32 %v7674_v9, %v3007_v44 }
 0x2de   : > { %10233 = vst [vmem:[#allocation21_spill] sm:$0xff] %v10232_v20  ;;  %v10235_v59 = vsel %vm7928_vm2, 4294967295, %v10234_v59  ;;  %v2977_v41 = vsel %vm7921_vm0, %v7709_v38, 0.0  ;;  %v440_v39 = vadd.s32 184, %v7608_v15  ;;  %vm10237_vm4 = vcmask 261120  }
 0x2df   : > { %10236 = vst [vmem:[#allocation40_spill] sm:$0xff] %v10235_v59  ;;  %v3092_v43 = vsel %vm10237_vm4, %v7918_v10, 0.0  ;;  %v3008_v42 = vadd.f32 %v7651_v48, %v2471_v51  ;;  %v607_v27 = vand.u32 15, %v439_v32  ;;  %v3009_v24 = vadd.f32 %v2977_v41, %v2472_v8  ;;  %vm10241_vm3 = vmmov %vm10237_vm4  ;;  %v7954_v51 = vpop.permute.xlu0 %2914 }
 0x2e0   : > { %v2111_v33 = vsel %vm7928_vm2, %v7498_v49, 0.0  ;;  %v3093_v44 = vadd.f32 %v3092_v43, %v3091_v60  ;;  %v441_v12 = vadd.s32 192, %v7608_v15  ;;  %vm7947_vm0 = vcmp.ne.s32.totalorder %v600_v6, 15 }
 0x2e1   : > { %v2473_v40 = vadd.f32 %v7756_v37, %v2111_v33  ;;  %v10238_v38 = vmov 0  ;;  %v3094_v20 = vsel %vm10241_vm3, %v7933_v54, 0.0  ;;  %v614_v32 = vand.u32 15, %v440_v39 }
 0x2e2   : > { %v2400_v21 = vpop.permute.xlu1 %2399  ;;  %v10239_v38 = vsel %vm7947_vm0, 4294967295, %v10238_v38  ;;  %v7957_v8 = vadd.f32 %v7674_v9, %v3008_v42  ;;  %vm7959_vm4 = vcmp.ne.s32.totalorder %v607_v27, 0  ;;  %v10242_v49 = vmov 0 }
 0x2e3   : > { %10240 = vst [vmem:[#allocation27_spill] sm:$0xff] %v10239_v38  ;;  %v2474_v48 = vadd.f32 %v2400_v21, %v7525_v58  ;;  %v10243_v49 = vsel %vm7959_vm4, 4294967295, %v10242_v49  ;;  %v7964_v37 = vadd.f32 %v7674_v9, %v3009_v24  ;;  %v2979_v60 = vsel %vm7947_vm0, %v7782_v7, 0.0 }
 0x2e4   : > { %10244 = vst [vmem:[#allocation28_spill] sm:$0xff] %v10243_v49  ;;  %v3095_v6 = vadd.f32 %v3094_v20, %v3093_v44  ;;  %v442_v58 = vadd.s32 200, %v7608_v15  ;;  %v3010_v39 = vadd.f32 %v7729_v31, %v2473_v40  ;;  %v621_v21 = vand.u32 15, %v441_v12  ;;  %v2410_v40 = vpop.permute.xlu0 %2409 }
 0x2e5   : > { %v3011_v43 = vadd.f32 %v2979_v60, %v2474_v48  ;;  %v2113_v42 = vsel %vm7959_vm4, %v7522_v57, 0.0  ;;  %vm7974_vm3 = vcmp.ne.s32.totalorder %v614_v32, 15  ;;  %v10245_v27 = vmov 0 }
 0x2e6   : > { %v10246_v27 = vsel %vm7974_vm3, 4294967295, %v10245_v27  ;;  %v443_v24 = vadd.s32 208, %v7608_v15  ;;  %vm10248_vm0 = vcmask 261120   ;;  %v2475_v20 = vadd.f32 %v7824_v53, %v2113_v42 }
 0x2e7   : > { %10247 = vst [vmem:[#allocation32_spill] sm:$0xff] %v10246_v27  ;;  %v3096_v7 = vsel %vm10248_vm0, %v7957_v8, 0.0  ;;  %vm10249_vm2 = vmmov %vm10248_vm0  ;;  %v628_v44 = vand.u32 15, %v442_v58  ;;  %v445_v57 = vadd.s32 224, %v7608_v15  ;;  %v7987_v48 = vadd.f32 %v7674_v9, %v3010_v39 }
 0x2e8   : > { %v3098_v31 = vsel %vm10249_vm2, %v7964_v37, 0.0  ;;  %v3097_v12 = vadd.f32 %v3096_v7, %v3095_v6  ;;  %vm7989_vm4 = vcmp.ne.s32.totalorder %v621_v21, 0  ;;  %v10250_v32 = vmov 0 }
 0x2e9   : > { %v10251_v32 = vsel %vm7989_vm4, 4294967295, %v10250_v32  ;;  %v7994_v60 = vadd.f32 %v7674_v9, %v3011_v43  ;;  %v444_v6 = vadd.s32 216, %v7608_v15  ;;  %v635_v42 = vand.u32 15, %v443_v24 }
 0x2ea   : > { %10252 = vst [vmem:[#allocation26_spill] sm:$0xff] %v10251_v32  ;;  %v3099_v58 = vadd.f32 %v3098_v31, %v3097_v12  ;;  %v2115_v21 = vsel %vm7989_vm4, %v7539_v5, 0.0  ;;  %vm8004_vm0 = vcmp.ne.s32.totalorder %v628_v44, 15  ;;  %v10253_v7 = vmov 0 }
 0x2eb   : > { %v10254_v7 = vsel %vm8004_vm0, 4294967295, %v10253_v7  ;;  %v649_v43 = vand.u32 15, %v445_v57  ;;  %v3100_v27 = vsel %vm10249_vm2, %v7987_v48, 0.0  ;;  %vm8017_vm4 = vcmp.ne.s32.totalorder %v635_v42, 0 }
 0x2ec   : > { %10255 = vst [vmem:[#allocation35_spill] sm:$0xff] %v10254_v7  ;;  %v3101_v12 = vadd.f32 %v3100_v27, %v3099_v58  ;;  %v10257_v44 = vmov 0  ;;  %v10260_v58 = vmov 0  ;;  %v10263_v42 = vmov 0 }
 0x2ed   : > { %v10258_v44 = vsel %vm8017_vm4, 4294967295, %v10257_v44 }
 0x2ee   : > { %v2404_v41 = vpop.permute.xlu1 %2403  ;;  %10259 = vst [vmem:[#allocation38_spill] sm:$0xff] %v10258_v44 }
 0x2ef   : > { %v2476_v33 = vadd.f32 %v2404_v41, %v7542_v0  ;;  %v2981_v0 = vsel %vm7974_vm3, %v7851_v26, 0.0  ;;  %v3012_v41 = vadd.f32 %v7802_v4, %v2475_v20  ;;  %v2477_v26 = vadd.f32 %v7898_v34, %v2115_v21  ;;  %vm10256_vm3 = vmmov %vm10249_vm2 }
 0x2f0   : > { %v3102_v31 = vsel %vm10256_vm3, %v7994_v60, 0.0  ;;  %v642_v20 = vand.u32 15, %v444_v6  ;;  %v2983_v34 = vsel %vm8004_vm0, %v7926_v2, 0.0  ;;  %vm8029_vm3 = vcmp.ne.s32.totalorder %v649_v43, 0 }
 0x2f1   : > { %v3013_v39 = vadd.f32 %v2981_v0, %v2476_v33  ;;  %v2917_v33 = vpop.permute.xlu0 %2916  ;;  %v8015_v5 = vadd.f32 %v7674_v9, %v3012_v41  ;;  %v3103_v0 = vadd.f32 %v3102_v31, %v3101_v12  ;;  %v10261_v58 = vsel %vm8029_vm3, 4294967295, %v10260_v58 }
 0x2f2   : > { %10262 = vst [vmem:[#allocation37_spill] sm:$0xff] %v10261_v58  ;;  %v2117_v41 = vsel %vm8017_vm4, %v7554_v14, 0.0  ;;  %vm8036_vm2 = vcmp.ne.s32.totalorder %v642_v20, 15  ;;  %vm10266_vm0 = vcmask 261120   ;;  %v2119_v14 = vsel %vm8029_vm3, %v7590_v3, 0.0 }
 0x2f3   : > { %v8022_v57 = vadd.f32 %v7674_v9, %v3013_v39  ;;  %v10264_v42 = vsel %vm8036_vm2, 4294967295, %v10263_v42  ;;  %v3104_v2 = vsel %vm10266_vm0, %v8015_v5, 0.0  ;;  %v2479_v39 = vadd.f32 %v2410_v40, %v2117_v41  ;;  %vm10267_vm1 = vmmov %vm10266_vm0  ;;  %v1495_v20 = vld [vmem:[#allocation2 + $0x300] sm:$0x7f] }
 0x2f4   : > { %10265 = vst [vmem:[#allocation42_spill] sm:$0xff] %v10264_v42  ;;  %v3105_v31 = vadd.f32 %v3104_v2, %v3103_v0  ;;  %v10268_v41 = vld [vmem:[#allocation24_spill] sm:$0xff]  ;;  %v10269_v2 = vmov 0  ;;  %vm10272_vm3 = vmmov %vm10266_vm0 }
 0x2f5   : > { %v2919_v43 = vpop.permute.xlu0 %2918  ;;  %v1697_v44 = vadd.f32 %v10268_v41, %v1495_v20  ;;  %v3016_v0 = vadd.f32 %v7954_v51, %v2479_v39  ;;  %v448_v20 = vadd.s32 248, %v7608_v15 }
 0x2f7   : > { %v8070_v39 = vadd.f32 %v7674_v9, %v3016_v0 }
 0x2f9   : > { %v3112_v0 = vsel %vm10266_vm0, %v8070_v39, 0.0 }
 0x2fa   : > { %v2408_v53 = vpop.permute.xlu1 %2407 }
 0x2fb   : > { %v2478_v4 = vadd.f32 %v2408_v53, %v7557_v28  ;;  %v447_v28 = vadd.s32 240, %v7608_v15  ;;  %v3014_v53 = vadd.f32 %v7877_v29, %v2477_v26  ;;  %v3106_v29 = vsel %vm10267_vm1, %v8022_v57, 0.0 }
 0x2fd   : > { %v3015_v27 = vadd.f32 %v2983_v34, %v2478_v4  ;;  %v663_v26 = vand.u32 15, %v447_v28  ;;  %v446_v4 = vadd.s32 232, %v7608_v15  ;;  %v8050_v12 = vadd.f32 %v7674_v9, %v3014_v53 }
 0x2fe   : > { %v10275_v15 = vmov 0 }
 0x2ff   : > { %v8053_v40 = vadd.f32 %v7674_v9, %v3015_v27  ;;  %vm8059_vm1 = vcmp.ne.s32.totalorder %v663_v26, 0  ;;  %v656_v53 = vand.u32 15, %v446_v4  ;;  %v3108_v27 = vsel %vm10266_vm0, %v8050_v12, 0.0  ;;  %v10274_v4 = vld [vmem:[#allocation23_spill] sm:$0xff] }
 0x300   : > { %v10270_v2 = vsel %vm8059_vm1, 4294967295, %v10269_v2  ;;  %v2121_v41 = vsel %vm8059_vm1, %v10274_v4, 0.0  ;;  %vm10280_vm1 = vmmov %vm10266_vm0 }
 0x301   : > { %10271 = vst [vmem:[#allocation41_spill] sm:$0xff] %v10270_v2 }
 0x306   : > { %v2412_v24 = vpop.permute.xlu1 %2411 }
 0x307   : > { %v2480_v21 = vadd.f32 %v2412_v24, %v7570_v13  ;;  %v2985_v13 = vsel %vm8036_vm2, %v2917_v33, 0.0  ;;  %v3107_v24 = vadd.f32 %v3106_v29, %v3105_v31  ;;  %v10273_v33 = vld [vmem:[#allocation16_spill] sm:$0xff]  ;;  %v2418_v31 = vpop.permute.xlu0 %2417  ;;  %vm10278_vm2 = vmmov %vm10266_vm0 }
 0x308   : > { %v1895_v29 = vadd.f32 %v10273_v33, %v1697_v44  ;;  %v2483_v58 = vadd.f32 %v2418_v31, %v2121_v41  ;;  %v670_v44 = vand.u32 15, %v448_v20  ;;  %v10284_v41 = vld [vmem:[#allocation20_spill] sm:$0xff] }
 0x309   : > { %v3017_v28 = vadd.f32 %v2985_v13, %v2480_v21  ;;  %v3109_v51 = vadd.f32 %v3108_v27, %v3107_v24  ;;  %v10279_v27 = vld [vmem:[#allocation25_spill] sm:$0xff]  ;;  %v10285_v2 = vrot.slane %v10284_v41, 7  ;;  %v3131_v41 = vld [vmem:[%s9921_s3] sm:$0x3] }
 0x30a   : > { %vm8094_vm4 = vcmp.ne.s32.totalorder %v670_v44, 15 }
 0x30b   : > { %v8073_v21 = vadd.f32 %v7674_v9, %v3017_v28 }
 0x30d   : > { %v3114_v28 = vsel %vm10278_vm2, %v8073_v21, 0.0  ;;  %vm10286_vm2 = vcmask 1040384  }
 0x30e   : > { %v2414_v6 = vpop.permute.xlu1 %2413 }
 0x30f   : > { %v2481_v34 = vadd.f32 %v2414_v6, %v2119_v14  ;;  %v3110_v6 = vsel %vm10272_vm3, %v8053_v40, 0.0  ;;  %vm8081_vm3 = vcmp.ne.s32.totalorder %v656_v53, 15 }
 0x310   : > { %v3111_v13 = vadd.f32 %v3110_v6, %v3109_v51  ;;  %v10276_v15 = vsel %vm8081_vm3, 4294967295, %v10275_v15 }
 0x311   : > { %v3018_v14 = vadd.f32 %v2919_v43, %v2481_v34  ;;  %10277 = vst [vmem:[#allocation44_spill] sm:$0xff] %v10276_v15  ;;  %v2057_v34 = vrot.slane %v1895_v29, 7  ;;  %v10281_v29 = vmov 0 }
 0x312   : > { %v2416_v3 = vpop.permute.xlu1 %2415  ;;  %v3113_v51 = vadd.f32 %v3112_v0, %v3111_v13  ;;  %v10282_v29 = vsel %vm8094_vm4, 4294967295, %v10281_v29 }
 0x313   : > { %v8079_v43 = vadd.f32 %v7674_v9, %v3018_v14  ;;  %v2482_v33 = vadd.f32 %v2416_v3, %v10279_v27  ;;  %10283 = vst [vmem:[#allocation43_spill] sm:$0xff] %v10282_v29  ;;  %v2058_v42 = vsel %vm10286_vm2, %v10285_v2, %v2057_v34  ;;  %vm10288_vm2 = vmmov %vm10266_vm0 }
 0x314   : > { %v3115_v4 = vadd.f32 %v3114_v28, %v3113_v51 }
 0x315   : > { %v3116_v14 = vsel %vm10280_vm1, %v8079_v43, 0.0  ;;  %vm10287_vm1 = vmmov %vm10266_vm0 }
 0x316   : > { %v3117_v0 = vadd.f32 %v3116_v14, %v3115_v4 }
 0x318   : > { %v2420_v26 = vpop.permute.xlu1 %2419 }
 0x319   : > { %v2484_v3 = vadd.f32 %v2420_v26, %v2058_v42 }
 0x31b   : > { %v2923_v24 = vpop.permute.xlu0 %2922 }
 0x31c   : > { %v3020_v6 = vadd.f32 %v2923_v24, %v2483_v58  ;;  %v2921_v31 = vpop.permute.xlu1 %2920 }
 0x31d   : > { %v2987_v53 = vsel %vm8081_vm3, %v2921_v31, 0.0 }
 0x31e   : > { %v3019_v20 = vadd.f32 %v2987_v53, %v2482_v33  ;;  %v8102_v58 = vadd.f32 %v7674_v9, %v3020_v6 }
 0x320   : > { %v8105_v13 = vadd.f32 %v7674_v9, %v3019_v20  ;;  %v2925_v24 = vpop.permute.xlu1 %2924  ;;  %v3120_v2 = vsel %vm10266_vm0, %v8102_v58, 0.0  ;;  %vm10289_vm0 = vcmask 1043456  }
 0x321   : > { %v2989_v44 = vsel %vm8094_vm4, %v2925_v24, 0.0  ;;  %vm10292_vm4 = vmmov %vm10289_vm0 }
 0x322   : > { %v3118_v27 = vsel %vm10287_vm1, %v8105_v13, 0.0  ;;  %v3021_v28 = vadd.f32 %v2989_v44, %v2484_v3  ;;  %vm10015_vm1 = vcmask 254976   ;;  %v6121_v44 = vld [vmem:[%s9923_s5 + $0x20] ss:$12 sps:$4 sm:$0xff]  }
 0x323   : > { %v3119_v33 = vadd.f32 %v3118_v27, %v3117_v0  ;;  %v6120_v0 = vld [vmem:[%s9923_s5 + $0x8] ss:$12 sps:$4 sm:$0xff]   ;;  %v6122_v27 = vld [vmem:[%s9923_s5] ss:$12 sps:$4 sm:$0xff]  }
 0x324   : > { %v8114_v42 = vadd.f32 %v7674_v9, %v3021_v28  ;;  %6010 = vmatprep.subr.bf16.mxu0 %v6120_v0  ;;  %v6124_v28 = vld [vmem:[%s9923_s5 + $0x4] ss:$12 sps:$4 sm:$0xff]  }
 0x325   : > { %v3121_v26 = vadd.f32 %v3120_v2, %v3119_v33  ;;  %6011 = vmatpush3.bf16.msra.mxu0 %v6120_v0  ;;  %3534 = vmatprep.subr.bf16.mxu1 %v6124_v28  ;;  %v3138_v33 = vld [vmem:[%s9922_s4] sm:$0x3] }
 0x326   : > { %v3122_v34 = vsel %vm10288_vm2, %v8114_v42, 0.0  ;;  %6012 = vmatprep.subr.bf16.mxu0 %v6121_v44  ;;  %3535 = vmatpush1.bf16.msra.mxu1 %v6122_v27  ;;  %vm10290_vm2 = vmmov %vm10289_vm0 }
 0x327   : > { %v3123_v6 = vadd.f32 %v3122_v34, %v3121_v26 }
 0x329   : > { %v3124_v31 = vrot.slane %v3123_v6, 4  ;;  %6013 = vmatpush3.bf16.msra.mxu0 %v6121_v44  ;;  %v3434_v44 = vld [vmem:[%s9923_s5 + $0x30] sm:$0xff] }
 0x32a   : > { %v5896_v27 = vcombine.high %v3434_v44, %v3434_v44  ;;  %v5895_v28 = vcombine.low %v3434_v44, %v3434_v44 }
 0x32b   : > { %v3125_v51 = vadd.f32 %v3124_v31, %v3123_v6 }
 0x32d   : > { %v3126_v53 = vrot.slane %v3125_v51, 2 }
 0x32f   : > { %v3127_v14 = vadd.f32 %v3126_v53, %v3125_v51 }
 0x331   : > { %v3128_v20 = vrot.slane %v3127_v14, 1 }
 0x333   : > { %v3129_v4 = vadd.f32 %v3128_v20, %v3127_v14  ;;  %v6125_v14 = vld [vmem:[%s9923_s5 + $0x18] ss:$12 sps:$4 sm:$0xff]   ;;  %v6127_v20 = vld [vmem:[%s9923_s5 + $0x1c] ss:$12 sps:$4 sm:$0xff]  }
 0x334   : > { %3536 = vmatprep.subr.bf16.mxu1 %v6127_v20 }
 0x335   : > { %v3130_v3 = vmul.f32 0.00390625, %v3129_v4  ;;  %3537 = vmatpush1.bf16.msra.mxu1 %v6125_v14 }
 0x337   : > { %v3132_v24 = vmul.f32 %v3131_v41, %v3130_v3 }
 0x339   : > { %v3134_v9 = vsel %vm10015_vm1, %v3132_v24, 0.0 }
 0x33a   : > { %3135 = vadd.xlane.f32.xlu0 %v3134_v9  ;;  %v6128_v9 = vld [vmem:[%s9923_s5 + $0x38] ss:$0 sps:$4 sm:$0xff]  }
 0x33b   : > { %6049 = vmatprep.subr.msk.bf16.mxu0 %vm10289_vm0, %v6128_v9  ;;  %v3532_v0 = vsel %vm10290_vm2, %v6128_v9, 0 }
 0x33c   : > { %6015 = vmatpush3.bf16.msra.mxu0 %v3532_v0  ;;  %v6141_v0 = vld [vmem:[#allocation2 + $0x360] sm:$0xff] }
 0x33d   : > { %v6112_v44 = vpack.i.bf16 %v6141_v0, %v6141_v0 }
 0x3c7   : > { %v3136_v2 = vpop.xlane.xlu0 %3135 }
 0x3c8   : > { %v3137_v26 = vmax.f32 %v3136_v2, 0.0 }
 0x3ca   : > { %v3139_v34 = vmul.f32 %v3138_v33, %v3137_v26  ;;  %v3526_v33 = vsel %vm10292_vm4, %v5895_v28, 0  ;;  %vm3345_vm4 = vcmask 326720  }
 0x3cc   : > { %v3140_v6 = vsel %vm10015_vm1, %v3139_v34, 0.0  ;;  %vm10291_vm1 = vmmov %vm10289_vm0  ;;  %vm10300_vm0 = vcmask 261120  }
 0x3cd   : > { %v3141_v31 = vrot.slane %v3140_v6, 4  ;;  %5898 = vmatprep.subr.msk.bf16.mxu1 %vm10291_vm1, %v5896_v27  ;;  %vm3476_vm1 = vcmask 326656   ;;  %vm10301_vm2 = vmmov %vm10300_vm0 }
 0x3ce   : > { %3539 = vmatpush1.bf16.msra.mxu1 %v3526_v33 }
 0x3cf   : > { %v3142_v51 = vadd.f32 %v3141_v31, %v3140_v6 }
 0x3d1   : > { %v3143_v53 = vrot.slane %v3142_v51, 2 }
 0x3d3   : > { %v3144_v4 = vadd.f32 %v3143_v53, %v3142_v51 }
 0x3d5   : > { %v3145_v41 = vrot.slane %v3144_v4, 1 }
 0x3d7   : > { %v3146_v3 = vadd.f32 %v3145_v41, %v3144_v4 }
 0x3d9   : > { %v5888_v24 = vmul.f32 -1.442695, %v3146_v3 }
 0x3db   : > { %6131 = vpow2.f32 %v5888_v24 }
 0x3e5   : > { %v6132_v2 = vpop.eup %6131 }
 0x3e6   : > { %v3150_v26 = vadd.f32 1.0, %v6132_v2 }
 0x3e8   : > { %6133 = vrcp.f32 %v3150_v26 }
 0x3f2   : > { %v8154_v34 = vpop.eup %6133 }
 0x3f3   : > { %v3153_v6 = vmul.f32 %v8154_v34, %v7688_v25  ;;  %v3161_v31 = vmul.f32 %v8154_v34, %v7790_v62  ;;  %v3154_v51 = vmul.f32 %v8154_v34, %v7682_v63  ;;  %v3168_v53 = vmul.f32 %v8154_v34, %v7895_v17  ;;  %v4987_v63 = vld [vmem:[#allocation2 + $0x358] sm:$0xff] }
 0x3f4   : > { %v3155_v4 = vmul.f32 %v8154_v34, %v7692_v22  ;;  %v3156_v62 = vmul.f32 %v8154_v34, %v7702_v18  ;;  %v3170_v17 = vmul.f32 %v8154_v34, %v7933_v54  ;;  %v3157_v22 = vmul.f32 %v8154_v34, %v7726_v56 }
 0x3f5   : > { %v3193_v14 = vmax.f32 %v3161_v31, 0.0  ;;  %v3185_v20 = vmax.f32 %v3153_v6, 0.0  ;;  %v3186_v25 = vmax.f32 %v3154_v51, 0.0  ;;  %v3200_v41 = vmax.f32 %v3168_v53, 0.0 }
 0x3f6   : > { %v3187_v3 = vmax.f32 %v3155_v4, 0.0  ;;  %v3202_v24 = vmax.f32 %v3170_v17, 0.0  ;;  %v3188_v9 = vmax.f32 %v3156_v62, 0.0  ;;  %v3158_v18 = vmul.f32 %v8154_v34, %v7737_v16  ;;  %v4946_v17 = vld [vmem:[#allocation2 + $0x350] sm:$0x1] }
 0x3f7   : > { %3265 = vrot.lane.b32.xlu0 %v3193_v14, %s6233_s16  ;;  %3249 = vrot.lane.b32.xlu1 %v3185_v20, %s6233_s16  ;;  %v3172_v54 = vmul.f32 %v8154_v34, %v7964_v37  ;;  %v3189_v27 = vmax.f32 %v3157_v22, 0.0  ;;  %v3159_v56 = vmul.f32 %v8154_v34, %v7759_v46  ;;  %v3174_v28 = vmul.f32 %v8154_v34, %v7994_v60 }
 0x3f8   : > { %v3190_v2 = vmax.f32 %v3158_v18, 0.0  ;;  %v3160_v16 = vmul.f32 %v8154_v34, %v7768_v30  ;;  %v3176_v37 = vmul.f32 %v8154_v34, %v8022_v57  ;;  %v3162_v46 = vmul.f32 %v8154_v34, %v7799_v50 }
 0x3f9   : > { %v3204_v33 = vmax.f32 %v3172_v54, 0.0  ;;  %v3206_v26 = vmax.f32 %v3174_v28, 0.0  ;;  %v3191_v6 = vmax.f32 %v3159_v56, 0.0  ;;  %v3178_v60 = vmul.f32 %v8154_v34, %v8053_v40  ;;  %v4251_v54 = vld [vmem:[#allocation2 + $0x368] sm:$0x7f] }
 0x3fa   : > { %v3208_v31 = vmax.f32 %v3176_v37, 0.0  ;;  %v3192_v51 = vmax.f32 %v3160_v16, 0.0  ;;  %v3163_v30 = vmul.f32 %v8154_v34, %v7821_v47  ;;  %v3180_v57 = vmul.f32 %v8154_v34, %v8073_v21 }
 0x3fb   : > { %3279 = vrot.lane.b32.xlu0 %v3200_v41, %s6233_s16  ;;  %3251 = vrot.lane.b32.xlu1 %v3186_v25, %s6233_s16  ;;  %v3210_v53 = vmax.f32 %v3178_v60, 0.0  ;;  %v3194_v14 = vmax.f32 %v3162_v46, 0.0  ;;  %v3164_v50 = vmul.f32 %v8154_v34, %v7832_v1  ;;  %v3182_v40 = vmul.f32 %v8154_v34, %v8105_v13 }
 0x3fc   : > { %v3212_v20 = vmax.f32 %v3180_v57, 0.0  ;;  %v3195_v4 = vmax.f32 %v3163_v30, 0.0  ;;  %v3165_v47 = vmul.f32 %v8154_v34, %v7854_v11  ;;  %v3184_v21 = vmul.f32 %v8154_v34, %v8114_v42  ;;  %v4050_v42 = vld [vmem:[#allocation2 + $0x30] sm:$0x80] }
 0x3fd   : > { %v3214_v25 = vmax.f32 %v3182_v40, 0.0  ;;  %v3196_v41 = vmax.f32 %v3164_v50, 0.0  ;;  %v3166_v1 = vmul.f32 %v8154_v34, %v7863_v52  ;;  %v3167_v11 = vmul.f32 %v8154_v34, %v7885_v23 }
 0x3fe   : > { %v3216_v13 = vmax.f32 %v3184_v21, 0.0  ;;  %v6107_v22 = vpack.i.bf16 %v4946_v17, %v4050_v42  ;;  %v3169_v52 = vmul.f32 %v8154_v34, %v7918_v10  ;;  %v3171_v23 = vmul.f32 %v8154_v34, %v7957_v8 }
 0x3ff   : > { %5083 = vrot.lane.b32.xlu0 %v4987_v63, %s6230_s21  ;;  %3253 = vrot.lane.b32.xlu1 %v3187_v3, %s6233_s16  ;;  %v3197_v63 = vmax.f32 %v3165_v47, 0.0  ;;  %v3198_v62 = vmax.f32 %v3166_v1, 0.0  ;;  %v3199_v3 = vmax.f32 %v3167_v11, 0.0  ;;  %v3173_v18 = vmul.f32 %v8154_v34, %v7987_v48 }
 0x400   : > { %v3203_v0 = vmax.f32 %v3171_v23, 0.0  ;;  %v3177_v8 = vmul.f32 %v8154_v34, %v8050_v12  ;;  %v3179_v48 = vmul.f32 %v8154_v34, %v8070_v39  ;;  %v3183_v12 = vmul.f32 %v8154_v34, %v8102_v58 }
 0x401   : > { %v3205_v10 = vmax.f32 %v3173_v18, 0.0 }
 0x402   : > { %v3209_v28 = vmax.f32 %v3177_v8, 0.0  ;;  %v3215_v16 = vmax.f32 %v3183_v12, 0.0 }
 0x403   : > { %3283 = vrot.lane.b32.xlu0 %v3202_v24, %s6233_s16  ;;  %3255 = vrot.lane.b32.xlu1 %v3188_v9, %s6233_s16  ;;  %v3201_v24 = vmax.f32 %v3169_v52, 0.0  ;;  %v4988_v9 = vld [vmem:[#allocation2 + $0x370] sm:$0xff] }
 0x407   : > { %6113 = vrot.lane.b32.xlu0 %v6112_v44, %s6230_s21  ;;  %3257 = vrot.lane.b32.xlu1 %v3189_v27, %s6233_s16  ;;  %v4989_v44 = vld [vmem:[#allocation2 + $0x388] sm:$0x1]  ;;  %v3175_v27 = vmul.f32 %v8154_v34, %v8015_v5  ;;  %v3181_v5 = vmul.f32 %v8154_v34, %v8079_v43 }
 0x409   : > { %v3207_v56 = vmax.f32 %v3175_v27, 0.0 }
 0x40b   : > { %3287 = vrot.lane.b32.xlu0 %v3204_v33, %s6233_s16  ;;  %3259 = vrot.lane.b32.xlu1 %v3190_v2, %s6233_s16  ;;  %v3211_v33 = vmax.f32 %v3179_v48, 0.0  ;;  %v3213_v2 = vmax.f32 %v3181_v5, 0.0 }
 0x40f   : > { %3291 = vrot.lane.b32.xlu0 %v3206_v26, %s6233_s16  ;;  %3261 = vrot.lane.b32.xlu1 %v3191_v6, %s6233_s16 }
 0x413   : > { %3295 = vrot.lane.b32.xlu0 %v3208_v31, %s6233_s16  ;;  %3263 = vrot.lane.b32.xlu1 %v3192_v51, %s6233_s16 }
 0x417   : > { %3299 = vrot.lane.b32.xlu0 %v3210_v53, %s6233_s16  ;;  %3267 = vrot.lane.b32.xlu1 %v3194_v14, %s6233_s16  ;;  %v10295_v53 = vmov 0  }
 0x41b   : > { %3303 = vrot.lane.b32.xlu0 %v3212_v20, %s6233_s16  ;;  %3269 = vrot.lane.b32.xlu1 %v3195_v4, %s6233_s16 }
 0x41f   : > { %3307 = vrot.lane.b32.xlu0 %v3214_v25, %s6233_s16  ;;  %3271 = vrot.lane.b32.xlu1 %v3196_v41, %s6233_s16 }
 0x423   : > { %3311 = vrot.lane.b32.xlu0 %v3216_v13, %s6233_s16  ;;  %3273 = vrot.lane.b32.xlu1 %v3197_v63, %s6233_s16 }
 0x427   : > { %3275 = vrot.lane.b32.xlu1 %v3198_v62, %s6233_s16 }
 0x42b   : > { %3277 = vrot.lane.b32.xlu1 %v3199_v3, %s6233_s16 }
 0x42f   : > { %6108 = vrot.lane.b32.xlu1 %v6107_v22, %s6231_s22 }
 0x433   : > { %3281 = vrot.lane.b32.xlu1 %v3201_v24, %s6233_s16 }
 0x437   : > { %5085 = vrot.lane.b32.xlu1 %v4988_v9, %s6230_s21 }
 0x43b   : > { %3285 = vrot.lane.b32.xlu1 %v3203_v0, %s6233_s16 }
 0x43f   : > { %5087 = vrot.lane.b32.xlu1 %v4989_v44, %s6230_s21 }
 0x443   : > { %3289 = vrot.lane.b32.xlu1 %v3205_v10, %s6233_s16 }
 0x447   : > { %4349 = vrot.lane.b32.xlu1 %v4251_v54, %s6230_s21 }
 0x44b   : > { %3293 = vrot.lane.b32.xlu1 %v3207_v56, %s6233_s16 }
 0x44f   : > { %3297 = vrot.lane.b32.xlu1 %v3209_v28, %s6233_s16 }
 0x453   : > { %3301 = vrot.lane.b32.xlu1 %v3211_v33, %s6233_s16 }
 0x457   : > { %3305 = vrot.lane.b32.xlu1 %v3213_v2, %s6233_s16 }
 0x45b   : > { %3309 = vrot.lane.b32.xlu1 %v3215_v16, %s6233_s16 }
 0x469   : > { %v3266_v39 = vpop.permute.xlu0 %3265  ;;  %v3250_v43 = vpop.permute.xlu1 %3249 }
 0x46a   : > { %3354 = vst.msk [vmem:[%s6359_s17 + $0x40] sm:$0xff] %vm3345_vm4, %v3266_v39  ;;  %3346 = vst.msk [vmem:[%s6359_s17] sm:$0xff] %vm3345_vm4, %v3250_v43 }
 0x46d   : > { %v3280_v37 = vpop.permute.xlu0 %3279  ;;  %v3252_v58 = vpop.permute.xlu1 %3251 }
 0x46e   : > { %3361 = vst.msk [vmem:[%s6359_s17 + $0x78] sm:$0xff] %vm3345_vm4, %v3280_v37  ;;  %3347 = vst.msk [vmem:[%s6359_s17 + $0x8] sm:$0xff] %vm3345_vm4, %v3252_v58 }
 0x471   : > { %v8266_v34 = vpop.permute.xlu0 %5083  ;;  %v3254_v26 = vpop.permute.xlu1 %3253  ;;  %v3378_v60 = vld [vmem:[%s6359_s17] sm:$0xff] }
 0x472   : > { %10293 = vst [vmem:[#allocation47_spill] sm:$0xff] %v8266_v34  ;;  %3348 = vst.msk [vmem:[%s6359_s17 + $0x10] sm:$0xff] %vm3345_vm4, %v3254_v26  ;;  %v3386_v23 = vld [vmem:[%s6359_s17 + $0x40] sm:$0xff] }
 0x475   : > { %v3284_v6 = vpop.permute.xlu0 %3283  ;;  %v3256_v46 = vpop.permute.xlu1 %3255  ;;  %v3379_v31 = vld [vmem:[%s6359_s17 + $0x8] sm:$0xff]  ;;  %v3393_v39 = vld [vmem:[%s6359_s17 + $0x78] sm:$0xff] }
 0x476   : > { %3363 = vst.msk [vmem:[%s6359_s17 + $0x88] sm:$0xff] %vm3345_vm4, %v3284_v6  ;;  %3349 = vst.msk [vmem:[%s6359_s17 + $0x18] sm:$0xff] %vm3345_vm4, %v3256_v46  ;;  %v3410_v51 = vpack.c.bf16 %v3379_v31, %v3378_v60 }
 0x478   : > { %5899 = vmatmul.mubr.msk.bf16.vlgmr.msra.gmra.mrb[32].mxu1 %vm3476_vm1, %v3410_v51  ;;  %6016 = vmatprep.mubr.msk.bf16.mxu0 %vm3476_vm1, %v3410_v51 }
 0x479   : > { %v8278_v30 = vpop.permute.xlu0 %6113  ;;  %v3258_v57 = vpop.permute.xlu1 %3257  ;;  %3576 = vmatprep.mubr.bf16.mxu1 %v10295_v53  ;;  %v3380_v40 = vld [vmem:[%s6359_s17 + $0x10] sm:$0xff] }
 0x47a   : > { %10294 = vst [vmem:[#allocation46_spill] sm:$0xff] %v8278_v30  ;;  %3350 = vst.msk [vmem:[%s6359_s17 + $0x20] sm:$0xff] %vm3345_vm4, %v3258_v57 }
 0x47d   : > { %v3288_v14 = vpop.permute.xlu0 %3287  ;;  %v3260_v50 = vpop.permute.xlu1 %3259  ;;  %v3381_v20 = vld [vmem:[%s6359_s17 + $0x18] sm:$0xff]  ;;  %v3395_v6 = vld [vmem:[%s6359_s17 + $0x88] sm:$0xff] }
 0x47e   : > { %3365 = vst.msk [vmem:[%s6359_s17 + $0x98] sm:$0xff] %vm3345_vm4, %v3288_v14  ;;  %3351 = vst.msk [vmem:[%s6359_s17 + $0x28] sm:$0xff] %vm3345_vm4, %v3260_v50  ;;  %v3411_v4 = vpack.c.bf16 %v3381_v20, %v3380_v40 }
 0x480   : > { %5900 = vmatmul.mubr.msk.bf16.gmra.mrb[36].mxu1 %vm3476_vm1, %v3411_v4  ;;  %6017 = vmatmul.mubr.msk.bf16.vlgmr.msra.gmra.mrb[64].mxu0 %vm3476_vm1, %v3411_v4 }
 0x481   : > { %v3292_v47 = vpop.permute.xlu0 %3291  ;;  %v3262_v21 = vpop.permute.xlu1 %3261  ;;  %3586 = vmatprep.mubr.bf16.mxu1 %v10295_v53  ;;  %v3382_v1 = vld [vmem:[%s6359_s17 + $0x20] sm:$0xff] }
 0x482   : > { %3367 = vst.msk [vmem:[%s6359_s17 + $0xa8] sm:$0xff] %vm3345_vm4, %v3292_v47  ;;  %3352 = vst.msk [vmem:[%s6359_s17 + $0x30] sm:$0xff] %vm3345_vm4, %v3262_v21 }
 0x485   : > { %v3296_v25 = vpop.permute.xlu0 %3295  ;;  %v3264_v41 = vpop.permute.xlu1 %3263  ;;  %v3383_v13 = vld [vmem:[%s6359_s17 + $0x28] sm:$0xff]  ;;  %v3397_v57 = vld [vmem:[%s6359_s17 + $0x98] sm:$0xff] }
 0x486   : > { %3369 = vst.msk [vmem:[%s6359_s17 + $0xb8] sm:$0xff] %vm3345_vm4, %v3296_v25  ;;  %3353 = vst.msk [vmem:[%s6359_s17 + $0x38] sm:$0xff] %vm3345_vm4, %v3264_v41  ;;  %v3412_v63 = vpack.c.bf16 %v3383_v13, %v3382_v1 }
 0x488   : > { %5901 = vmatmul.mubr.msk.bf16.gmra.mrb[40].mxu1 %vm3476_vm1, %v3412_v63  ;;  %6020 = vmatprep.mubr.msk.bf16.mxu0 %vm3476_vm1, %v3412_v63 }
 0x489   : > { %v3300_v11 = vpop.permute.xlu0 %3299  ;;  %v3268_v62 = vpop.permute.xlu1 %3267  ;;  %3596 = vmatprep.mubr.bf16.mxu1 %v10295_v53  ;;  %v3384_v3 = vld [vmem:[%s6359_s17 + $0x30] sm:$0xff]  ;;  %v3399_v4 = vld [vmem:[%s6359_s17 + $0xa8] sm:$0xff] }
 0x48a   : > { %3371 = vst.msk [vmem:[%s6359_s17 + $0xc8] sm:$0xff] %vm3345_vm4, %v3300_v11  ;;  %3355 = vst.msk [vmem:[%s6359_s17 + $0x48] sm:$0xff] %vm3345_vm4, %v3268_v62 }
 0x48d   : > { %v3304_v42 = vpop.permute.xlu0 %3303  ;;  %v3270_v17 = vpop.permute.xlu1 %3269  ;;  %v3385_v22 = vld [vmem:[%s6359_s17 + $0x38] sm:$0xff] }
 0x48e   : > { %3373 = vst.msk [vmem:[%s6359_s17 + $0xd8] sm:$0xff] %vm3345_vm4, %v3304_v42  ;;  %3356 = vst.msk [vmem:[%s6359_s17 + $0x50] sm:$0xff] %vm3345_vm4, %v3270_v17  ;;  %v3413_v52 = vpack.c.bf16 %v3385_v22, %v3384_v3  ;;  %v3401_v1 = vld [vmem:[%s6359_s17 + $0xb8] sm:$0xff] }
 0x490   : > { %5902 = vmatmul.mubr.msk.bf16.gmra.mrb[44].mxu1 %vm3476_vm1, %v3413_v52  ;;  %6021 = vmatmul.mubr.msk.bf16.gmra.mrb[68].mxu0 %vm3476_vm1, %v3413_v52 }
 0x491   : > { %v3308_v24 = vpop.permute.xlu0 %3307  ;;  %v3272_v9 = vpop.permute.xlu1 %3271  ;;  %v3387_v0 = vld [vmem:[%s6359_s17 + $0x48] sm:$0xff]  ;;  %3606 = vmatprep.mubr.bf16.mxu1 %v10295_v53 }
 0x492   : > { %3375 = vst.msk [vmem:[%s6359_s17 + $0xe8] sm:$0xff] %vm3345_vm4, %v3308_v24  ;;  %3357 = vst.msk [vmem:[%s6359_s17 + $0x58] sm:$0xff] %vm3345_vm4, %v3272_v9  ;;  %v3414_v44 = vpack.c.bf16 %v3387_v0, %v3386_v23  ;;  %v3403_v62 = vld [vmem:[%s6359_s17 + $0xc8] sm:$0xff] }
 0x494   : > { %6024 = vmatprep.mubr.msk.bf16.mxu0 %vm3476_vm1, %v3414_v44 }
 0x495   : > { %v3312_v18 = vpop.permute.xlu0 %3311  ;;  %v3274_v10 = vpop.permute.xlu1 %3273  ;;  %v3388_v27 = vld [vmem:[%s6359_s17 + $0x50] sm:$0xff]  ;;  %v3405_v22 = vld [vmem:[%s6359_s17 + $0xd8] sm:$0xff] }
 0x496   : > { %3377 = vst.msk [vmem:[%s6359_s17 + $0xf8] sm:$0xff] %vm3345_vm4, %v3312_v18  ;;  %3358 = vst.msk [vmem:[%s6359_s17 + $0x60] sm:$0xff] %vm3345_vm4, %v3274_v10 }
 0x498   : > { %5903 = vmatmul.mubr.msk.bf16.gmra.mrb[48].mxu1 %vm3476_vm1, %v3414_v44 }
 0x499   : > { %v3276_v54 = vpop.permute.xlu1 %3275  ;;  %v3389_v8 = vld [vmem:[%s6359_s17 + $0x58] sm:$0xff]  ;;  %3616 = vmatprep.mubr.bf16.mxu1 %v10295_v53  ;;  %v3407_v9 = vld [vmem:[%s6359_s17 + $0xe8] sm:$0xff] }
 0x49a   : > { %3359 = vst.msk [vmem:[%s6359_s17 + $0x68] sm:$0xff] %vm3345_vm4, %v3276_v54  ;;  %v3415_v56 = vpack.c.bf16 %v3389_v8, %v3388_v27 }
 0x49c   : > { %6025 = vmatmul.mubr.msk.bf16.gmra.mrb[72].mxu0 %vm3476_vm1, %v3415_v56 }
 0x49d   : > { %v3278_v48 = vpop.permute.xlu1 %3277  ;;  %v3390_v5 = vld [vmem:[%s6359_s17 + $0x60] sm:$0xff]  ;;  %v3409_v44 = vld [vmem:[%s6359_s17 + $0xf8] sm:$0xff] }
 0x49e   : > { %3360 = vst.msk [vmem:[%s6359_s17 + $0x70] sm:$0xff] %vm3345_vm4, %v3278_v48 }
 0x4a0   : > { %5904 = vmatmul.mubr.msk.bf16.gmra.mrb[52].mxu1 %vm3476_vm1, %v3415_v56 }
 0x4a1   : > { %v8339_v28 = vpop.permute.xlu1 %6108  ;;  %v3391_v33 = vld [vmem:[%s6359_s17 + $0x68] sm:$0xff]  ;;  %3626 = vmatprep.mubr.bf16.mxu1 %v10295_v53 }
 0x4a2   : > { %10296 = vst [vmem:[#allocation7_spill] sm:$0xff] %v8339_v28  ;;  %v3416_v12 = vpack.c.bf16 %v3391_v33, %v3390_v5 }
 0x4a4   : > { %6028 = vmatprep.mubr.msk.bf16.mxu0 %vm3476_vm1, %v3416_v12 }
 0x4a5   : > { %v3282_v2 = vpop.permute.xlu1 %3281  ;;  %v3392_v16 = vld [vmem:[%s6359_s17 + $0x70] sm:$0xff] }
 0x4a6   : > { %3362 = vst.msk [vmem:[%s6359_s17 + $0x80] sm:$0xff] %vm3345_vm4, %v3282_v2  ;;  %v3417_v43 = vpack.c.bf16 %v3393_v39, %v3392_v16 }
 0x4a8   : > { %5905 = vmatmul.mubr.msk.bf16.gmra.mrb[56].mxu1 %vm3476_vm1, %v3416_v12  ;;  %6029 = vmatmul.mubr.msk.bf16.gmra.mrb[76].mxu0 %vm3476_vm1, %v3417_v43 }
 0x4a9   : > { %v8351_v37 = vpop.permute.xlu1 %5085  ;;  %3636 = vmatprep.mubr.bf16.mxu1 %v10295_v53 }
 0x4aa   : > { %10297 = vst [vmem:[#allocation6_spill] sm:$0xff] %v8351_v37 }
 0x4ad   : > { %v3286_v58 = vpop.permute.xlu1 %3285  ;;  %v3394_v26 = vld [vmem:[%s6359_s17 + $0x80] sm:$0xff] }
 0x4ae   : > { %3364 = vst.msk [vmem:[%s6359_s17 + $0x90] sm:$0xff] %vm3345_vm4, %v3286_v58  ;;  %v3418_v46 = vpack.c.bf16 %v3395_v6, %v3394_v26 }
 0x4b0   : > { %5906 = vmatmul.mubr.msk.bf16.gmra.mrb[60].mxu1 %vm3476_vm1, %v3417_v43  ;;  %6032 = vmatprep.mubr.msk.bf16.mxu0 %vm3476_vm1, %v3418_v46 }
 0x4b1   : > { %v8360_v60 = vpop.permute.xlu1 %5087  ;;  %3646 = vmatprep.mubr.bf16.mxu1 %v10295_v53 }
 0x4b2   : > { %10298 = vst [vmem:[#allocation19_spill] sm:$0xff] %v8360_v60 }
 0x4b5   : > { %v3290_v31 = vpop.permute.xlu1 %3289  ;;  %v3396_v51 = vld [vmem:[%s6359_s17 + $0x90] sm:$0xff] }
 0x4b6   : > { %3366 = vst.msk [vmem:[%s6359_s17 + $0xa0] sm:$0xff] %vm3345_vm4, %v3290_v31  ;;  %v3419_v14 = vpack.c.bf16 %v3397_v57, %v3396_v51 }
 0x4b8   : > { %5907 = vmatmul.mubr.msk.bf16.gmra.mrb[64].mxu1 %vm3476_vm1, %v3418_v46  ;;  %6033 = vmatmul.mubr.msk.bf16.gmra.mrb[80].mxu0 %vm3476_vm1, %v3419_v14 }
 0x4b9   : > { %v8369_v50 = vpop.permute.xlu1 %4349  ;;  %3656 = vmatprep.mubr.bf16.mxu1 %v10295_v53 }
 0x4ba   : > { %10299 = vst [vmem:[#allocation24_spill] sm:$0xff] %v8369_v50 }
 0x4bd   : > { %v3294_v40 = vpop.permute.xlu1 %3293  ;;  %v3398_v20 = vld [vmem:[%s6359_s17 + $0xa0] sm:$0xff] }
 0x4be   : > { %3368 = vst.msk [vmem:[%s6359_s17 + $0xb0] sm:$0xff] %vm3345_vm4, %v3294_v40  ;;  %v3420_v47 = vpack.c.bf16 %v3399_v4, %v3398_v20 }
 0x4c0   : > { %5908 = vmatmul.mubr.msk.bf16.gmra.mrb[68].mxu1 %vm3476_vm1, %v3419_v14  ;;  %6036 = vmatprep.mubr.msk.bf16.mxu0 %vm3476_vm1, %v3420_v47 }
 0x4c1   : > { %v3298_v21 = vpop.permute.xlu1 %3297  ;;  %3666 = vmatprep.mubr.bf16.mxu1 %v10295_v53 }
 0x4c2   : > { %3370 = vst.msk [vmem:[%s6359_s17 + $0xc0] sm:$0xff] %vm3345_vm4, %v3298_v21 }
 0x4c5   : > { %v3302_v25 = vpop.permute.xlu1 %3301  ;;  %v3400_v41 = vld [vmem:[%s6359_s17 + $0xb0] sm:$0xff] }
 0x4c6   : > { %3372 = vst.msk [vmem:[%s6359_s17 + $0xd0] sm:$0xff] %vm3345_vm4, %v3302_v25  ;;  %v3421_v13 = vpack.c.bf16 %v3401_v1, %v3400_v41 }
 0x4c8   : > { %5909 = vmatmul.mubr.msk.bf16.gmra.mrb[72].mxu1 %vm3476_vm1, %v3420_v47  ;;  %6037 = vmatmul.mubr.msk.bf16.gmra.mrb[84].mxu0 %vm3476_vm1, %v3421_v13 }
 0x4c9   : > { %v3306_v63 = vpop.permute.xlu1 %3305  ;;  %v3402_v11 = vld [vmem:[%s6359_s17 + $0xc0] sm:$0xff]  ;;  %3676 = vmatprep.mubr.bf16.mxu1 %v10295_v53 }
 0x4ca   : > { %3374 = vst.msk [vmem:[%s6359_s17 + $0xe0] sm:$0xff] %vm3345_vm4, %v3306_v63  ;;  %v3422_v42 = vpack.c.bf16 %v3403_v62, %v3402_v11 }
 0x4cc   : > { %6040 = vmatprep.mubr.msk.bf16.mxu0 %vm3476_vm1, %v3422_v42 }
 0x4cd   : > { %v3310_v17 = vpop.permute.xlu1 %3309  ;;  %v3404_v3 = vld [vmem:[%s6359_s17 + $0xd0] sm:$0xff] }
 0x4ce   : > { %3376 = vst.msk [vmem:[%s6359_s17 + $0xf0] sm:$0xff] %vm3345_vm4, %v3310_v17  ;;  %v3423_v52 = vpack.c.bf16 %v3405_v22, %v3404_v3  ;;  %vm10302_vm4 = vmmov %vm10300_vm0 }
 0x4d0   : > { %5910 = vmatmul.mubr.msk.bf16.gmra.mrb[76].mxu1 %vm3476_vm1, %v3421_v13  ;;  %6041 = vmatmul.mubr.msk.bf16.gmra.mrb[88].mxu0 %vm3476_vm1, %v3423_v52 }
 0x4d1   : > { %v3406_v24 = vld [vmem:[%s6359_s17 + $0xe0] sm:$0xff]  ;;  %3686 = vmatprep.mubr.bf16.mxu1 %v10295_v53 }
 0x4d2   : > { %v3424_v23 = vpack.c.bf16 %v3407_v9, %v3406_v24 }
 0x4d4   : > { %6044 = vmatprep.mubr.msk.bf16.mxu0 %vm3476_vm1, %v3424_v23 }
 0x4d5   : > { %v3408_v0 = vld [vmem:[%s6359_s17 + $0xf0] sm:$0xff] }
 0x4d6   : > { %v3425_v18 = vpack.c.bf16 %v3409_v44, %v3408_v0 }
 0x4d8   : > { %5911 = vmatmul.mubr.msk.bf16.gmra.mrb[80].mxu1 %vm3476_vm1, %v3422_v42  ;;  %6045 = vmatmul.mubr.msk.bf16.gmra.mrb[92].mxu0 %vm3476_vm1, %v3425_v18 }
 0x4d9   : > { %3696 = vmatprep.mubr.bf16.mxu1 %v10295_v53 }
 0x4e0   : > { %5912 = vmatmul.mubr.msk.bf16.gmra.mrb[84].mxu1 %vm3476_vm1, %v3423_v52 }
 0x4e1   : > { %3706 = vmatprep.mubr.bf16.mxu1 %v10295_v53 }
 0x4e8   : > { %5913 = vmatmul.mubr.msk.bf16.gmra.mrb[88].mxu1 %vm3476_vm1, %v3424_v23 }
 0x4e9   : > { %3716 = vmatprep.mubr.bf16.mxu1 %v10295_v53 }
 0x4f0   : > { %5914 = vmatmul.mubr.msk.bf16.gmra.mrb[92].mxu1 %vm3476_vm1, %v3425_v18  ;;  %vm10303_vm1 = vmmov %vm10300_vm0 }
 0x54b   : > { %v8413_v10 = vpop.f32.mrb[32].mxu1 }
 0x54c   : > { %v3570_v54 = vpop.f32.mrb[33].mxu1  ;;  %4089 = vrot.lane.b32.xlu0 %v8413_v10, %s6231_s22 }
 0x54d   : > { %3889 = vst [vmem:[#allocation2 + $0x50] sm:$0xff] %v3570_v54  ;;  %v8417_v27 = vpop.f32.mrb[34].mxu1 }
 0x54e   : > { %v3574_v8 = vpop.f32.mrb[35].mxu1 }
 0x54f   : > { %3892 = vst [vmem:[#allocation2 + $0x68] sm:$0xff] %v3574_v8 }
 0x550   : > { %4616 = vrot.lane.b32.xlu0 %v3570_v54, %s6231_s22 }
 0x553   : > { %v8420_v56 = vpop.f32.mrb[36].mxu1  ;;  %v6018_v48 = vpop.f32.mrb[64].mxu0 }
 0x554   : > { %3896 = vst.msk [vmem:[#allocation2 + $0x88] sm:$0xff] %vm10300_vm0, %v6018_v48  ;;  %v3580_v53 = vpop.f32.mrb[37].mxu1  ;;  %v3761_v5 = vpop.f32.mrb[65].mxu0  ;;  %v4945_v33 = vld [vmem:[#allocation2 + $0x50] sm:$0xfe] }
 0x555   : > { %4949 = vrot.lane.b32.xlu1 %v4945_v33, %s6231_s22  ;;  %v8424_v12 = vpop.f32.mrb[38].mxu1  ;;  %v6019_v2 = vpop.f32.mrb[66].mxu0 }
 0x556   : > { %3899 = vst.msk [vmem:[#allocation2 + $0xa0] sm:$0xff] %vm10301_vm2, %v6019_v2  ;;  %v3584_v16 = vpop.f32.mrb[39].mxu1  ;;  %v3764_v39 = vpop.f32.mrb[67].mxu0  ;;  %v4219_v31 = vld [vmem:[#allocation2 + $0x68] sm:$0x80]  ;;  %vm10304_vm2 = vmmov %vm10300_vm0 }
 0x559   : > { %4091 = vrot.lane.b32.xlu1 %v8417_v27, %s6231_s22 }
 0x55b   : > { %v8429_v43 = vpop.f32.mrb[40].mxu1  ;;  %v4957_v58 = vld [vmem:[#allocation2 + $0x88] sm:$0xfe] }
 0x55c   : > { %5023 = vrot.lane.b32.xlu0 %v4957_v58, %s6230_s21  ;;  %v3590_v26 = vpop.f32.mrb[41].mxu1 }
 0x55d   : > { %4618 = vrot.lane.b32.xlu1 %v3574_v8, %s6231_s22  ;;  %v8433_v6 = vpop.f32.mrb[42].mxu1  ;;  %v4958_v51 = vld [vmem:[#allocation2 + $0xa0] sm:$0xff] }
 0x55e   : > { %v8435_v46 = vpop.f32.mrb[43].mxu1 }
 0x560   : > { %4285 = vrot.lane.b32.xlu0 %v4219_v31, %s6230_s21 }
 0x561   : > { %5025 = vrot.lane.b32.xlu1 %v4958_v51, %s6230_s21 }
 0x563   : > { %v8439_v57 = vpop.f32.mrb[44].mxu1  ;;  %v6022_v14 = vpop.f32.mrb[68].mxu0 }
 0x564   : > { %3908 = vst.msk [vmem:[#allocation2 + $0xe8] sm:$0xff] %vm10302_vm4, %v6022_v14  ;;  %4093 = vrot.lane.b32.xlu0 %v8420_v56, %s6231_s22  ;;  %v8444_v40 = vpop.f32.mrb[45].mxu1  ;;  %v3777_v20 = vpop.f32.mrb[69].mxu0  ;;  %vm10305_vm4 = vmmov %vm10300_vm0 }
 0x565   : > { %3902 = vst.msk [vmem:[#allocation2 + $0xb8] sm:$0xff] %vm10303_vm1, %v3777_v20  ;;  %4287 = vrot.lane.b32.xlu1 %v3580_v53, %s6230_s21  ;;  %v8448_v4 = vpop.f32.mrb[46].mxu1  ;;  %v6023_v47 = vpop.f32.mrb[70].mxu0  ;;  %vm10306_vm1 = vmmov %vm10300_vm0 }
 0x566   : > { %3911 = vst.msk [vmem:[#allocation2 + $0x100] sm:$0xff] %vm10300_vm0, %v6023_v47  ;;  %v8451_v21 = vpop.f32.mrb[47].mxu1  ;;  %v3780_v25 = vpop.f32.mrb[71].mxu0 }
 0x567   : > { %3905 = vst.msk [vmem:[#allocation2 + $0xd0] sm:$0xff] %vm10304_vm2, %v3780_v25  ;;  %vm10307_vm2 = vmmov %vm10300_vm0 }
 0x568   : > { %4620 = vrot.lane.b32.xlu0 %v3580_v53, %s6231_s22 }
 0x56b   : > { %v8455_v41 = vpop.f32.mrb[48].mxu1  ;;  %v4961_v1 = vld [vmem:[#allocation2 + $0xe8] sm:$0xff] }
 0x56c   : > { %5031 = vrot.lane.b32.xlu1 %v4961_v1, %s6230_s21  ;;  %v8458_v13 = vpop.f32.mrb[49].mxu1  ;;  %v4959_v63 = vld [vmem:[#allocation2 + $0xb8] sm:$0xff] }
 0x56d   : > { %5027 = vrot.lane.b32.xlu0 %v4959_v63, %s6230_s21  ;;  %v8461_v11 = vpop.f32.mrb[50].mxu1  ;;  %v4962_v9 = vld [vmem:[#allocation2 + $0x100] sm:$0xff] }
 0x56e   : > { %v8463_v62 = vpop.f32.mrb[51].mxu1  ;;  %v4960_v44 = vld [vmem:[#allocation2 + $0xd0] sm:$0xff] }
 0x56f   : > { %v6026_v42 = vpop.f32.mrb[72].mxu0 }
 0x570   : > { %3920 = vst.msk [vmem:[#allocation2 + $0x148] sm:$0xff] %vm10305_vm4, %v6026_v42  ;;  %4095 = vrot.lane.b32.xlu1 %v8424_v12, %s6231_s22  ;;  %v3793_v17 = vpop.f32.mrb[73].mxu0  ;;  %vm10310_vm4 = vmmov %vm10300_vm0 }
 0x571   : > { %3914 = vst.msk [vmem:[#allocation2 + $0x118] sm:$0xff] %vm10306_vm1, %v3793_v17  ;;  %4289 = vrot.lane.b32.xlu0 %v3584_v16, %s6230_s21  ;;  %v6027_v3 = vpop.f32.mrb[74].mxu0  ;;  %vm10311_vm1 = vmmov %vm10300_vm0 }
 0x572   : > { %3923 = vst.msk [vmem:[#allocation2 + $0x160] sm:$0xff] %vm10300_vm0, %v6027_v3  ;;  %v3796_v22 = vpop.f32.mrb[75].mxu0 }
 0x573   : > { %3917 = vst.msk [vmem:[#allocation2 + $0x130] sm:$0xff] %vm10307_vm2, %v3796_v22  ;;  %v8472_v52 = vpop.f32.mrb[52].mxu1  ;;  %vm10313_vm2 = vmmov %vm10300_vm0 }
 0x574   : > { %4622 = vrot.lane.b32.xlu1 %v3584_v16, %s6231_s22  ;;  %v8475_v24 = vpop.f32.mrb[53].mxu1 }
 0x575   : > { %5033 = vrot.lane.b32.xlu0 %v4962_v9, %s6230_s21  ;;  %v8478_v23 = vpop.f32.mrb[54].mxu1 }
 0x576   : > { %10308 = vst [vmem:[#allocation16_spill] sm:$0xff] %v8478_v23  ;;  %v8480_v0 = vpop.f32.mrb[55].mxu1 }
 0x577   : > { %v4965_v16 = vld [vmem:[#allocation2 + $0x148] sm:$0xff] }
 0x578   : > { %4291 = vrot.lane.b32.xlu1 %v3590_v26, %s6230_s21  ;;  %v4963_v51 = vld [vmem:[#allocation2 + $0x118] sm:$0xff] }
 0x579   : > { %5029 = vrot.lane.b32.xlu0 %v4960_v44, %s6230_s21  ;;  %v4966_v14 = vld [vmem:[#allocation2 + $0x160] sm:$0xff] }
 0x57a   : > { %v4964_v1 = vld [vmem:[#allocation2 + $0x130] sm:$0xff] }
 0x57b   : > { %v8484_v18 = vpop.f32.mrb[56].mxu1  ;;  %v6030_v54 = vpop.f32.mrb[76].mxu0 }
 0x57c   : > { %10309 = vst [vmem:[#allocation23_spill] sm:$0xff] %v8484_v18  ;;  %3932 = vst.msk [vmem:[#allocation2 + $0x1a8] sm:$0xff] %vm10310_vm4, %v6030_v54  ;;  %4624 = vrot.lane.b32.xlu1 %v3590_v26, %s6231_s22  ;;  %v8488_v8 = vpop.f32.mrb[57].mxu1  ;;  %v3809_v48 = vpop.f32.mrb[77].mxu0 }
 0x57d   : > { %3926 = vst.msk [vmem:[#allocation2 + $0x178] sm:$0xff] %vm10311_vm1, %v3809_v48  ;;  %4097 = vrot.lane.b32.xlu0 %v8429_v43, %s6231_s22  ;;  %v8493_v53 = vpop.f32.mrb[58].mxu1  ;;  %v6031_v5 = vpop.f32.mrb[78].mxu0  ;;  %vm10316_vm4 = vmmov %vm10300_vm0 }
 0x57e   : > { %10312 = vst [vmem:[#allocation25_spill] sm:$0xff] %v8493_v53  ;;  %3935 = vst.msk [vmem:[#allocation2 + $0x1c0] sm:$0xff] %vm10300_vm0, %v6031_v5  ;;  %v8496_v33 = vpop.f32.mrb[59].mxu1  ;;  %v3812_v2 = vpop.f32.mrb[79].mxu0 }
 0x57f   : > { %3929 = vst.msk [vmem:[#allocation2 + $0x190] sm:$0xff] %vm10313_vm2, %v3812_v2  ;;  %vm10317_vm1 = vmmov %vm10300_vm0 }
 0x580   : > { %5039 = vrot.lane.b32.xlu1 %v4965_v16, %s6230_s21  ;;  %vm10319_vm2 = vmmov %vm10300_vm0 }
 0x581   : > { %4293 = vrot.lane.b32.xlu0 %v8435_v46, %s6230_s21 }
 0x583   : > { %v8502_v39 = vpop.f32.mrb[60].mxu1  ;;  %v4969_v9 = vld [vmem:[#allocation2 + $0x1a8] sm:$0xff] }
 0x584   : > { %10314 = vst [vmem:[#allocation20_spill] sm:$0xff] %v8502_v39  ;;  %4099 = vrot.lane.b32.xlu1 %v8433_v6, %s6231_s22  ;;  %v8506_v58 = vpop.f32.mrb[61].mxu1  ;;  %v4967_v2 = vld [vmem:[#allocation2 + $0x178] sm:$0xff] }
 0x585   : > { %4626 = vrot.lane.b32.xlu0 %v8435_v46, %s6231_s22  ;;  %v8510_v26 = vpop.f32.mrb[62].mxu1 }
 0x586   : > { %10315 = vst [vmem:[#allocation48_spill] sm:$0xff] %v8510_v26  ;;  %3933 = vst [vmem:[#allocation2 + $0x1b0] sm:$0xff] %v8510_v26  ;;  %v8513_v31 = vpop.f32.mrb[63].mxu1 }
 0x588   : > { %5035 = vrot.lane.b32.xlu1 %v4963_v51, %s6230_s21 }
 0x589   : > { %5041 = vrot.lane.b32.xlu0 %v4966_v14, %s6230_s21  ;;  %v4970_v14 = vld [vmem:[#allocation2 + $0x1c0] sm:$0xff] }
 0x58b   : > { %v8517_v20 = vpop.f32.mrb[64].mxu1  ;;  %v6034_v47 = vpop.f32.mrb[80].mxu0 }
 0x58c   : > { %3936 = vst [vmem:[#allocation2 + $0x1c8] sm:$0xff] %v8517_v20  ;;  %3944 = vst.msk [vmem:[#allocation2 + $0x208] sm:$0xff] %vm10316_vm4, %v6034_v47  ;;  %4295 = vrot.lane.b32.xlu1 %v8444_v40, %s6230_s21  ;;  %v8523_v46 = vpop.f32.mrb[65].mxu1  ;;  %v3825_v25 = vpop.f32.mrb[81].mxu0 }
 0x58d   : > { %3938 = vst.msk [vmem:[#allocation2 + $0x1d8] sm:$0xff] %vm10317_vm1, %v3825_v25  ;;  %5037 = vrot.lane.b32.xlu0 %v4964_v1, %s6230_s21  ;;  %v8527_v63 = vpop.f32.mrb[66].mxu1  ;;  %v6035_v42 = vpop.f32.mrb[82].mxu0  ;;  %vm10321_vm4 = vmmov %vm10300_vm0 }
 0x58e   : > { %10318 = vst [vmem:[#allocation49_spill] sm:$0xff] %v8527_v63  ;;  %3939 = vst [vmem:[#allocation2 + $0x1e0] sm:$0xff] %v8527_v63  ;;  %v8531_v17 = vpop.f32.mrb[67].mxu1  ;;  %v3828_v3 = vpop.f32.mrb[83].mxu0 }
 0x58f   : > { %3947 = vst.msk [vmem:[#allocation2 + $0x220] sm:$0xff] %vm10300_vm0, %v6035_v42  ;;  %vm10322_vm1 = vmmov %vm10300_vm0  ;;  %v4968_v42 = vld [vmem:[#allocation2 + $0x190] sm:$0xff] }
 0x590   : > { %3941 = vst.msk [vmem:[#allocation2 + $0x1f0] sm:$0xff] %vm10319_vm2, %v3828_v3  ;;  %4628 = vrot.lane.b32.xlu1 %v8444_v40, %s6231_s22  ;;  %vm10324_vm2 = vmmov %vm10300_vm0 }
 0x591   : > { %4101 = vrot.lane.b32.xlu0 %v8439_v57, %s6231_s22 }
 0x593   : > { %v8538_v22 = vpop.f32.mrb[68].mxu1 }
 0x594   : > { %3942 = vst [vmem:[#allocation2 + $0x1f8] sm:$0xff] %v8538_v22  ;;  %5047 = vrot.lane.b32.xlu1 %v4969_v9, %s6230_s21  ;;  %v8542_v44 = vpop.f32.mrb[69].mxu1  ;;  %v4971_v15 = vld [vmem:[#allocation2 + $0x1d8] sm:$0xff] }
 0x595   : > { %4297 = vrot.lane.b32.xlu0 %v8451_v21, %s6230_s21  ;;  %v8546_v54 = vpop.f32.mrb[70].mxu1 }
 0x596   : > { %10320 = vst [vmem:[#allocation50_spill] sm:$0xff] %v8546_v54  ;;  %3945 = vst [vmem:[#allocation2 + $0x210] sm:$0xff] %v8546_v54  ;;  %v8549_v40 = vpop.f32.mrb[71].mxu1  ;;  %v4974_v7 = vld [vmem:[#allocation2 + $0x220] sm:$0xff] }
 0x598   : > { %4103 = vrot.lane.b32.xlu1 %v8448_v4, %s6231_s22 }
 0x599   : > { %4630 = vrot.lane.b32.xlu0 %v8451_v21, %s6231_s22 }
 0x59b   : > { %v8555_v48 = vpop.f32.mrb[72].mxu1  ;;  %v6038_v5 = vpop.f32.mrb[84].mxu0 }
 0x59c   : > { %3948 = vst [vmem:[#allocation2 + $0x228] sm:$0xff] %v8555_v48  ;;  %3956 = vst.msk [vmem:[#allocation2 + $0x268] sm:$0xff] %vm10321_vm4, %v6038_v5  ;;  %5043 = vrot.lane.b32.xlu1 %v4967_v2, %s6230_s21  ;;  %v8560_v16 = vpop.f32.mrb[73].mxu1  ;;  %v3841_v51 = vpop.f32.mrb[85].mxu0 }
 0x59d   : > { %3950 = vst.msk [vmem:[#allocation2 + $0x238] sm:$0xff] %vm10322_vm1, %v3841_v51  ;;  %5049 = vrot.lane.b32.xlu0 %v4970_v14, %s6230_s21  ;;  %v8564_v47 = vpop.f32.mrb[74].mxu1  ;;  %v6039_v21 = vpop.f32.mrb[86].mxu0  ;;  %vm10326_vm4 = vmmov %vm10300_vm0 }
 0x59e   : > { %10323 = vst [vmem:[#allocation51_spill] sm:$0xff] %v8564_v47  ;;  %3951 = vst [vmem:[#allocation2 + $0x240] sm:$0xff] %v8564_v47  ;;  %v8568_v25 = vpop.f32.mrb[75].mxu1  ;;  %v3844_v1 = vpop.f32.mrb[87].mxu0 }
 0x59f   : > { %3959 = vst.msk [vmem:[#allocation2 + $0x280] sm:$0xff] %vm10300_vm0, %v6039_v21  ;;  %vm10327_vm1 = vmmov %vm10300_vm0 }
 0x5a0   : > { %3953 = vst.msk [vmem:[#allocation2 + $0x250] sm:$0xff] %vm10324_vm2, %v3844_v1  ;;  %4299 = vrot.lane.b32.xlu1 %v8458_v13, %s6230_s21  ;;  %vm10329_vm2 = vmmov %vm10300_vm0 }
 0x5a1   : > { %5045 = vrot.lane.b32.xlu0 %v4968_v42, %s6230_s21 }
 0x5a3   : > { %v8574_v3 = vpop.f32.mrb[76].mxu1  ;;  %v6042_v9 = vpop.f32.mrb[88].mxu0 }
 0x5a4   : > { %10325 = vst [vmem:[#allocation52_spill] sm:$0xff] %v8574_v3  ;;  %3954 = vst [vmem:[#allocation2 + $0x258] sm:$0xff] %v8574_v3  ;;  %4632 = vrot.lane.b32.xlu1 %v8458_v13, %s6231_s22  ;;  %v8580_v5 = vpop.f32.mrb[77].mxu1  ;;  %v3857_v2 = vpop.f32.mrb[89].mxu0  ;;  %v4973_v13 = vld [vmem:[#allocation2 + $0x208] sm:$0xff]  ;;  %v4975_v38 = vld [vmem:[#allocation2 + $0x238] sm:$0xff] }
 0x5a5   : > { %3968 = vst.msk [vmem:[#allocation2 + $0x2c8] sm:$0xff] %vm10326_vm4, %v6042_v9  ;;  %4105 = vrot.lane.b32.xlu0 %v8455_v41, %s6231_s22  ;;  %v8585_v51 = vpop.f32.mrb[78].mxu1  ;;  %v6043_v14 = vpop.f32.mrb[90].mxu0  ;;  %vm10331_vm4 = vmmov %vm10300_vm0 }
 0x5a6   : > { %3962 = vst.msk [vmem:[#allocation2 + $0x298] sm:$0xff] %vm10327_vm1, %v3857_v2  ;;  %10328 = vst [vmem:[#allocation53_spill] sm:$0xff] %v8585_v51  ;;  %v8589_v21 = vpop.f32.mrb[79].mxu1  ;;  %v3860_v1 = vpop.f32.mrb[91].mxu0  ;;  %v4978_v61 = vld [vmem:[#allocation2 + $0x280] sm:$0xff] }
 0x5a7   : > { %3957 = vst [vmem:[#allocation2 + $0x270] sm:$0xff] %v8585_v51  ;;  %3971 = vst.msk [vmem:[#allocation2 + $0x2e0] sm:$0xff] %vm10300_vm0, %v6043_v14 }
 0x5a8   : > { %3965 = vst.msk [vmem:[#allocation2 + $0x2b0] sm:$0xff] %vm10329_vm2, %v3860_v1  ;;  %5055 = vrot.lane.b32.xlu1 %v4973_v13, %s6230_s21  ;;  %vm10332_vm1 = vmmov %vm10300_vm0 }
 0x5a9   : > { %4301 = vrot.lane.b32.xlu0 %v8463_v62, %s6230_s21  ;;  %vm10334_vm2 = vmmov %vm10300_vm0 }
 0x5ab   : > { %v8595_v42 = vpop.f32.mrb[80].mxu1  ;;  %v6046_v9 = vpop.f32.mrb[92].mxu0 }
 0x5ac   : > { %10330 = vst [vmem:[#allocation54_spill] sm:$0xff] %v8595_v42  ;;  %3960 = vst [vmem:[#allocation2 + $0x288] sm:$0xff] %v8595_v42  ;;  %4107 = vrot.lane.b32.xlu1 %v8461_v11, %s6231_s22  ;;  %v8601_v2 = vpop.f32.mrb[81].mxu1  ;;  %v3873_v14 = vpop.f32.mrb[93].mxu0 }
 0x5ad   : > { %3980 = vst.msk [vmem:[#allocation2 + $0x328] sm:$0xff] %vm10331_vm4, %v6046_v9  ;;  %4634 = vrot.lane.b32.xlu0 %v8463_v62, %s6231_s22  ;;  %v8606_v1 = vpop.f32.mrb[82].mxu1  ;;  %v6047_v13 = vpop.f32.mrb[94].mxu0  ;;  %vm10345_vm4 = vcmask 1046528  }
 0x5ae   : > { %3974 = vst.msk [vmem:[#allocation2 + $0x2f8] sm:$0xff] %vm10332_vm1, %v3873_v14  ;;  %10333 = vst [vmem:[#allocation55_spill] sm:$0xff] %v8606_v1  ;;  %v8610_v29 = vpop.f32.mrb[83].mxu1  ;;  %v3876_v9 = vpop.f32.mrb[95].mxu0  ;;  %v4982_v34 = vld [vmem:[#allocation2 + $0x2e0] sm:$0xff] }
 0x5af   : > { %3963 = vst [vmem:[#allocation2 + $0x2a0] sm:$0xff] %v8606_v1  ;;  %3983 = vst.msk [vmem:[#allocation2 + $0x340] sm:$0xff] %vm10300_vm0, %v6047_v13  ;;  %v4972_v13 = vld [vmem:[#allocation2 + $0x1f0] sm:$0xff]  ;;  %vm10349_vm0 = vcmask 1040384  }
 0x5b0   : > { %3977 = vst.msk [vmem:[#allocation2 + $0x310] sm:$0xff] %vm10334_vm2, %v3876_v9  ;;  %5051 = vrot.lane.b32.xlu1 %v4971_v15, %s6230_s21  ;;  %vm10347_vm1 = vmmov %vm10345_vm4 }
 0x5b1   : > { %5057 = vrot.lane.b32.xlu0 %v4974_v7, %s6230_s21  ;;  %vm10352_vm2 = vmmov %vm10347_vm1 }
 0x5b3   : > { %v8615_v14 = vpop.f32.mrb[84].mxu1 }
 0x5b4   : > { %10335 = vst [vmem:[#allocation56_spill] sm:$0xff] %v8615_v14  ;;  %3966 = vst [vmem:[#allocation2 + $0x2b8] sm:$0xff] %v8615_v14  ;;  %4303 = vrot.lane.b32.xlu1 %v8475_v24, %s6230_s21  ;;  %v8620_v62 = vpop.f32.mrb[85].mxu1 }
 0x5b5   : > { %5053 = vrot.lane.b32.xlu0 %v4972_v13, %s6230_s21  ;;  %v8623_v32 = vpop.f32.mrb[86].mxu1  ;;  %v4977_v13 = vld [vmem:[#allocation2 + $0x268] sm:$0xff] }
 0x5b6   : > { %10336 = vst [vmem:[#allocation57_spill] sm:$0xff] %v8623_v32  ;;  %3969 = vst [vmem:[#allocation2 + $0x2d0] sm:$0xff] %v8623_v32  ;;  %v8626_v15 = vpop.f32.mrb[87].mxu1 }
 0x5b8   : > { %4636 = vrot.lane.b32.xlu1 %v8475_v24, %s6231_s22 }
 0x5b9   : > { %4109 = vrot.lane.b32.xlu0 %v8472_v52, %s6231_s22 }
 0x5bb   : > { %v8632_v7 = vpop.f32.mrb[88].mxu1 }
 0x5bc   : > { %3972 = vst [vmem:[#allocation2 + $0x2e8] sm:$0xff] %v8632_v7  ;;  %4111 = vrot.lane.b32.xlu1 %v8478_v23, %s6231_s22  ;;  %v8637_v9 = vpop.f32.mrb[89].mxu1 }
 0x5bd   : > { %5063 = vrot.lane.b32.xlu0 %v4977_v13, %s6230_s21  ;;  %v8640_v49 = vpop.f32.mrb[90].mxu1 }
 0x5be   : > { %3975 = vst [vmem:[#allocation2 + $0x300] sm:$0xff] %v8640_v49  ;;  %v8643_v24 = vpop.f32.mrb[91].mxu1  ;;  %v8655_v45 = vpop.permute.xlu0 %4089 }
 0x5bf   : > { %10337 = vst [vmem:[#allocation58_spill] sm:$0xff] %v8655_v45  ;;  %v4976_v45 = vld [vmem:[#allocation2 + $0x250] sm:$0xff] }
 0x5c0   : > { %4307 = vrot.lane.b32.xlu1 %v8488_v8, %s6230_s21 }
 0x5c1   : > { %5059 = vrot.lane.b32.xlu0 %v4975_v38, %s6230_s21 }
 0x5c2   : > { %v8667_v38 = vpop.permute.xlu0 %4616 }
 0x5c3   : > { %v8648_v59 = vpop.f32.mrb[92].mxu1 }
 0x5c4   : > { %3978 = vst [vmem:[#allocation2 + $0x318] sm:$0xff] %v8648_v59  ;;  %4640 = vrot.lane.b32.xlu1 %v8488_v8, %s6231_s22  ;;  %v8653_v13 = vpop.f32.mrb[93].mxu1 }
 0x5c5   : > { %4305 = vrot.lane.b32.xlu0 %v8480_v0, %s6230_s21  ;;  %v3722_v35 = vpop.f32.mrb[94].mxu1 }
 0x5c6   : > { %3981 = vst [vmem:[#allocation2 + $0x330] sm:$0xff] %v3722_v35  ;;  %v8659_v55 = vpop.f32.mrb[95].mxu1 }
 0x5c7   : > { %v8661_v36 = vpop.permute.xlu1 %4949 }
 0x5c8   : > { %4115 = vrot.lane.b32.xlu1 %v8493_v53, %s6231_s22 }
 0x5c9   : > { %4638 = vrot.lane.b32.xlu0 %v8480_v0, %s6231_s22 }
 0x5cb   : > { %v8669_v8 = vpop.permute.xlu1 %4091 }
 0x5cc   : > { %10338 = vst [vmem:[#allocation59_spill] sm:$0xff] %v8669_v8  ;;  %4311 = vrot.lane.b32.xlu1 %v8506_v58, %s6230_s21  ;;  %v4981_v8 = vld [vmem:[#allocation2 + $0x2c8] sm:$0xff] }
 0x5cd   : > { %5065 = vrot.lane.b32.xlu0 %v4978_v61, %s6230_s21 }
 0x5ce   : > { %v8674_v35 = vpop.permute.xlu0 %5023 }
 0x5cf   : > { %v8676_v19 = vpop.permute.xlu1 %4618 }
 0x5d0   : > { %4644 = vrot.lane.b32.xlu1 %v8506_v58, %s6231_s22 }
 0x5d1   : > { %5061 = vrot.lane.b32.xlu0 %v4976_v45, %s6230_s21 }
 0x5d2   : > { %v8681_v0 = vpop.permute.xlu0 %4285 }
 0x5d3   : > { %10339 = vst [vmem:[#allocation60_spill] sm:$0xff] %v8681_v0  ;;  %v8683_v60 = vpop.permute.xlu1 %5025  ;;  %v4979_v0 = vld [vmem:[#allocation2 + $0x298] sm:$0xff] }
 0x5d4   : > { %4119 = vrot.lane.b32.xlu1 %v8510_v26, %s6231_s22 }
 0x5d5   : > { %4113 = vrot.lane.b32.xlu0 %v8484_v18, %s6231_s22 }
 0x5d6   : > { %v4094_v61 = vpop.permute.xlu0 %4093 }
 0x5d7   : > { %v8692_v58 = vpop.permute.xlu1 %4287 }
 0x5d8   : > { %4315 = vrot.lane.b32.xlu1 %v8523_v46, %s6230_s21  ;;  %10340 = vst [vmem:[#allocation61_spill] sm:$0xff] %v8692_v58 }
 0x5d9   : > { %5071 = vrot.lane.b32.xlu0 %v4981_v8, %s6230_s21 }
 0x5da   : > { %v4621_v45 = vpop.permute.xlu0 %4620 }
 0x5dc   : > { %4648 = vrot.lane.b32.xlu1 %v8523_v46, %s6231_s22 }
 0x5dd   : > { %5067 = vrot.lane.b32.xlu0 %v4979_v0, %s6230_s21  ;;  %v8708_v0 = vadd.f32 %v4621_v45, %v8413_v10  ;;  %v4980_v45 = vld [vmem:[#allocation2 + $0x2b0] sm:$0xff] }
 0x5de   : > { %v5032_v28 = vpop.permute.xlu1 %5031 }
 0x5df   : > { %v5028_v37 = vpop.permute.xlu0 %5027  ;;  %10342 = vst [vmem:[#allocation63_spill] sm:$0xff] %v8708_v0 }
 0x5e0   : > { %4123 = vrot.lane.b32.xlu1 %v8527_v63, %s6231_s22  ;;  %v8714_v26 = vadd.f32 %v5028_v37, %v8708_v0  ;;  %v4189_v0 = vadd.f32 %v4094_v61, %v8413_v10 }
 0x5e1   : > { %4309 = vrot.lane.b32.xlu0 %v8496_v33, %s6230_s21 }
 0x5e2   : > { %v4096_v50 = vpop.permute.xlu1 %4095 }
 0x5e3   : > { %v8701_v30 = vpop.permute.xlu0 %4289 }
 0x5e4   : > { %10341 = vst [vmem:[#allocation62_spill] sm:$0xff] %v8701_v30  ;;  %4652 = vrot.lane.b32.xlu1 %v8542_v44, %s6231_s22 }
 0x5e5   : > { %4642 = vrot.lane.b32.xlu0 %v8496_v33, %s6231_s22 }
 0x5e6   : > { %v4623_v46 = vpop.permute.xlu1 %4622 }
 0x5e7   : > { %v5034_v8 = vpop.permute.xlu0 %5033  ;;  %v8717_v53 = vadd.f32 %v4623_v46, %v8417_v27 }
 0x5e8   : > { %4319 = vrot.lane.b32.xlu1 %v8542_v44, %s6230_s21  ;;  %v10043_v44 = vrot.slane %v8714_v26, 1 }
 0x5e9   : > { %5073 = vrot.lane.b32.xlu0 %v4982_v34, %s6230_s21  ;;  %10343 = vst [vmem:[#allocation64_spill] sm:$0xff] %v8717_v53 }
 0x5ea   : > { %v8719_v63 = vpop.permute.xlu1 %4291 }
 0x5eb   : > { %v5030_v33 = vpop.permute.xlu0 %5029 }
 0x5ec   : > { %v5125_v23 = vadd.f32 %v5030_v33, %v8717_v53  ;;  %4127 = vrot.lane.b32.xlu1 %v8546_v54, %s6231_s22 }
 0x5ed   : > { %5069 = vrot.lane.b32.xlu0 %v4980_v45, %s6230_s21 }
 0x5ee   : > { %v5193_v34 = vrot.slane %v5125_v23, 1  ;;  %v4625_v18 = vpop.permute.xlu1 %4624  ;;  %v4190_v23 = vadd.f32 %v4096_v50, %v8417_v27 }
 0x5ef   : > { %v8727_v37 = vadd.f32 %v4625_v18, %v8420_v56  ;;  %v4098_v46 = vpop.permute.xlu0 %4097  ;;  %v8742_v18 = vadd.f32 %v8719_v63, %v4189_v0 }
 0x5f0   : > { %4654 = vrot.lane.b32.xlu1 %v8549_v40, %s6231_s22  ;;  %v8735_v33 = vsel %vm10345_vm4, %v10043_v44, %v5193_v34  ;;  %v4985_v44 = vld [vmem:[#allocation2 + $0x328] sm:$0xff]  ;;  %vm10354_vm4 = vmmov %vm10349_vm0 }
 0x5f1   : > { %10344 = vst [vmem:[#allocation65_spill] sm:$0xff] %v8727_v37  ;;  %v5126_v45 = vadd.f32 %v5032_v28, %v8727_v37  ;;  %4117 = vrot.lane.b32.xlu0 %v8502_v39, %s6231_s22  ;;  %10346 = vst [vmem:[#allocation66_spill] sm:$0xff] %v8742_v18  ;;  %v10047_v50 = vrot.slane %v8742_v18, 7 }
 0x5f2   : > { %v8744_v54 = vpop.permute.xlu1 %5039 }
 0x5f3   : > { %v5195_v10 = vrot.slane %v5126_v45, 1  ;;  %v8746_v61 = vpop.permute.xlu0 %4293 }
 0x5f4   : > { %v4388_v53 = vadd.f32 %v8746_v61, %v4190_v23  ;;  %4656 = vrot.lane.b32.xlu1 %v8560_v16, %s6231_s22  ;;  %v4983_v23 = vld [vmem:[#allocation2 + $0x2f8] sm:$0xff] }
 0x5f5   : > { %5079 = vrot.lane.b32.xlu0 %v4985_v44, %s6230_s21  ;;  %v8753_v28 = vsel %vm10347_vm1, %v5193_v34, %v5195_v10 }
 0x5f6   : > { %10348 = vst [vmem:[#allocation67_spill] sm:$0xff] %v8753_v28  ;;  %v4457_v27 = vrot.slane %v4388_v53, 7  ;;  %v4100_v0 = vpop.permute.xlu1 %4099 }
 0x5f7   : > { %v4627_v39 = vpop.permute.xlu0 %4626 }
 0x5f8   : > { %v8757_v45 = vadd.f32 %v4627_v39, %v8424_v12  ;;  %4323 = vrot.lane.b32.xlu1 %v8560_v16, %s6230_s21  ;;  %v8764_v37 = vsel %vm10349_vm0, %v10047_v50, %v4457_v27  ;;  %v4191_v39 = vadd.f32 %v4098_v46, %v8420_v56 }
 0x5f9   : > { %10350 = vst [vmem:[#allocation68_spill] sm:$0xff] %v8764_v37  ;;  %5075 = vrot.lane.b32.xlu0 %v4983_v23, %s6230_s21 }
 0x5fa   : > { %v5127_v44 = vadd.f32 %v5034_v8, %v8757_v45  ;;  %v5036_v34 = vpop.permute.xlu1 %5035 }
 0x5fb   : > { %v8768_v53 = vpop.permute.xlu0 %5041 }
 0x5fc   : > { %v5197_v28 = vrot.slane %v5127_v44, 1  ;;  %4131 = vrot.lane.b32.xlu1 %v8564_v47, %s6231_s22 }
 0x5fd   : > { %4313 = vrot.lane.b32.xlu0 %v8513_v31, %s6230_s21 }
 0x5fe   : > { %v8775_v16 = vpop.permute.xlu1 %4295  ;;  %v8778_v50 = vsel %vm10352_vm2, %v5195_v10, %v5197_v28  ;;  %v4986_v10 = vld [vmem:[#allocation2 + $0x340] sm:$0xff]  ;;  %vm10358_vm2 = vmmov %vm10347_vm1 }
 0x5ff   : > { %10351 = vst [vmem:[#allocation69_spill] sm:$0xff] %v8775_v16  ;;  %v4389_v23 = vadd.f32 %v8775_v16, %v4191_v39  ;;  %v5038_v8 = vpop.permute.xlu0 %5037 }
 0x600   : > { %4658 = vrot.lane.b32.xlu1 %v8568_v25, %s6231_s22 }
 0x601   : > { %v4459_v44 = vrot.slane %v4389_v23, 7  ;;  %4646 = vrot.lane.b32.xlu0 %v8513_v31, %s6231_s22  ;;  %v4192_v23 = vadd.f32 %v4100_v0, %v8424_v12 }
 0x602   : > { %v4629_v37 = vpop.permute.xlu1 %4628 }
 0x603   : > { %v8786_v56 = vadd.f32 %v4629_v37, %v8429_v43  ;;  %v4102_v46 = vpop.permute.xlu0 %4101  ;;  %v8789_v18 = vsel %vm10354_vm4, %v4457_v27, %v4459_v44  ;;  %v4984_v27 = vld [vmem:[#allocation2 + $0x310] sm:$0xff]  ;;  %vm10359_vm4 = vmmov %vm10349_vm0 }
 0x604   : > { %10355 = vst [vmem:[#allocation71_spill] sm:$0xff] %v8789_v18  ;;  %4660 = vrot.lane.b32.xlu1 %v8580_v5, %s6231_s22 }
 0x605   : > { %10353 = vst [vmem:[#allocation70_spill] sm:$0xff] %v8786_v56  ;;  %v5128_v39 = vadd.f32 %v5036_v34, %v8786_v56  ;;  %5081 = vrot.lane.b32.xlu0 %v4986_v10, %s6230_s21 }
 0x606   : > { %v8796_v47 = vpop.permute.xlu1 %5047 }
 0x607   : > { %v5199_v31 = vrot.slane %v5128_v39, 1  ;;  %v8798_v16 = vpop.permute.xlu0 %4297 }
 0x608   : > { %v4390_v37 = vadd.f32 %v8798_v16, %v4192_v23  ;;  %4327 = vrot.lane.b32.xlu1 %v8580_v5, %s6230_s21 }
 0x609   : > { %5077 = vrot.lane.b32.xlu0 %v4984_v27, %s6230_s21  ;;  %v8805_v18 = vsel %vm10347_vm1, %v5197_v28, %v5199_v31 }
 0x60a   : > { %v4461_v34 = vrot.slane %v4390_v37, 7  ;;  %v4104_v10 = vpop.permute.xlu1 %4103 }
 0x60b   : > { %v4631_v56 = vpop.permute.xlu0 %4630 }
 0x60c   : > { %v8808_v12 = vadd.f32 %v4631_v56, %v8433_v6  ;;  %4135 = vrot.lane.b32.xlu1 %v8585_v51, %s6231_s22  ;;  %v8813_v0 = vsel %vm10349_vm0, %v4459_v44, %v4461_v34  ;;  %v4193_v56 = vadd.f32 %v4102_v46, %v8429_v43 }
 0x60d   : > { %10356 = vst [vmem:[#allocation72_spill] sm:$0xff] %v8813_v0  ;;  %4121 = vrot.lane.b32.xlu0 %v8517_v20, %s6231_s22 }
 0x60e   : > { %v5129_v5 = vadd.f32 %v5038_v8, %v8808_v12  ;;  %v5044_v39 = vpop.permute.xlu1 %5043 }
 0x60f   : > { %v8818_v28 = vpop.permute.xlu0 %5049 }
 0x610   : > { %v5201_v23 = vrot.slane %v5129_v5, 1  ;;  %4662 = vrot.lane.b32.xlu1 %v8589_v21, %s6231_s22 }
 0x611   : > { %4317 = vrot.lane.b32.xlu0 %v8531_v17, %s6230_s21 }
 0x612   : > { %v8825_v37 = vpop.permute.xlu1 %4299  ;;  %v8828_v44 = vsel %vm10358_vm2, %v5199_v31, %v5201_v23  ;;  %vm10363_vm2 = vmmov %vm10347_vm1 }
 0x613   : > { %10357 = vst [vmem:[#allocation73_spill] sm:$0xff] %v8825_v37  ;;  %v4391_v27 = vadd.f32 %v8825_v37, %v4193_v56  ;;  %v8831_v8 = vpop.permute.xlu0 %5045  ;;  %v4194_v56 = vadd.f32 %v4104_v10, %v8433_v6 }
 0x614   : > { %4664 = vrot.lane.b32.xlu1 %v8601_v2, %s6231_s22 }
 0x615   : > { %v4463_v5 = vrot.slane %v4391_v27, 7  ;;  %4650 = vrot.lane.b32.xlu0 %v8531_v17, %s6231_s22 }
 0x616   : > { %v4633_v43 = vpop.permute.xlu1 %4632 }
 0x617   : > { %v8838_v46 = vadd.f32 %v4633_v43, %v8439_v57  ;;  %v4106_v0 = vpop.permute.xlu0 %4105  ;;  %v8841_v51 = vsel %vm10359_vm4, %v4461_v34, %v4463_v5  ;;  %vm10364_vm4 = vmmov %vm10349_vm0 }
 0x618   : > { %10360 = vst [vmem:[#allocation74_spill] sm:$0xff] %v8841_v51  ;;  %4331 = vrot.lane.b32.xlu1 %v8601_v2, %s6230_s21 }
 0x619   : > { %v5130_v31 = vadd.f32 %v8744_v54, %v8838_v46  ;;  %4125 = vrot.lane.b32.xlu0 %v8538_v22, %s6231_s22 }
 0x61a   : > { %v8850_v17 = vpop.permute.xlu1 %5055 }
 0x61b   : > { %v5203_v27 = vrot.slane %v5130_v31, 1  ;;  %v8852_v43 = vpop.permute.xlu0 %4301 }
 0x61c   : > { %v4392_v37 = vadd.f32 %v8852_v43, %v4194_v56  ;;  %4139 = vrot.lane.b32.xlu1 %v8606_v1, %s6231_s22 }
 0x61d   : > { %4321 = vrot.lane.b32.xlu0 %v8549_v40, %s6230_s21  ;;  %v8860_v54 = vsel %vm10347_vm1, %v5201_v23, %v5203_v27 }
 0x61e   : > { %v4465_v2 = vrot.slane %v4392_v37, 7  ;;  %v4108_v34 = vpop.permute.xlu1 %4107 }
 0x61f   : > { %v4635_v51 = vpop.permute.xlu0 %4634 }
 0x620   : > { %v8863_v6 = vadd.f32 %v4635_v51, %v8448_v4  ;;  %4666 = vrot.lane.b32.xlu1 %v8610_v29, %s6231_s22  ;;  %v8868_v10 = vsel %vm10349_vm0, %v4463_v5, %v4465_v2  ;;  %v4195_v51 = vadd.f32 %v4106_v0, %v8439_v57 }
 0x621   : > { %10361 = vst [vmem:[#allocation75_spill] sm:$0xff] %v8868_v10  ;;  %4129 = vrot.lane.b32.xlu0 %v8555_v48, %s6231_s22 }
 0x622   : > { %v5131_v40 = vadd.f32 %v8768_v53, %v8863_v6  ;;  %v8874_v23 = vpop.permute.xlu1 %5051 }
 0x623   : > { %v8876_v37 = vpop.permute.xlu0 %5057 }
 0x624   : > { %10362 = vst [vmem:[#allocation76_spill] sm:$0xff] %v8876_v37  ;;  %v5205_v31 = vrot.slane %v5131_v40, 1  ;;  %4668 = vrot.lane.b32.xlu1 %v8620_v62, %s6231_s22 }
 0x625   : > { %4325 = vrot.lane.b32.xlu0 %v8568_v25, %s6230_s21 }
 0x626   : > { %v8883_v5 = vpop.permute.xlu1 %4303  ;;  %v8886_v56 = vsel %vm10363_vm2, %v5203_v27, %v5205_v31  ;;  %vm10367_vm2 = vmmov %vm10349_vm0 }
 0x627   : > { %v4393_v53 = vadd.f32 %v8883_v5, %v4195_v51  ;;  %v8889_v10 = vpop.permute.xlu0 %5053 }
 0x628   : > { %4335 = vrot.lane.b32.xlu1 %v8620_v62, %s6230_s21 }
 0x629   : > { %v4467_v40 = vrot.slane %v4393_v53, 7  ;;  %4133 = vrot.lane.b32.xlu0 %v8574_v3, %s6231_s22 }
 0x62a   : > { %v4637_v57 = vpop.permute.xlu1 %4636 }
 0x62b   : > { %v8896_v0 = vadd.f32 %v4637_v57, %v8455_v41  ;;  %v4110_v25 = vpop.permute.xlu0 %4109  ;;  %v8899_v1 = vsel %vm10364_vm4, %v4465_v2, %v4467_v40  ;;  %vm10369_vm4 = vmmov %vm10347_vm1 }
 0x62c   : > { %10365 = vst [vmem:[#allocation77_spill] sm:$0xff] %v8899_v1  ;;  %4143 = vrot.lane.b32.xlu1 %v8623_v32, %s6231_s22 }
 0x62d   : > { %v5132_v27 = vadd.f32 %v5044_v39, %v8896_v0  ;;  %4329 = vrot.lane.b32.xlu0 %v8589_v21, %s6230_s21  ;;  %v4197_v21 = vadd.f32 %v4110_v25, %v8455_v41 }
 0x62e   : > { %v8906_v62 = vpop.permute.xlu1 %4111 }
 0x62f   : > { %v5207_v51 = vrot.slane %v5132_v27, 1  ;;  %v8908_v53 = vpop.permute.xlu0 %5063  ;;  %v4196_v27 = vadd.f32 %v4108_v34, %v8448_v4 }
 0x630   : > { %4670 = vrot.lane.b32.xlu1 %v8626_v15, %s6231_s22 }
 0x631   : > { %4137 = vrot.lane.b32.xlu0 %v8595_v42, %s6231_s22  ;;  %v8915_v2 = vsel %vm10347_vm1, %v5205_v31, %v5207_v51 }
 0x632   : > { %v8917_v57 = vpop.permute.xlu1 %4307 }
 0x633   : > { %v8919_v39 = vpop.permute.xlu0 %5059  ;;  %v8928_v1 = vadd.f32 %v8917_v57, %v4197_v21 }
 0x634   : > { %4672 = vrot.lane.b32.xlu1 %v8637_v9, %s6231_s22 }
 0x635   : > { %4333 = vrot.lane.b32.xlu0 %v8610_v29, %s6230_s21  ;;  %v10057_v29 = vrot.slane %v8928_v1, 7 }
 0x636   : > { %v4641_v32 = vpop.permute.xlu1 %4640 }
 0x637   : > { %v8930_v31 = vpop.permute.xlu0 %4305  ;;  %v8933_v42 = vadd.f32 %v4641_v32, %v8472_v52 }
 0x638   : > { %v4394_v37 = vadd.f32 %v8930_v31, %v4196_v27  ;;  %4339 = vrot.lane.b32.xlu1 %v8637_v9, %s6230_s21 }
 0x639   : > { %4141 = vrot.lane.b32.xlu0 %v8615_v14, %s6231_s22  ;;  %v8945_v25 = vadd.f32 %v8796_v47, %v8933_v42 }
 0x63a   : > { %v4469_v4 = vrot.slane %v4394_v37, 7  ;;  %v8941_v41 = vpop.permute.xlu1 %4115 }
 0x63b   : > { %v4639_v34 = vpop.permute.xlu0 %4638 }
 0x63c   : > { %v8948_v32 = vadd.f32 %v4639_v34, %v8461_v11  ;;  %4147 = vrot.lane.b32.xlu1 %v8640_v49, %s6231_s22  ;;  %v8953_v9 = vsel %vm10349_vm0, %v4467_v40, %v4469_v4  ;;  %v8958_v37 = vsel %vm10367_vm2, %v4469_v4, %v10057_v29  ;;  %v10058_v49 = vrot.slane %v8945_v25, 1  ;;  %v8987_v29 = vld [vmem:[#allocation2 + $0x360] sm:$0xff]  ;;  %vm10370_vm0 = vmmov %vm10347_vm1 }
 0x63d   : > { %10366 = vst [vmem:[#allocation78_spill] sm:$0xff] %v8953_v9  ;;  %10368 = vst [vmem:[#allocation79_spill] sm:$0xff] %v8958_v37  ;;  %4337 = vrot.lane.b32.xlu0 %v8626_v15, %s6230_s21 }
 0x63e   : > { %v5133_v47 = vadd.f32 %v8831_v8, %v8948_v32  ;;  %v8964_v21 = vpop.permute.xlu1 %4311  ;;  %vm10374_vm2 = vmmov %vm10370_vm0 }
 0x63f   : > { %v8966_v27 = vpop.permute.xlu0 %5065 }
 0x640   : > { %v5209_v34 = vrot.slane %v5133_v47, 1  ;;  %4674 = vrot.lane.b32.xlu1 %v8643_v24, %s6231_s22  ;;  %v4941_v47 = vld [vmem:[#allocation2 + $0x18] sm:$0xfe] }
 0x641   : > { %4145 = vrot.lane.b32.xlu0 %v8632_v7, %s6231_s22  ;;  %v4713_v7 = vadd.f32 %v8987_v29, %v8676_v19  ;;  %v4053_v19 = vld [vmem:[#allocation2 + $0x330] sm:$0x7f] }
 0x642   : > { %v4645_v40 = vpop.permute.xlu1 %4644  ;;  %v8974_v4 = vsel %vm10369_vm4, %v5207_v51, %v5209_v34  ;;  %v8979_v15 = vsel %vm10347_vm1, %v5209_v34, %v10058_v49  ;;  %v4955_v34 = vadd.f32 %v8661_v36, %v4941_v47  ;;  %vm10377_vm4 = vcmask 1040384  }
 0x643   : > { %v8981_v8 = vpop.permute.xlu0 %5061  ;;  %v5123_v49 = vadd.f32 %v8683_v60, %v4713_v7  ;;  %vm10378_vm1 = vmmov %vm10377_vm4 }
 0x644   : > { %4676 = vrot.lane.b32.xlu1 %v8653_v13, %s6231_s22 }
 0x645   : > { %4341 = vrot.lane.b32.xlu0 %v8643_v24, %s6230_s21  ;;  %v5122_v24 = vadd.f32 %v8674_v35, %v4955_v34  ;;  %v5189_v3 = vrot.slane %v5123_v49, 1  ;;  %v4712_v35 = vadd.f32 %v8987_v29, %v8667_v38  ;;  %v4750_v49 = vadd.f32 %v4713_v7, %v8701_v30 }
 0x646   : > { %v8991_v51 = vpop.permute.xlu1 %4119  ;;  %v4198_v34 = vadd.f32 %v8906_v62, %v8461_v11  ;;  %v10372_v11 = vld [vmem:[#allocation63_spill] sm:$0xff] }
 0x647   : > { %v4114_v9 = vpop.permute.xlu0 %4113  ;;  %v5188_v36 = vrot.slane %v5122_v24, 1  ;;  %v4749_v24 = vadd.f32 %v4712_v35, %v8692_v58  ;;  %v4751_v62 = vadd.f32 %v10372_v11, %v8719_v63  ;;  %v10373_v35 = vrot.slane %v8714_v26, 1 }
 0x648   : > { %4343 = vrot.lane.b32.xlu1 %v8653_v13, %s6230_s21  ;;  %v4199_v60 = vadd.f32 %v4114_v9, %v8472_v52  ;;  %v10376_v63 = vrot.slane %v8928_v1, 7 }
 0x649   : > { %4149 = vrot.lane.b32.xlu0 %v8648_v59, %s6231_s22  ;;  %v5190_v59 = vsel %vm10370_vm0, %v5188_v36, %v5189_v3  ;;  %v5192_v58 = vsel %vm10374_vm2, %v5189_v3, %v10373_v35  ;;  %v10379_v3 = vld [vmem:[#allocation64_spill] sm:$0xff]  ;;  %vm10381_vm2 = vmmov %vm10370_vm0 }
 0x64a   : > { %v9000_v37 = vpop.permute.xlu1 %4315  ;;  %v9022_v52 = vadd.f32 %v8964_v21, %v4199_v60 }
 0x64b   : > { %v9002_v14 = vpop.permute.xlu0 %5071 }
 0x64c   : > { %4151 = vrot.lane.b32.xlu1 %v4053_v19, %s6231_s22  ;;  %v10371_v19 = vld [vmem:[#allocation23_spill] sm:$0xff]  ;;  %v4475_v7 = vrot.slane %v9022_v52, 7 }
 0x64d   : > { %4345 = vrot.lane.b32.xlu0 %v8659_v55, %s6230_s21  ;;  %v9030_v36 = vadd.f32 %v4645_v40, %v10371_v19 }
 0x64e   : > { %v9008_v13 = vpop.permute.xlu1 %4648 }
 0x64f   : > { %v9010_v47 = vpop.permute.xlu0 %5067  ;;  %v9043_v40 = vadd.f32 %v8874_v23, %v9030_v36  ;;  %v4752_v23 = vadd.f32 %v10379_v3, %v8746_v61  ;;  %v10382_v3 = vld [vmem:[#allocation67_spill] sm:$0xff] }
 0x650   : > { %4678 = vrot.lane.b32.xlu1 %v8659_v55, %s6231_s22  ;;  %s9868_s22 = scalar_lea.hbm %s9927_s9, %s5939_s28 }
 0x651   : > { %5253 = vrot.lane.b32.xlu0 %v5190_v59, %s6230_s21  ;;  %v10063_v1 = vrot.slane %v9043_v40, 1 }
 0x652   : > { %v9024_v9 = vpop.permute.xlu1 %4123 }
 0x653   : > { %v9027_v55 = vpop.permute.xlu0 %4309 }
 0x654   : > { %v4396_v38 = vadd.f32 %v9027_v55, %v4198_v34  ;;  %4815 = vrot.lane.b32.xlu1 %v4750_v49, %s6232_s24  ;;  %v10375_v34 = vld [vmem:[#allocation16_spill] sm:$0xff] }
 0x655   : > { %4813 = vrot.lane.b32.xlu0 %v4749_v24, %s6232_s24 }
 0x656   : > { %v4473_v60 = vrot.slane %v4396_v38, 7  ;;  %v4653_v59 = vpop.permute.xlu1 %4652 }
 0x657   : > { %v4643_v30 = vpop.permute.xlu0 %4642  ;;  %v9085_v35 = vadd.f32 %v4653_v59, %v8517_v20  ;;  %v10385_v20 = vld [vmem:[#allocation49_spill] sm:$0xff] }
 0x658   : > { %v9046_v49 = vadd.f32 %v4643_v30, %v10375_v34  ;;  %4817 = vrot.lane.b32.xlu1 %v4751_v62, %s6232_s24  ;;  %v9052_v24 = vsel %vm10377_vm4, %v10376_v63, %v4473_v60  ;;  %v9057_v26 = vsel %vm10378_vm1, %v4473_v60, %v4475_v7  ;;  %vm10386_vm4 = vmmov %vm10370_vm0 }
 0x659   : > { %5255 = vrot.lane.b32.xlu0 %v5192_v58, %s6230_s21  ;;  %v10380_v58 = vrot.slane %v8945_v25, 1  ;;  %vm10389_vm1 = vmmov %vm10370_vm0 }
 0x65a   : > { %v5135_v30 = vadd.f32 %v8818_v28, %v9046_v49  ;;  %v9064_v38 = vpop.permute.xlu1 %4319 }
 0x65b   : > { %v9066_v11 = vpop.permute.xlu0 %5073 }
 0x65c   : > { %v5213_v62 = vrot.slane %v5135_v30, 1  ;;  %4819 = vrot.lane.b32.xlu1 %v4752_v23, %s6232_s24  ;;  %v10383_v23 = vld [vmem:[#allocation69_spill] sm:$0xff] }
 0x65d   : > { %5257 = vrot.lane.b32.xlu0 %v8735_v33, %s6230_s21  ;;  %v4754_v33 = vadd.f32 %v8757_v45, %v8798_v16  ;;  %v10384_v30 = vld [vmem:[#allocation65_spill] sm:$0xff] }
 0x65e   : > { %v9072_v60 = vpop.permute.xlu1 %4127  ;;  %v9077_v61 = vsel %vm10370_vm0, %v10380_v58, %v5213_v62  ;;  %v9082_v28 = vsel %vm10381_vm2, %v5213_v62, %v10063_v1  ;;  %v4753_v58 = vadd.f32 %v10384_v30, %v10383_v23  ;;  %v9099_v62 = vadd.f32 %v8919_v39, %v9085_v35 }
 0x65f   : > { %v9087_v63 = vpop.permute.xlu0 %5069  ;;  %vm10393_vm0 = vcmask 1040384  }
 0x660   : > { %5259 = vrot.lane.b32.xlu1 %v10382_v3, %s6230_s21  ;;  %v5223_v16 = vrot.slane %v9099_v62, 1  ;;  %vm10394_vm2 = vmmov %vm10393_vm0  ;;  %v6145_v62 = vld [vmem:[#allocation2 + $0x1f8] sm:$0xff] }
 0x661   : > { %5261 = vrot.lane.b32.xlu0 %v8778_v50, %s6230_s21 }
 0x662   : > { %v4655_v25 = vpop.permute.xlu1 %4654 }
 0x663   : > { %v9102_v59 = vadd.f32 %v4655_v25, %v10385_v20  ;;  %v4118_v1 = vpop.permute.xlu0 %4117 }
 0x664   : > { %4823 = vrot.lane.b32.xlu1 %v4754_v33, %s6232_s24  ;;  %v4201_v25 = vadd.f32 %v4118_v1, %v10371_v19 }
 0x665   : > { %v5141_v50 = vadd.f32 %v8981_v8, %v9102_v59  ;;  %4821 = vrot.lane.b32.xlu0 %v4753_v58, %s6232_s24  ;;  %v10387_v58 = vld [vmem:[#allocation73_spill] sm:$0xff] }
 0x666   : > { %v4657_v45 = vpop.permute.xlu1 %4656 }
 0x667   : > { %v5225_v3 = vrot.slane %v5141_v50, 1  ;;  %v9110_v23 = vadd.f32 %v4657_v45, %v8538_v22  ;;  %v9112_v39 = vpop.permute.xlu0 %5079  ;;  %v4756_v22 = vadd.f32 %v8808_v12, %v8852_v43  ;;  %v4200_v12 = vadd.f32 %v8941_v41, %v10375_v34  ;;  %v10390_v45 = vld [vmem:[#allocation20_spill] sm:$0xff] }
 0x668   : > { %5263 = vrot.lane.b32.xlu1 %v8805_v18, %s6230_s21  ;;  %v10388_v18 = vld [vmem:[#allocation70_spill] sm:$0xff]  ;;  %v9142_v43 = vadd.f32 %v9000_v37, %v4201_v25  ;;  %v4758_v41 = vadd.f32 %v8863_v6, %v8930_v31  ;;  %v4757_v25 = vadd.f32 %v8838_v46, %v8883_v5 }
 0x669   : > { %v5142_v33 = vadd.f32 %v8908_v53, %v9110_v23  ;;  %5265 = vrot.lane.b32.xlu0 %v8828_v44, %s6230_s21  ;;  %v9123_v8 = vsel %vm10386_vm4, %v5223_v16, %v5225_v3  ;;  %v4755_v20 = vadd.f32 %v10388_v18, %v10387_v58  ;;  %v10391_v18 = vld [vmem:[#allocation50_spill] sm:$0xff]  ;;  %vm10395_vm4 = vmmov %vm10389_vm1 }
 0x66a   : > { %v9128_v30 = vpop.permute.xlu1 %4323  ;;  %v4479_v34 = vrot.slane %v9142_v43, 7 }
 0x66b   : > { %v5227_v50 = vrot.slane %v5142_v33, 1  ;;  %v9132_v53 = vpop.permute.xlu0 %5075  ;;  %v9148_v33 = vadd.f32 %v9008_v13, %v10390_v45 }
 0x66c   : > { %4827 = vrot.lane.b32.xlu1 %v4756_v22, %s6232_s24 }
 0x66d   : > { %4825 = vrot.lane.b32.xlu0 %v4755_v20, %s6232_s24  ;;  %v9137_v44 = vsel %vm10389_vm1, %v5225_v3, %v5227_v50 }
 0x66e   : > { %v9144_v19 = vpop.permute.xlu1 %4131 }
 0x66f   : > { %v4314_v1 = vpop.permute.xlu0 %4313 }
 0x670   : > { %v4398_v58 = vadd.f32 %v4314_v1, %v4200_v12  ;;  %5267 = vrot.lane.b32.xlu1 %v8860_v54, %s6230_s21  ;;  %v9164_v54 = vadd.f32 %v8850_v17, %v9148_v33  ;;  %v10392_v12 = vld [vmem:[#allocation25_spill] sm:$0xff] }
 0x671   : > { %5269 = vrot.lane.b32.xlu0 %v8886_v56, %s6230_s21 }
 0x672   : > { %v4477_v3 = vrot.slane %v4398_v58, 7  ;;  %v4659_v22 = vpop.permute.xlu1 %4658  ;;  %v5219_v52 = vrot.slane %v9164_v54, 1 }
 0x673   : > { %v9160_v13 = vadd.f32 %v4659_v22, %v10391_v18  ;;  %v4647_v20 = vpop.permute.xlu0 %4646  ;;  %v10396_v22 = vrot.slane %v9043_v40, 1 }
 0x674   : > { %v4727_v56 = vadd.f32 %v4647_v20, %v10392_v12  ;;  %4831 = vrot.lane.b32.xlu1 %v4758_v41, %s6232_s24  ;;  %v9171_v6 = vsel %vm10393_vm0, %v4475_v7, %v4477_v3  ;;  %v9174_v31 = vsel %vm10394_vm2, %v4477_v3, %v4479_v34  ;;  %vm10397_vm0 = vmmov %vm10389_vm1 }
 0x675   : > { %v5143_v46 = vadd.f32 %v8966_v27, %v9160_v13  ;;  %4829 = vrot.lane.b32.xlu0 %v4757_v25, %s6232_s24  ;;  %vm10398_vm2 = vmmov %vm10397_vm0 }
 0x676   : > { %v5137_v17 = vadd.f32 %v8889_v10, %v4727_v56  ;;  %v4661_v5 = vpop.permute.xlu1 %4660 }
 0x677   : > { %v5229_v43 = vrot.slane %v5143_v46, 1  ;;  %v9181_v58 = vadd.f32 %v4661_v5, %v8555_v48  ;;  %v9183_v41 = vpop.permute.xlu0 %5081  ;;  %v4760_v48 = vadd.f32 %v8948_v32, %v9027_v55  ;;  %v4761_v46 = vadd.f32 %v8933_v42, %v8964_v21  ;;  %v10401_v21 = vld [vmem:[#allocation48_spill] sm:$0xff] }
 0x678   : > { %v5217_v7 = vrot.slane %v5137_v17, 1  ;;  %5271 = vrot.lane.b32.xlu1 %v8915_v2, %s6230_s21  ;;  %v10399_v17 = vld [vmem:[#allocation51_spill] sm:$0xff] }
 0x679   : > { %v5144_v27 = vadd.f32 %v9010_v47, %v9181_v58  ;;  %5273 = vrot.lane.b32.xlu0 %v8974_v4, %s6230_s21  ;;  %v9193_v10 = vsel %vm10395_vm4, %v5227_v50, %v5229_v43  ;;  %v4759_v47 = vadd.f32 %v8896_v0, %v8917_v57  ;;  %v4202_v0 = vadd.f32 %v8991_v51, %v10392_v12  ;;  %v10400_v12 = vld [vmem:[#allocation52_spill] sm:$0xff] }
 0x67a   : > { %v9197_v3 = vpop.permute.xlu1 %4327  ;;  %v5218_v25 = vsel %vm10389_vm1, %v10396_v22, %v5217_v7  ;;  %v5220_v2 = vsel %vm10397_vm0, %v5217_v7, %v5219_v52  ;;  %v4762_v57 = vadd.f32 %v9046_v49, %v4314_v1  ;;  %vm10402_vm4 = vcmask 1040384  }
 0x67b   : > { %v5231_v18 = vrot.slane %v5144_v27, 1  ;;  %v9205_v20 = vpop.permute.xlu0 %5077  ;;  %vm10403_vm1 = vmmov %vm10402_vm4 }
 0x67c   : > { %4835 = vrot.lane.b32.xlu1 %v4760_v48, %s6232_s24 }
 0x67d   : > { %4833 = vrot.lane.b32.xlu0 %v4759_v47, %s6232_s24  ;;  %v9210_v32 = vsel %vm10398_vm2, %v5229_v43, %v5231_v18  ;;  %vm10405_vm2 = vmmov %vm10397_vm0 }
 0x67e   : > { %v9212_v4 = vpop.permute.xlu1 %4135 }
 0x67f   : > { %v4122_v55 = vpop.permute.xlu0 %4121 }
 0x680   : > { %v4203_v40 = vadd.f32 %v4122_v55, %v10390_v45  ;;  %5275 = vrot.lane.b32.xlu1 %v8979_v15, %s6230_s21 }
 0x681   : > { %5277 = vrot.lane.b32.xlu0 %v9077_v61, %s6230_s21 }
 0x682   : > { %v4401_v50 = vadd.f32 %v9064_v38, %v4203_v40  ;;  %v4663_v54 = vpop.permute.xlu1 %4662  ;;  %v10404_v40 = vld [vmem:[#allocation76_spill] sm:$0xff] }
 0x683   : > { %v9226_v5 = vadd.f32 %v4663_v54, %v10399_v17  ;;  %v4318_v45 = vpop.permute.xlu0 %4317 }
 0x684   : > { %v4400_v43 = vadd.f32 %v4318_v45, %v4202_v0  ;;  %4839 = vrot.lane.b32.xlu1 %v4762_v57, %s6232_s24  ;;  %v4483_v51 = vrot.slane %v4401_v50, 7  ;;  %v4764_v55 = vadd.f32 %v4727_v56, %v4318_v45  ;;  %v6144_v56 = vld [vmem:[#allocation2 + $0x1b0] sm:$0xff] }
 0x685   : > { %v5145_v15 = vadd.f32 %v9087_v63, %v9226_v5  ;;  %4837 = vrot.lane.b32.xlu0 %v4761_v46, %s6232_s24  ;;  %v6143_v46 = vld [vmem:[#allocation2 + $0x1c8] sm:$0xff] }
 0x686   : > { %v4481_v49 = vrot.slane %v4400_v43, 7  ;;  %v4665_v61 = vpop.permute.xlu1 %4664 }
 0x687   : > { %v5233_v1 = vrot.slane %v5145_v15, 1  ;;  %v9233_v7 = vadd.f32 %v4665_v61, %v10400_v12  ;;  %v4651_v42 = vpop.permute.xlu0 %4650  ;;  %v4765_v12 = vadd.f32 %v9148_v33, %v9064_v38  ;;  %v6146_v38 = vld [vmem:[#allocation2 + $0x1e0] sm:$0xff] }
 0x688   : > { %v4729_v27 = vadd.f32 %v4651_v42, %v10401_v21  ;;  %5279 = vrot.lane.b32.xlu1 %v9082_v28, %s6230_s21  ;;  %v9239_v48 = vsel %vm10402_vm4, %v4479_v34, %v4481_v49  ;;  %v9242_v63 = vsel %vm10403_vm1, %v4481_v49, %v4483_v51  ;;  %v4763_v28 = vadd.f32 %v9030_v36, %v9000_v37  ;;  %vm10406_vm4 = vmmov %vm10397_vm0  ;;  %v10408_v42 = vld [vmem:[#allocation53_spill] sm:$0xff] }
 0x689   : > { %v5146_v22 = vadd.f32 %v9002_v14, %v9233_v7  ;;  %5281 = vrot.lane.b32.xlu0 %v5218_v25, %s6230_s21  ;;  %v9248_v47 = vsel %vm10397_vm0, %v5231_v18, %v5233_v1  ;;  %v4204_v25 = vadd.f32 %v6144_v56, %v9024_v9  ;;  %vm10407_vm1 = vmmov %vm10397_vm0  ;;  %vm10409_vm0 = vcmask 1040384  }
 0x68a   : > { %v5139_v0 = vadd.f32 %v10404_v40, %v4729_v27  ;;  %v9251_v57 = vpop.permute.xlu1 %4331  ;;  %v4206_v33 = vadd.f32 %v6146_v38, %v9072_v60  ;;  %v6149_v38 = vld [vmem:[#allocation2 + $0x258] sm:$0xff] }
 0x68b   : > { %v5235_v34 = vrot.slane %v5146_v22, 1  ;;  %v4126_v50 = vpop.permute.xlu0 %4125 }
 0x68c   : > { %v5221_v54 = vrot.slane %v5139_v0, 1  ;;  %v4205_v17 = vadd.f32 %v6143_v46, %v4126_v50  ;;  %4843 = vrot.lane.b32.xlu1 %v4764_v55, %s6232_s24 }
 0x68d   : > { %4841 = vrot.lane.b32.xlu0 %v4763_v28, %s6232_s24  ;;  %v9258_v14 = vsel %vm10405_vm2, %v5233_v1, %v5235_v34  ;;  %vm10410_vm2 = vmmov %vm10409_vm0  ;;  %v10411_v28 = vld [vmem:[#allocation54_spill] sm:$0xff] }
 0x68e   : > { %v4403_v18 = vadd.f32 %v9128_v30, %v4205_v17  ;;  %v9262_v45 = vpop.permute.xlu1 %4139  ;;  %v5222_v37 = vsel %vm10406_vm4, %v5219_v52, %v5221_v54  ;;  %v5224_v36 = vsel %vm10407_vm1, %v5221_v54, %v5223_v16  ;;  %vm10412_vm4 = vmmov %vm10407_vm1 }
 0x68f   : > { %v4322_v43 = vpop.permute.xlu0 %4321  ;;  %vm10413_vm1 = vmmov %vm10409_vm0 }
 0x690   : > { %v4402_v15 = vadd.f32 %v4322_v43, %v4204_v25  ;;  %5283 = vrot.lane.b32.xlu1 %v5220_v2, %s6230_s21  ;;  %v4487_v49 = vrot.slane %v4403_v18, 7  ;;  %v4766_v1 = vadd.f32 %v4729_v27, %v4322_v43  ;;  %v4767_v18 = vadd.f32 %v9085_v35, %v9128_v30  ;;  %v6147_v43 = vld [vmem:[#allocation2 + $0x228] sm:$0xff] }
 0x691   : > { %5285 = vrot.lane.b32.xlu0 %v5222_v37, %s6230_s21 }
 0x692   : > { %v4485_v61 = vrot.slane %v4402_v15, 7  ;;  %v4667_v9 = vpop.permute.xlu1 %4666 }
 0x693   : > { %v9273_v21 = vadd.f32 %v4667_v9, %v10408_v42  ;;  %v4130_v52 = vpop.permute.xlu0 %4129 }
 0x694   : > { %v4207_v22 = vadd.f32 %v6145_v62, %v4130_v52  ;;  %4847 = vrot.lane.b32.xlu1 %v4766_v1, %s6232_s24  ;;  %v9277_v16 = vsel %vm10409_vm0, %v4483_v51, %v4485_v61  ;;  %v9280_v2 = vsel %vm10410_vm2, %v4485_v61, %v4487_v49  ;;  %vm10414_vm2 = vmmov %vm10412_vm4  ;;  %v10415_v62 = vld [vmem:[#allocation55_spill] sm:$0xff] }
 0x695   : > { %v5147_v27 = vadd.f32 %v9066_v11, %v9273_v21  ;;  %4845 = vrot.lane.b32.xlu0 %v4765_v12, %s6232_s24 }
 0x696   : > { %v4405_v55 = vadd.f32 %v9197_v3, %v4207_v22  ;;  %v4669_v40 = vpop.permute.xlu1 %4668 }
 0x697   : > { %v5237_v0 = vrot.slane %v5147_v27, 1  ;;  %v9288_v50 = vadd.f32 %v4669_v40, %v10411_v28  ;;  %v4326_v51 = vpop.permute.xlu0 %4325  ;;  %v10418_v28 = vld [vmem:[#allocation56_spill] sm:$0xff] }
 0x698   : > { %v4404_v54 = vadd.f32 %v4326_v51, %v4206_v33  ;;  %5287 = vrot.lane.b32.xlu1 %v5224_v36, %s6230_s21  ;;  %v4491_v60 = vrot.slane %v4405_v55, 7  ;;  %v4768_v56 = vadd.f32 %v9102_v59, %v4326_v51 }
 0x699   : > { %v5148_v46 = vadd.f32 %v9132_v53, %v9288_v50  ;;  %5289 = vrot.lane.b32.xlu0 %v9123_v8, %s6230_s21  ;;  %v9296_v11 = vsel %vm10412_vm4, %v5235_v34, %v5237_v0  ;;  %v6148_v34 = vld [vmem:[#allocation2 + $0x210] sm:$0xff]  ;;  %vm10416_vm4 = vmmov %vm10409_vm0 }
 0x69a   : > { %v4489_v17 = vrot.slane %v4404_v54, 7  ;;  %v9299_v25 = vpop.permute.xlu1 %4335  ;;  %v4208_v35 = vadd.f32 %v6148_v34, %v9144_v19  ;;  %v4769_v19 = vadd.f32 %v9110_v23, %v9197_v3  ;;  %v6150_v23 = vld [vmem:[#allocation2 + $0x240] sm:$0xff]  ;;  %v6151_v34 = vld [vmem:[#allocation2 + $0x288] sm:$0xff] }
 0x69b   : > { %v5239_v37 = vrot.slane %v5148_v46, 1  ;;  %v4134_v36 = vpop.permute.xlu0 %4133  ;;  %v4210_v3 = vadd.f32 %v6150_v23, %v9212_v4 }
 0x69c   : > { %v4209_v15 = vadd.f32 %v6147_v43, %v4134_v36  ;;  %4851 = vrot.lane.b32.xlu1 %v4768_v56, %s6232_s24  ;;  %v9305_v8 = vsel %vm10413_vm1, %v4487_v49, %v4489_v17  ;;  %v9308_v53 = vsel %vm10409_vm0, %v4489_v17, %v4491_v60  ;;  %vm10417_vm1 = vmmov %vm10409_vm0  ;;  %v4771_v36 = vadd.f32 %v9181_v58, %v9251_v57 }
 0x69d   : > { %4849 = vrot.lane.b32.xlu0 %v4767_v18, %s6232_s24  ;;  %v9312_v59 = vsel %vm10414_vm2, %v5237_v0, %v5239_v37  ;;  %vm10419_vm0 = vmmov %vm10414_vm2 }
 0x69e   : > { %v4407_v30 = vadd.f32 %v9251_v57, %v4209_v15  ;;  %v9316_v61 = vpop.permute.xlu1 %4143  ;;  %vm10420_vm2 = vmmov %vm10417_vm1 }
 0x69f   : > { %v4330_v1 = vpop.permute.xlu0 %4329 }
 0x6a0   : > { %v4406_v9 = vadd.f32 %v4330_v1, %v4208_v35  ;;  %5291 = vrot.lane.b32.xlu1 %v9137_v44, %s6230_s21  ;;  %v4495_v49 = vrot.slane %v4407_v30, 7  ;;  %v4770_v42 = vadd.f32 %v9160_v13, %v4330_v1  ;;  %v10423_v30 = vld [vmem:[#allocation57_spill] sm:$0xff] }
 0x6a1   : > { %5293 = vrot.lane.b32.xlu0 %v9193_v10, %s6230_s21 }
 0x6a2   : > { %v4493_v12 = vrot.slane %v4406_v9, 7  ;;  %v4671_v52 = vpop.permute.xlu1 %4670 }
 0x6a3   : > { %v9326_v22 = vadd.f32 %v4671_v52, %v10415_v62  ;;  %v4138_v27 = vpop.permute.xlu0 %4137  ;;  %v6153_v62 = vld [vmem:[#allocation2 + $0x2d0] sm:$0xff] }
 0x6a4   : > { %v4211_v33 = vadd.f32 %v6149_v38, %v4138_v27  ;;  %4855 = vrot.lane.b32.xlu1 %v4770_v42, %s6232_s24  ;;  %v9330_v44 = vsel %vm10416_vm4, %v4491_v60, %v4493_v12  ;;  %v9333_v10 = vsel %vm10417_vm1, %v4493_v12, %v4495_v49  ;;  %vm10421_vm4 = vmmov %vm10417_vm1 }
 0x6a5   : > { %v5149_v13 = vadd.f32 %v9205_v20, %v9326_v22  ;;  %4853 = vrot.lane.b32.xlu0 %v4769_v19, %s6232_s24  ;;  %vm10422_vm1 = vmmov %vm10419_vm0 }
 0x6a6   : > { %v4409_v55 = vadd.f32 %v9299_v25, %v4211_v33  ;;  %v4673_v40 = vpop.permute.xlu1 %4672 }
 0x6a7   : > { %v5241_v0 = vrot.slane %v5149_v13, 1  ;;  %v9341_v51 = vadd.f32 %v4673_v40, %v10418_v28  ;;  %v4334_v54 = vpop.permute.xlu0 %4333 }
 0x6a8   : > { %v4408_v46 = vadd.f32 %v4334_v54, %v4210_v3  ;;  %5295 = vrot.lane.b32.xlu1 %v9210_v32, %s6230_s21  ;;  %v4499_v60 = vrot.slane %v4409_v55, 7  ;;  %v4772_v56 = vadd.f32 %v9226_v5, %v4334_v54  ;;  %v10426_v54 = vld [vmem:[#allocation47_spill] sm:$0xff] }
 0x6a9   : > { %v5150_v20 = vadd.f32 %v9112_v39, %v9341_v51  ;;  %5297 = vrot.lane.b32.xlu0 %v9248_v47, %s6230_s21  ;;  %v5242_v4 = vsel %vm10419_vm0, %v5239_v37, %v5241_v0  ;;  %v6152_v37 = vld [vmem:[#allocation2 + $0x270] sm:$0xff]  ;;  %vm10424_vm0 = vmmov %vm10420_vm2 }
 0x6aa   : > { %v4497_v17 = vrot.slane %v4408_v46, 7  ;;  %v4340_v18 = vpop.permute.xlu1 %4339  ;;  %v4212_v35 = vadd.f32 %v6152_v37, %v9262_v45  ;;  %v4773_v45 = vadd.f32 %v9233_v7, %v9299_v25  ;;  %v6155_v25 = vld [vmem:[#allocation2 + $0x2e8] sm:$0xff] }
 0x6ab   : > { %v5243_v43 = vrot.slane %v5150_v20, 1  ;;  %v4142_v15 = vpop.permute.xlu0 %4141 }
 0x6ac   : > { %v4213_v32 = vadd.f32 %v6151_v34, %v4142_v15  ;;  %4859 = vrot.lane.b32.xlu1 %v4772_v56, %s6232_s24  ;;  %v9355_v39 = vsel %vm10420_vm2, %v4495_v49, %v4497_v17  ;;  %v9358_v47 = vsel %vm10421_vm4, %v4497_v17, %v4499_v60  ;;  %vm10425_vm2 = vmmov %vm10424_vm0  ;;  %v4775_v17 = vadd.f32 %v9288_v50, %v4340_v18  ;;  %v10428_v34 = vld [vmem:[#allocation46_spill] sm:$0xff] }
 0x6ad   : > { %4857 = vrot.lane.b32.xlu0 %v4771_v36, %s6232_s24  ;;  %v5244_v5 = vsel %vm10422_vm1, %v5241_v0, %v5243_v43  ;;  %v6156_v0 = vld [vmem:[#allocation2 + $0x2b8] sm:$0xff]  ;;  %vm10427_vm4 = vmmov %vm10422_vm1 }
 0x6ae   : > { %v4411_v58 = vadd.f32 %v4340_v18, %v4213_v32  ;;  %v4148_v57 = vpop.permute.xlu1 %4147  ;;  %v6115_v32 = vunpack.i.l.bf16 %v10428_v34  ;;  %vm10429_vm1 = vmmov %vm10424_vm0 }
 0x6af   : > { %v4216_v1 = vadd.f32 %v4148_v57, %v10423_v30  ;;  %v4338_v9 = vpop.permute.xlu0 %4337 }
 0x6b0   : > { %v4410_v12 = vadd.f32 %v4338_v9, %v4212_v35  ;;  %5299 = vrot.lane.b32.xlu1 %v9258_v14, %s6230_s21  ;;  %v4503_v49 = vrot.slane %v4411_v58, 7  ;;  %v4774_v52 = vadd.f32 %v9273_v21, %v4338_v9  ;;  %v6154_v21 = vld [vmem:[#allocation2 + $0x2a0] sm:$0xff] }
 0x6b1   : > { %5301 = vrot.lane.b32.xlu0 %v9296_v11, %s6230_s21  ;;  %v4214_v13 = vadd.f32 %v6154_v21, %v9316_v61  ;;  %v4016_v35 = vld [vmem:[#allocation2 + $0x300] sm:$0x7f]  ;;  %v4942_v21 = vld [vmem:[#allocation2 + $0x318] sm:$0x1] }
 0x6b2   : > { %v4501_v42 = vrot.slane %v4410_v12, 7  ;;  %v4675_v19 = vpop.permute.xlu1 %4674  ;;  %v10432_v12 = vld [vmem:[#allocation24_spill] sm:$0xff] }
 0x6b3   : > { %v4741_v27 = vadd.f32 %v6153_v62, %v4675_v19  ;;  %v4146_v38 = vpop.permute.xlu0 %4145 }
 0x6b4   : > { %4863 = vrot.lane.b32.xlu1 %v4774_v52, %s6232_s24  ;;  %v9373_v33 = vsel %vm10424_vm0, %v4499_v60, %v4501_v42  ;;  %v9376_v14 = vsel %vm10425_vm2, %v4501_v42, %v4503_v49  ;;  %v4215_v28 = vadd.f32 %v6156_v0, %v4146_v38  ;;  %vm10430_vm0 = vmmov %vm10427_vm4  ;;  %v6157_v38 = vld [vmem:[#allocation2 + $0x300] sm:$0xff] }
 0x6b5   : > { %v5151_v11 = vadd.f32 %v9183_v41, %v4741_v27  ;;  %4861 = vrot.lane.b32.xlu0 %v4773_v45, %s6232_s24  ;;  %vm10431_vm2 = vmmov %vm10429_vm1 }
 0x6b6   : > { %v4677_v23 = vpop.permute.xlu1 %4676 }
 0x6b7   : > { %v5245_v7 = vrot.slane %v5151_v11, 1  ;;  %v4742_v3 = vadd.f32 %v6155_v25, %v4677_v23  ;;  %v4342_v55 = vpop.permute.xlu0 %4341 }
 0x6b8   : > { %v4412_v40 = vadd.f32 %v4342_v55, %v4214_v13  ;;  %5303 = vrot.lane.b32.xlu1 %v9312_v59, %s6230_s21  ;;  %v4776_v61 = vadd.f32 %v9326_v22, %v4342_v55  ;;  %v10436_v55 = vld [vmem:[#allocation7_spill] sm:$0xff] }
 0x6b9   : > { %v5152_v46 = vadd.f32 %v10426_v54, %v4742_v3  ;;  %5305 = vrot.lane.b32.xlu0 %v5242_v4, %s6230_s21  ;;  %v5246_v41 = vsel %vm10427_vm4, %v5243_v43, %v5245_v7  ;;  %vm10433_vm4 = vmmov %vm10429_vm1 }
 0x6ba   : > { %v4505_v20 = vrot.slane %v4412_v40, 7  ;;  %v4344_v60 = vpop.permute.xlu1 %4343  ;;  %v6161_v40 = vadd.high.f32.bf16 %v4942_v21, %v10436_v55 }
 0x6bb   : > { %v5247_v56 = vrot.slane %v5152_v46, 1  ;;  %v4413_v36 = vadd.f32 %v4344_v60, %v4215_v28  ;;  %v4150_v15 = vpop.permute.xlu0 %4149  ;;  %v4777_v50 = vadd.f32 %v9341_v51, %v4344_v60 }
 0x6bc   : > { %v4217_v59 = vadd.f32 %v6155_v25, %v4150_v15  ;;  %4867 = vrot.lane.b32.xlu1 %v4776_v61, %s6232_s24  ;;  %v9391_v37 = vsel %vm10429_vm1, %v4503_v49, %v4505_v20 }
 0x6bd   : > { %v4507_v4 = vrot.slane %v4413_v36, 7  ;;  %4865 = vrot.lane.b32.xlu0 %v4775_v17, %s6232_s24  ;;  %v5248_v43 = vsel %vm10430_vm0, %v5245_v7, %v5247_v56  ;;  %vm10435_vm0 = vmmov %vm10429_vm1 }
 0x6be   : > { %v4415_v22 = vadd.f32 %v6115_v32, %v4217_v59  ;;  %v4152_v58 = vpop.permute.xlu1 %4151  ;;  %v3984_v59 = vld [vmem:[#allocation2] sm:$0x80] }
 0x6bf   : > { %v4218_v18 = vadd.f32 %v4152_v58, %v4016_v35  ;;  %v4346_v57 = vpop.permute.xlu0 %4345  ;;  %v9397_v30 = vsel %vm10431_vm2, %v4505_v20, %v4507_v4  ;;  %vm10437_vm2 = vcmask 1046528   ;;  %v10438_v20 = vld [vmem:[#allocation19_spill] sm:$0xff]  ;;  %v6163_v58 = vadd.low.f32.bf16 %v3984_v59, %v10436_v55 }
 0x6c0   : > { %v4414_v9 = vadd.f32 %v4346_v57, %v4216_v1  ;;  %5307 = vrot.lane.b32.xlu1 %v5244_v5, %s6230_s21  ;;  %v4511_v42 = vrot.slane %v4415_v22, 7  ;;  %v4778_v62 = vadd.f32 %v4741_v27, %v4346_v57  ;;  %v10434_v1 = vld [vmem:[#allocation6_spill] sm:$0xff]  ;;  %v4779_v27 = vadd.f32 %v6115_v32, %v4742_v3 }
 0x6c1   : > { %v4416_v49 = vadd.f32 %v10432_v12, %v4218_v18  ;;  %4869 = vrot.lane.b32.xlu0 %v4777_v50, %s6232_s24  ;;  %v5154_v61 = vadd.f32 %v6161_v40, %v10438_v20  ;;  %v10441_v50 = vld [vmem:[#allocation61_spill] sm:$0xff]  ;;  %v10443_v12 = vld [vmem:[#allocation60_spill] sm:$0xff] }
 0x6c2   : > { %v4509_v52 = vrot.slane %v4414_v9, 7  ;;  %v4679_v19 = vpop.permute.xlu1 %4678 }
 0x6c3   : > { %v4513_v45 = vrot.slane %v4416_v49, 7  ;;  %v4743_v11 = vadd.f32 %v6157_v38, %v4679_v19  ;;  %v5254_v51 = vpop.permute.xlu0 %5253  ;;  %v5251_v17 = vrot.slane %v5154_v61, 1  ;;  %v4384_v49 = vadd.f32 %v6163_v58, %v10443_v12  ;;  %v10448_v61 = vld [vmem:[#allocation66_spill] sm:$0xff] }
 0x6c4   : > { %5309 = vrot.lane.b32.xlu1 %v5246_v41, %s6230_s21  ;;  %v9404_v13 = vsel %vm10433_vm4, %v4507_v4, %v4509_v52  ;;  %v9407_v5 = vsel %vm10429_vm1, %v4509_v52, %v4511_v42  ;;  %vm10439_vm4 = vmmov %vm10437_vm2  ;;  %v10444_v52 = vld [vmem:[#allocation62_spill] sm:$0xff] }
 0x6c5   : > { %v5153_v23 = vadd.f32 %v10434_v1, %v4743_v11  ;;  %4871 = vrot.lane.b32.xlu0 %v4778_v62, %s6232_s24  ;;  %v9412_v7 = vsel %vm10435_vm0, %v4511_v42, %v4513_v45  ;;  %v6162_v0 = vadd.high.f32.bf16 %v4743_v11, %v10428_v34  ;;  %v4450_v38 = vrot.slane %v4384_v49, 7  ;;  %vm10445_vm1 = vmmov %vm10435_vm0 }
 0x6c6   : > { %v4816_v25 = vpop.permute.xlu1 %4815 }
 0x6c7   : > { %v5249_v28 = vrot.slane %v5153_v23, 1  ;;  %v4814_v54 = vpop.permute.xlu0 %4813 }
 0x6c8   : > { %4873 = vrot.lane.b32.xlu1 %v4779_v27, %s6232_s24 }
 0x6c9   : > { %4875 = vrot.lane.b32.xlu0 %v6162_v0, %s6232_s24  ;;  %v5250_v46 = vsel %vm10437_vm2, %v5247_v56, %v5249_v28  ;;  %v5252_v15 = vsel %vm10439_vm4, %v5249_v28, %v5251_v17  ;;  %v10440_v56 = vld [vmem:[#allocation58_spill] sm:$0xff]  ;;  %v10449_v17 = vrot.slane %v10448_v61, 7  ;;  %vm10450_vm2 = vmmov %vm10435_vm0  ;;  %s10543_s24 = sand.u32 1, %s6218_s10  }
 0x6ca   : > { %v4818_v41 = vpop.permute.xlu1 %4817  ;;  %v4187_v22 = vadd.f32 %v8987_v29, %v10440_v56  ;;  %s9876_s25 = scalar_lea.sflag [#allocation4], %s10543_s24 }
 0x6cb   : > { %v5256_v60 = vpop.permute.xlu0 %5255 }
 0x6cc   : > { %5313 = vrot.lane.b32.xlu1 %v5250_v46, %s6230_s21  ;;  %v4385_v18 = vadd.f32 %v10441_v50, %v4187_v22  ;;  %v5350_v28 = vsel %vm7641_vm7, %v5256_v60, 0.0 }
 0x6cd   : > { %5311 = vrot.lane.b32.xlu0 %v5248_v43, %s6230_s21  ;;  %v10442_v43 = vld [vmem:[#allocation59_spill] sm:$0xff] }
 0x6ce   : > { %v4820_v3 = vpop.permute.xlu1 %4819  ;;  %v4188_v57 = vadd.f32 %v8987_v29, %v10442_v43  ;;  %v4451_v45 = vrot.slane %v4385_v18, 7 }
 0x6cf   : > { %v5258_v36 = vpop.permute.xlu0 %5257 }
 0x6d0   : > { %v4386_v19 = vadd.f32 %v10444_v52, %v4188_v57  ;;  %v4452_v1 = vsel %vm10445_vm1, %v4450_v38, %v4451_v45  ;;  %v9446_v57 = vld [vmem:[%s9924_s6] ss:$0 sm:$0xff] }
 0x6d1   : > { %5315 = vrot.lane.b32.xlu0 %v5252_v15, %s6230_s21  ;;  %v4547_v29 = vsel %vm7631_vm5, %v4452_v1, 0.0  ;;  %vm10456_vm5 = vcmask 261120  }
 0x6d2   : > { %v5260_v34 = vpop.permute.xlu1 %5259  ;;  %v4453_v21 = vrot.slane %v4386_v19, 7  ;;  %v4909_v20 = vadd.f32 %v4814_v54, %v4547_v29  ;;  %v10453_v54 = vld [vmem:[#allocation71_spill] sm:$0xff]  ;;  %vm10462_vm7 = vmmov %vm10456_vm5 }
 0x6d3   : > { %v5262_v32 = vpop.permute.xlu0 %5261  ;;  %v4551_v49 = vsel %vm7666_vm9, %v10453_v54, 0.0  ;;  %vm10467_vm9 = vmmov %vm10456_vm5 }
 0x6d4   : > { %v4454_v55 = vsel %vm10435_vm0, %v4451_v45, %v4453_v21  ;;  %v4456_v15 = vsel %vm10450_vm2, %v4453_v21, %v10449_v17  ;;  %v5381_v18 = vadd.f32 %v5254_v51, %v4909_v20  ;;  %v10455_v45 = vld [vmem:[#allocation68_spill] sm:$0xff]  ;;  %vm10481_vm4 = vmmov %vm10456_vm5 }
 0x6d5   : > { %v4910_v46 = vadd.f32 %v4816_v25, %v4454_v55  ;;  %v4549_v50 = vsel %vm7635_vm6, %v4456_v15, 0.0  ;;  %v5352_v25 = vsel %vm7659_vm8, %v5260_v34, 0.0  ;;  %v4912_v38 = vadd.f32 %v4820_v3, %v10455_v45  ;;  %v10458_v3 = vld [vmem:[#allocation74_spill] sm:$0xff]  ;;  %vm10460_vm6 = vmmov %vm10456_vm5  ;;  %v10461_v15 = vld [vmem:[#allocation72_spill] sm:$0xff] }
 0x6d6   : > { %v4824_v4 = vpop.permute.xlu1 %4823  ;;  %v4911_v43 = vadd.f32 %v4818_v41, %v4549_v50  ;;  %v9458_v1 = vadd.f32 %v9446_v57, %v5381_v18  ;;  %vm10463_vm8 = vmmov %vm10456_vm5 }
 0x6d7   : > { %v4822_v35 = vpop.permute.xlu0 %4821  ;;  %v5382_v56 = vadd.f32 %v5350_v28, %v4910_v46  ;;  %v5384_v55 = vadd.f32 %v5352_v25, %v4912_v38  ;;  %vm10486_vm2 = vmmov %vm10481_vm4 }
 0x6d8   : > { %v5383_v51 = vadd.f32 %v5258_v36, %v4911_v43  ;;  %v4913_v41 = vadd.f32 %v4822_v35, %v4551_v49  ;;  %v4553_v35 = vsel %vm7705_vm11, %v10458_v3, 0.0  ;;  %v5452_v61 = vsel %vm10460_vm6, %v9458_v1, 0.0  ;;  %vm10473_vm11 = vmmov %vm10456_vm5 }
 0x6d9   : > { %v9454_v19 = vadd.f32 %v9446_v57, %v5382_v56  ;;  %v9473_v17 = vadd.f32 %v9446_v57, %v5384_v55  ;;  %v4914_v56 = vadd.f32 %v4824_v4, %v10461_v15  ;;  %v10465_v4 = vld [vmem:[#allocation77_spill] sm:$0xff] }
 0x6da   : > { %v5264_v9 = vpop.permute.xlu1 %5263  ;;  %v9463_v29 = vadd.f32 %v9446_v57, %v5383_v51  ;;  %v5385_v0 = vadd.f32 %v5262_v32, %v4913_v41  ;;  %v4555_v38 = vsel %vm7743_vm13, %v10465_v4, 0.0 }
 0x6db   : > { %v5266_v42 = vpop.permute.xlu0 %5265  ;;  %v5453_v34 = vsel %vm10456_vm5, %v9454_v19, 0.0  ;;  %v5354_v20 = vsel %vm7694_vm10, %v5264_v9, 0.0  ;;  %v5457_v25 = vsel %vm10463_vm8, %v9473_v17, 0.0  ;;  %vm10469_vm10 = vmmov %vm10456_vm5 }
 0x6dc   : > { %v5454_v50 = vadd.f32 %v5453_v34, %v5452_v61  ;;  %v5455_v32 = vsel %vm10462_vm7, %v9463_v29, 0.0  ;;  %v9479_v9 = vadd.f32 %v9446_v57, %v5385_v0  ;;  %v5386_v43 = vadd.f32 %v5354_v20, %v4914_v56  ;;  %v10468_v34 = vld [vmem:[#allocation75_spill] sm:$0xff]  ;;  %vm10492_vm8 = vmmov %vm10486_vm2 }
 0x6de   : > { %v4828_v62 = vpop.permute.xlu1 %4827  ;;  %v5456_v12 = vadd.f32 %v5455_v32, %v5454_v50  ;;  %v5459_v41 = vsel %vm10467_vm9, %v9479_v9, 0.0  ;;  %v9491_v55 = vadd.f32 %v9446_v57, %v5386_v43  ;;  %v10471_v32 = vld [vmem:[#allocation79_spill] sm:$0xff]  ;;  %vm10493_vm9 = vmmov %vm10486_vm2 }
 0x6df   : > { %v4826_v11 = vpop.permute.xlu0 %4825  ;;  %v4916_v0 = vadd.f32 %v4828_v62, %v10468_v34  ;;  %v4557_v62 = vsel %vm7774_vm15, %v10471_v32, 0.0  ;;  %vm10480_vm15 = vmmov %vm10456_vm5 }
 0x6e0   : > { %v4915_v58 = vadd.f32 %v4826_v11, %v4553_v35  ;;  %v5461_v61 = vsel %vm10469_vm10, %v9491_v55, 0.0 }
 0x6e2   : > { %v5268_v23 = vpop.permute.xlu1 %5267  ;;  %v5387_v54 = vadd.f32 %v5266_v42, %v4915_v58  ;;  %v5458_v42 = vadd.f32 %v5457_v25, %v5456_v12 }
 0x6e3   : > { %v5270_v27 = vpop.permute.xlu0 %5269  ;;  %v5356_v45 = vsel %vm7731_vm12, %v5268_v23, 0.0  ;;  %vm10475_vm12 = vmmov %vm10456_vm5 }
 0x6e4   : > { %v9495_v3 = vadd.f32 %v9446_v57, %v5387_v54  ;;  %v5388_v23 = vadd.f32 %v5356_v45, %v4916_v0  ;;  %v5460_v36 = vadd.f32 %v5459_v41, %v5458_v42  ;;  %v10474_v54 = vld [vmem:[#allocation78_spill] sm:$0xff]  ;;  %v10478_v42 = vld [vmem:[#allocation45_spill] sm:$0xff]  ;;  %vm10487_vm5 = vmmov %vm10486_vm2 }
 0x6e5   : > { %v10476_v0 = vld [vmem:[#allocation14_spill] sm:$0xff] }
 0x6e6   : > { %v4832_v59 = vpop.permute.xlu1 %4831  ;;  %v9507_v25 = vadd.f32 %v9446_v57, %v5388_v23  ;;  %v5462_v45 = vadd.f32 %v5461_v61, %v5460_v36  ;;  %vm10477_vm13 = vnez %v10476_v0 }
 0x6e7   : > { %v4830_v22 = vpop.permute.xlu0 %4829  ;;  %v4918_v12 = vadd.f32 %v4832_v59, %v10474_v54  ;;  %v10482_v54 = vld [vmem:[#allocation13_spill] sm:$0xff] }
 0x6e8   : > { %v4917_v46 = vadd.f32 %v4830_v22, %v4555_v38  ;;  %v5463_v22 = vsel %vm10473_vm11, %v9495_v3, 0.0  ;;  %v5465_v41 = vsel %vm10475_vm12, %v9507_v25, 0.0  ;;  %vm10483_vm1 = vnez %v10482_v54  ;;  %vm10498_vm12 = vmmov %vm10486_vm2 }
 0x6e9   : > { %v5464_v38 = vadd.f32 %v5463_v22, %v5462_v45 }
 0x6ea   : > { %v5272_v52 = vpop.permute.xlu1 %5271  ;;  %v5389_v15 = vadd.f32 %v5270_v27, %v4917_v46 }
 0x6eb   : > { %v5274_v21 = vpop.permute.xlu0 %5273  ;;  %v5358_v50 = vsel %vm7762_vm14, %v5272_v52, 0.0  ;;  %vm10479_vm14 = vnez %v10478_v42  ;;  %v10488_v42 = vld [vmem:[#allocation18_spill] sm:$0xff] }
 0x6ec   : > { %v9511_v27 = vadd.f32 %v9446_v57, %v5389_v15  ;;  %v5390_v11 = vadd.f32 %v5358_v50, %v4918_v12  ;;  %v4559_v59 = vsel %vm10479_vm14, %v9057_v26, 0.0  ;;  %v5466_v50 = vadd.f32 %v5465_v41, %v5464_v38 }
 0x6ed   : > { %vm10489_vm6 = vnez %v10488_v42  ;;  %v10500_v42 = vld [vmem:[#allocation21_spill] sm:$0xff] }
 0x6ee   : > { %v4836_v40 = vpop.permute.xlu1 %4835  ;;  %v5467_v23 = vsel %vm10480_vm15, %v9511_v27, 0.0  ;;  %v9523_v36 = vadd.f32 %v9446_v57, %v5390_v11  ;;  %vm10501_vm14 = vnez %v10500_v42 }
 0x6ef   : > { %v4834_v28 = vpop.permute.xlu0 %4833  ;;  %v4920_v61 = vadd.f32 %v4836_v40, %v9052_v24  ;;  %v5468_v32 = vadd.f32 %v5467_v23, %v5466_v50  ;;  %v10490_v23 = vld [vmem:[#allocation17_spill] sm:$0xff] }
 0x6f0   : > { %v4919_v49 = vadd.f32 %v4834_v28, %v4557_v62  ;;  %v5469_v26 = vsel %vm10481_vm4, %v9523_v36, 0.0  ;;  %vm10491_vm7 = vnez %v10490_v23  ;;  %v10502_v23 = vld [vmem:[#allocation40_spill] sm:$0xff]  ;;  %vm10504_vm4 = vmmov %vm10486_vm2 }
 0x6f1   : > { %v5470_v38 = vadd.f32 %v5469_v26, %v5468_v32  ;;  %vm10503_vm15 = vnez %v10502_v23 }
 0x6f2   : > { %v5276_v18 = vpop.permute.xlu1 %5275  ;;  %v5391_v34 = vadd.f32 %v5274_v21, %v4919_v49  ;;  %v10484_v49 = vld [vmem:[#allocation15_spill] sm:$0xff] }
 0x6f3   : > { %v5278_v60 = vpop.permute.xlu0 %5277  ;;  %v5360_v46 = vsel %vm10477_vm13, %v5276_v18, 0.0  ;;  %vm10485_vm0 = vnez %v10484_v49  ;;  %v10494_v49 = vld [vmem:[#allocation11_spill] sm:$0xff]  ;;  %vm10499_vm13 = vmmov %vm10486_vm2 }
 0x6f4   : > { %v9527_v21 = vadd.f32 %v9446_v57, %v5391_v34  ;;  %v5392_v18 = vadd.f32 %v5360_v46, %v4920_v61  ;;  %v4561_v24 = vsel %vm10485_vm0, %v9174_v31, 0.0  ;;  %vm10495_vm10 = vnez %v10494_v49  ;;  %v10506_v49 = vld [vmem:[#allocation27_spill] sm:$0xff] }
 0x6f5   : > { %vm10507_vm0 = vnez %v10506_v49  ;;  %v10518_v49 = vld [vmem:[#allocation35_spill] sm:$0xff] }
 0x6f6   : > { %v4840_v51 = vpop.permute.xlu1 %4839  ;;  %v5471_v40 = vsel %vm10486_vm2, %v9527_v21, 0.0 }
 0x6f7   : > { %v4838_v20 = vpop.permute.xlu0 %4837  ;;  %v4922_v45 = vadd.f32 %v4840_v51, %v9171_v6  ;;  %v5472_v0 = vadd.f32 %v5471_v40, %v5470_v38  ;;  %v4563_v6 = vsel %vm10491_vm7, %v9242_v63, 0.0  ;;  %v10496_v40 = vld [vmem:[#allocation22_spill] sm:$0xff] }
 0x6f8   : > { %v4921_v15 = vadd.f32 %v4838_v20, %v4559_v59  ;;  %v9539_v20 = vadd.f32 %v9446_v57, %v5392_v18  ;;  %vm10497_vm11 = vnez %v10496_v40  ;;  %v10508_v40 = vld [vmem:[#allocation28_spill] sm:$0xff] }
 0x6fa   : > { %v5280_v35 = vpop.permute.xlu1 %5279  ;;  %v5393_v62 = vadd.f32 %v5278_v60, %v4921_v15  ;;  %v5473_v31 = vsel %vm10487_vm5, %v9539_v20, 0.0 }
 0x6fb   : > { %v5282_v56 = vpop.permute.xlu0 %5281  ;;  %v5362_v12 = vsel %vm10483_vm1, %v5280_v35, 0.0  ;;  %v5474_v32 = vadd.f32 %v5473_v31, %v5472_v0  ;;  %vm10505_vm1 = vmmov %vm10486_vm2  ;;  %vm10509_vm2 = vnez %v10508_v40 }
 0x6fc   : > { %v9543_v60 = vadd.f32 %v9446_v57, %v5393_v62  ;;  %v5394_v34 = vadd.f32 %v5362_v12, %v4922_v45  ;;  %vm10510_vm5 = vmmov %vm10505_vm1 }
 0x6fe   : > { %v4844_v4 = vpop.permute.xlu1 %4843  ;;  %v9555_v61 = vadd.f32 %v9446_v57, %v5394_v34 }
 0x6ff   : > { %v4842_v52 = vpop.permute.xlu0 %4841  ;;  %v4924_v15 = vadd.f32 %v4844_v4, %v9239_v48  ;;  %v4565_v48 = vsel %vm10497_vm11, %v9280_v2, 0.0  ;;  %vm10519_vm11 = vnez %v10518_v49 }
 0x700   : > { %v4923_v11 = vadd.f32 %v4842_v52, %v4561_v24  ;;  %v5475_v52 = vsel %vm10492_vm8, %v9543_v60, 0.0  ;;  %v5477_v63 = vsel %vm10493_vm9, %v9555_v61, 0.0  ;;  %vm10514_vm8 = vmmov %vm10505_vm1 }
 0x701   : > { %v5476_v26 = vadd.f32 %v5475_v52, %v5474_v32 }
 0x702   : > { %v5284_v28 = vpop.permute.xlu1 %5283  ;;  %v5395_v46 = vadd.f32 %v5282_v56, %v4923_v11 }
 0x703   : > { %v5286_v58 = vpop.permute.xlu0 %5285  ;;  %v5364_v59 = vsel %vm10489_vm6, %v5284_v28, 0.0  ;;  %v5478_v38 = vadd.f32 %v5477_v63, %v5476_v26  ;;  %vm10511_vm6 = vmmov %vm10505_vm1 }
 0x704   : > { %v9559_v56 = vadd.f32 %v9446_v57, %v5395_v46  ;;  %v5396_v28 = vadd.f32 %v5364_v59, %v4924_v15 }
 0x706   : > { %v4848_v43 = vpop.permute.xlu1 %4847  ;;  %v5479_v4 = vsel %vm10498_vm12, %v9559_v56, 0.0  ;;  %vm10520_vm12 = vmmov %vm10505_vm1 }
 0x707   : > { %v4846_v22 = vpop.permute.xlu0 %4845  ;;  %v4926_v45 = vadd.f32 %v4848_v43, %v9277_v16  ;;  %v5480_v31 = vadd.f32 %v5479_v4, %v5478_v38  ;;  %v4567_v16 = vsel %vm10503_vm15, %v9308_v53, 0.0  ;;  %vm10524_vm15 = vmmov %vm10505_vm1 }
 0x708   : > { %v4925_v50 = vadd.f32 %v4846_v22, %v4563_v6  ;;  %v9571_v22 = vadd.f32 %v9446_v57, %v5396_v28 }
 0x70a   : > { %v5288_v41 = vpop.permute.xlu1 %5287  ;;  %v5397_v54 = vadd.f32 %v5286_v58, %v4925_v50  ;;  %v5481_v2 = vsel %vm10499_vm13, %v9571_v22, 0.0 }
 0x70b   : > { %v5290_v35 = vpop.permute.xlu0 %5289  ;;  %v5366_v24 = vsel %vm10495_vm10, %v5288_v41, 0.0  ;;  %v5482_v32 = vadd.f32 %v5481_v2, %v5480_v31  ;;  %vm10517_vm10 = vmmov %vm10505_vm1 }
 0x70c   : > { %v9575_v58 = vadd.f32 %v9446_v57, %v5397_v54  ;;  %v5398_v0 = vadd.f32 %v5366_v24, %v4926_v45 }
 0x70e   : > { %v4852_v51 = vpop.permute.xlu1 %4851  ;;  %v5483_v6 = vsel %vm10504_vm4, %v9575_v58, 0.0  ;;  %v9587_v52 = vadd.f32 %v9446_v57, %v5398_v0 }
 0x70f   : > { %v4850_v18 = vpop.permute.xlu0 %4849  ;;  %v4928_v15 = vadd.f32 %v4852_v51, %v9305_v8  ;;  %v5484_v26 = vadd.f32 %v5483_v6, %v5482_v32  ;;  %v4569_v8 = vsel %vm10509_vm2, %v9333_v10, 0.0 }
 0x710   : > { %v4927_v11 = vadd.f32 %v4850_v18, %v4565_v48  ;;  %v5485_v53 = vsel %vm10505_vm1, %v9587_v52, 0.0 }
 0x712   : > { %v5292_v62 = vpop.permute.xlu1 %5291  ;;  %v5399_v46 = vadd.f32 %v5290_v35, %v4927_v11  ;;  %v5486_v11 = vadd.f32 %v5485_v53, %v5484_v26 }
 0x713   : > { %v5294_v12 = vpop.permute.xlu0 %5293  ;;  %v5368_v59 = vsel %vm10501_vm14, %v5292_v62, 0.0  ;;  %vm10523_vm14 = vmmov %vm10505_vm1 }
 0x714   : > { %v9591_v35 = vadd.f32 %v9446_v57, %v5399_v46  ;;  %v5400_v28 = vadd.f32 %v5368_v59, %v4928_v15  ;;  %v10512_v46 = vld [vmem:[#allocation32_spill] sm:$0xff] }
 0x715   : > { %vm10513_vm7 = vnez %v10512_v46 }
 0x716   : > { %v4856_v34 = vpop.permute.xlu1 %4855  ;;  %v5487_v51 = vsel %vm10510_vm5, %v9591_v35, 0.0  ;;  %v9603_v48 = vadd.f32 %v9446_v57, %v5400_v28 }
 0x717   : > { %v4854_v41 = vpop.permute.xlu0 %4853  ;;  %v4930_v4 = vadd.f32 %v4856_v34, %v9330_v44  ;;  %v5488_v31 = vadd.f32 %v5487_v51, %v5486_v11 }
 0x718   : > { %v4929_v50 = vadd.f32 %v4854_v41, %v4567_v16  ;;  %v5489_v10 = vsel %vm10511_vm6, %v9603_v48, 0.0  ;;  %v10515_v16 = vld [vmem:[#allocation26_spill] sm:$0xff] }
 0x719   : > { %vm10516_vm9 = vnez %v10515_v16  ;;  %v5490_v15 = vadd.f32 %v5489_v10, %v5488_v31  ;;  %v10527_v16 = vld [vmem:[#allocation37_spill] sm:$0xff] }
 0x71a   : > { %v5296_v43 = vpop.permute.xlu1 %5295  ;;  %v5401_v63 = vadd.f32 %v5294_v12, %v4929_v50  ;;  %vm10528_vm1 = vnez %v10527_v16 }
 0x71b   : > { %v5298_v18 = vpop.permute.xlu0 %5297  ;;  %v5370_v24 = vsel %vm10507_vm0, %v5296_v43, 0.0  ;;  %v4571_v43 = vsel %vm10516_vm9, %v9358_v47, 0.0  ;;  %vm10529_vm0 = vmmov %vm10510_vm5 }
 0x71c   : > { %v9607_v12 = vadd.f32 %v9446_v57, %v5401_v63  ;;  %v5402_v0 = vadd.f32 %v5370_v24, %v4930_v4  ;;  %vm10530_vm2 = vmmov %vm10529_vm0 }
 0x71d   : > { %vm10533_vm6 = vmmov %vm10529_vm0 }
 0x71e   : > { %v4860_v62 = vpop.permute.xlu1 %4859  ;;  %v5491_v44 = vsel %vm10514_vm8, %v9607_v12, 0.0  ;;  %v9616_v34 = vadd.f32 %v9446_v57, %v5402_v0  ;;  %vm10538_vm9 = vmmov %vm10529_vm0 }
 0x71f   : > { %v4858_v54 = vpop.permute.xlu0 %4857  ;;  %v4932_v23 = vadd.f32 %v4860_v62, %v9355_v39  ;;  %v5492_v28 = vadd.f32 %v5491_v44, %v5490_v15 }
 0x720   : > { %v4931_v45 = vadd.f32 %v4858_v54, %v4569_v8  ;;  %v5493_v53 = vsel %vm10517_vm10, %v9616_v34, 0.0  ;;  %vm10540_vm10 = vmmov %vm10529_vm0 }
 0x721   : > { %v5494_v40 = vadd.f32 %v5493_v53, %v5492_v28 }
 0x722   : > { %v5300_v38 = vpop.permute.xlu1 %5299  ;;  %v5403_v2 = vadd.f32 %v5298_v18, %v4931_v45  ;;  %v10521_v45 = vld [vmem:[#allocation38_spill] sm:$0xff] }
 0x723   : > { %v5302_v41 = vpop.permute.xlu0 %5301  ;;  %v5372_v42 = vsel %vm10513_vm7, %v5300_v38, 0.0  ;;  %vm10522_vm13 = vnez %v10521_v45  ;;  %vm10535_vm7 = vmmov %vm10529_vm0 }
 0x724   : > { %v9623_v18 = vadd.f32 %v9446_v57, %v5403_v2  ;;  %v5404_v32 = vadd.f32 %v5372_v42, %v4932_v23  ;;  %v4573_v11 = vsel %vm10522_vm13, %v9376_v14, 0.0  ;;  %vm5735_vm13 = vcmask 589120  }
 0x726   : > { %v4864_v59 = vpop.permute.xlu1 %4863  ;;  %v5495_v47 = vsel %vm10520_vm12, %v9623_v18, 0.0  ;;  %v9632_v62 = vadd.f32 %v9446_v57, %v5404_v32 }
 0x727   : > { %v4862_v6 = vpop.permute.xlu0 %4861  ;;  %v4934_v24 = vadd.f32 %v4864_v59, %v9373_v33  ;;  %v5496_v0 = vadd.f32 %v5495_v47, %v5494_v40  ;;  %v10525_v59 = vld [vmem:[#allocation42_spill] sm:$0xff] }
 0x728   : > { %v4933_v50 = vadd.f32 %v4862_v6, %v4571_v43  ;;  %v5497_v31 = vsel %vm10523_vm14, %v9632_v62, 0.0  ;;  %vm10526_vm4 = vnez %v10525_v59  ;;  %v4575_v43 = vsel %vm10528_vm1, %v9397_v30, 0.0 }
 0x729   : > { %v5498_v23 = vadd.f32 %v5497_v31, %v5496_v0 }
 0x72a   : > { %v5304_v26 = vpop.permute.xlu1 %5303  ;;  %v5405_v63 = vadd.f32 %v5302_v41, %v4933_v50 }
 0x72b   : > { %v5306_v54 = vpop.permute.xlu0 %5305  ;;  %v5374_v39 = vsel %vm10519_vm11, %v5304_v26, 0.0  ;;  %vm10541_vm11 = vcmask 254976  }
 0x72c   : > { %v9636_v51 = vadd.f32 %v9446_v57, %v5405_v63  ;;  %v5406_v4 = vadd.f32 %v5374_v39, %v4934_v24  ;;  %v10531_v24 = vld [vmem:[#allocation41_spill] sm:$0xff]  ;;  %vm10542_vm12 = vmmov %vm10541_vm11 }
 0x72d   : > { %vm10532_vm5 = vnez %v10531_v24  ;;  %v5522_v24 = vld [vmem:[%s9925_s7] sm:$0x3] }
 0x72e   : > { %v4868_v8 = vpop.permute.xlu1 %4867  ;;  %v5499_v33 = vsel %vm10524_vm15, %v9636_v51, 0.0  ;;  %v9646_v46 = vadd.f32 %v9446_v57, %v5406_v4  ;;  %v4577_v40 = vsel %vm10532_vm5, %v9407_v5, 0.0 }
 0x72f   : > { %v4866_v38 = vpop.permute.xlu0 %4865  ;;  %v4936_v42 = vadd.f32 %v4868_v8, %v9391_v37  ;;  %v5500_v32 = vadd.f32 %v5499_v33, %v5498_v23  ;;  %v10536_v23 = vld [vmem:[#allocation43_spill] sm:$0xff] }
 0x730   : > { %v4935_v41 = vadd.f32 %v4866_v38, %v4573_v11  ;;  %v5501_v26 = vsel %vm10529_vm0, %v9646_v46, 0.0  ;;  %vm10537_vm8 = vnez %v10536_v23 }
 0x731   : > { %v5502_v49 = vadd.f32 %v5501_v26, %v5500_v32 }
 0x732   : > { %v5407_v10 = vadd.f32 %v5306_v54, %v4935_v41  ;;  %v5308_v2 = vpop.permute.xlu1 %5307 }
 0x733   : > { %v5376_v44 = vsel %vm10526_vm4, %v5308_v2, 0.0  ;;  %v4870_v14 = vpop.permute.xlu0 %4869 }
 0x734   : > { %v9655_v6 = vadd.f32 %v9446_v57, %v5407_v10  ;;  %v5408_v15 = vadd.f32 %v5376_v44, %v4936_v42  ;;  %v4937_v50 = vadd.f32 %v4870_v14, %v4575_v43 }
 0x736   : > { %v5310_v28 = vpop.permute.xlu1 %5309  ;;  %v5503_v53 = vsel %vm10530_vm2, %v9655_v6, 0.0  ;;  %v9662_v63 = vadd.f32 %v9446_v57, %v5408_v15 }
 0x737   : > { %v4872_v37 = vpop.permute.xlu0 %4871  ;;  %v5409_v54 = vadd.f32 %v5310_v28, %v4937_v50  ;;  %v5504_v47 = vadd.f32 %v5503_v53, %v5502_v49 }
 0x738   : > { %v5505_v8 = vsel %vm10533_vm6, %v9662_v63, 0.0  ;;  %v4938_v38 = vadd.f32 %v4872_v37, %v9404_v13 }
 0x739   : > { %v9670_v4 = vadd.f32 %v9446_v57, %v5409_v54  ;;  %v5506_v31 = vadd.f32 %v5505_v8, %v5504_v47 }
 0x73a   : > { %v4874_v30 = vpop.permute.xlu1 %4873 }
 0x73b   : > { %v4876_v39 = vpop.permute.xlu0 %4875  ;;  %v4939_v45 = vadd.f32 %v4874_v30, %v4577_v40  ;;  %v5507_v33 = vsel %vm10535_vm7, %v9670_v4, 0.0 }
 0x73c   : > { %v4940_v42 = vadd.f32 %v4876_v39, %v9412_v7  ;;  %v5508_v13 = vadd.f32 %v5507_v33, %v5506_v31 }
 0x73e   : > { %v5314_v11 = vpop.permute.xlu1 %5313 }
 0x73f   : > { %v5411_v0 = vadd.f32 %v5314_v11, %v4939_v45  ;;  %v5312_v41 = vpop.permute.xlu0 %5311  ;;  %v5528_v45 = vld [vmem:[%s9926_s8] sm:$0x3] }
 0x740   : > { %v5378_v2 = vsel %vm8081_vm3, %v5312_v41, 0.0  ;;  %vm10539_vm3 = vmmov %vm10529_vm0 }
 0x741   : > { %v5410_v5 = vadd.f32 %v5378_v2, %v4938_v38  ;;  %v9679_v59 = vadd.f32 %v9446_v57, %v5411_v0 }
 0x743   : > { %v9682_v44 = vadd.f32 %v9446_v57, %v5410_v5  ;;  %v5316_v14 = vpop.permute.xlu0 %5315  ;;  %v5511_v32 = vsel %vm10539_vm3, %v9679_v59, 0.0 }
 0x744   : > { %v5380_v16 = vsel %vm10537_vm8, %v5316_v14, 0.0 }
 0x745   : > { %v5509_v43 = vsel %vm10538_vm9, %v9682_v44, 0.0  ;;  %v5412_v15 = vadd.f32 %v5380_v16, %v4940_v42 }
 0x746   : > { %v5510_v50 = vadd.f32 %v5509_v43, %v5508_v13 }
 0x747   : > { %v9691_v7 = vadd.f32 %v9446_v57, %v5412_v15 }
 0x748   : > { %v5512_v28 = vadd.f32 %v5511_v32, %v5510_v50 }
 0x749   : > { %v5513_v26 = vsel %vm10540_vm10, %v9691_v7, 0.0 }
 0x74a   : > { %v5514_v37 = vadd.f32 %v5513_v26, %v5512_v28 }
 0x74c   : > { %v5515_v53 = vrot.slane %v5514_v37, 4 }
 0x74e   : > { %v5516_v54 = vadd.f32 %v5515_v53, %v5514_v37 }
 0x750   : > { %v5517_v49 = vrot.slane %v5516_v54, 2 }
 0x752   : > { %v5518_v30 = vadd.f32 %v5517_v49, %v5516_v54 }
 0x754   : > { %v5519_v39 = vrot.slane %v5518_v30, 1 }
 0x756   : > { %v5520_v47 = vadd.f32 %v5519_v39, %v5518_v30 }
 0x758   : > { %v5521_v40 = vmul.f32 0.00390625, %v5520_v47 }
 0x75a   : > { %v5523_v8 = vmul.f32 %v5522_v24, %v5521_v40 }
 0x75c   : > { %v5524_v57 = vsel %vm10541_vm11, %v5523_v8, 0.0 }
 0x75d   : > { %5525 = vadd.xlane.f32.xlu1 %v5524_v57 }
 0x7ea   : > { %v5526_v11 = vpop.xlane.xlu1 %5525 }
 0x7eb   : > { %v5527_v38 = vmax.f32 %v5526_v11, 0.0 }
 0x7ed   : > { %v5529_v0 = vmul.f32 %v5528_v45, %v5527_v38 }
 0x7ef   : > { %v5530_v41 = vsel %vm10542_vm12, %v5529_v0, 0.0 }
 0x7f0   : > { %v5531_v31 = vrot.slane %v5530_v41, 4 }
 0x7f2   : > { %v5532_v10 = vadd.f32 %v5531_v31, %v5530_v41 }
 0x7f4   : > { %v5533_v2 = vrot.slane %v5532_v10, 2 }
 0x7f6   : > { %v5534_v33 = vadd.f32 %v5533_v2, %v5532_v10 }
 0x7f8   : > { %v5535_v5 = vrot.slane %v5534_v33, 1 }
 0x7fa   : > { %v5536_v42 = vadd.f32 %v5535_v5, %v5534_v33 }
 0x7fc   : > { %v5932_v14 = vmul.f32 -1.442695, %v5536_v42 }
 0x7fe   : > { %6135 = vpow2.f32 %v5932_v14 }
 0x808   : > { %v6136_v13 = vpop.eup %6135 }
 0x809   : > { %v5540_v23 = vadd.f32 1.0, %v6136_v13 }
 0x80b   : > { %6137 = vrcp.f32 %v5540_v23 }
 0x815   : > { %v9703_v16 = vpop.eup %6137 }
 0x816   : > { %v5552_v43 = vmul.f32 %v9703_v16, %v9523_v36  ;;  %v5558_v15 = vmul.f32 %v9703_v16, %v9571_v22  ;;  %v5543_v32 = vmul.f32 %v9703_v16, %v9458_v1  ;;  %v5560_v28 = vmul.f32 %v9703_v16, %v9587_v52 }
 0x817   : > { %v5544_v37 = vmul.f32 %v9703_v16, %v9454_v19  ;;  %v5562_v22 = vmul.f32 %v9703_v16, %v9603_v48  ;;  %v5545_v1 = vmul.f32 %v9703_v16, %v9463_v29  ;;  %v5564_v52 = vmul.f32 %v9703_v16, %v9616_v34 }
 0x818   : > { %v5584_v50 = vmax.f32 %v5552_v43, 0.0  ;;  %v5590_v26 = vmax.f32 %v5558_v15, 0.0  ;;  %v5575_v36 = vmax.f32 %v5543_v32, 0.0  ;;  %v5592_v53 = vmax.f32 %v5560_v28, 0.0 }
 0x819   : > { %v5576_v54 = vmax.f32 %v5544_v37, 0.0  ;;  %v5594_v49 = vmax.f32 %v5562_v22, 0.0  ;;  %v5546_v19 = vmul.f32 %v9703_v16, %v9473_v17  ;;  %v5577_v48 = vmax.f32 %v5545_v1, 0.0 }
 0x81a   : > { %5657 = vrot.lane.b32.xlu1 %v5584_v50, %s6234_s27  ;;  %5639 = vrot.lane.b32.xlu0 %v5575_v36, %s6234_s27  ;;  %v5566_v30 = vmul.f32 %v9703_v16, %v9632_v62  ;;  %v5596_v39 = vmax.f32 %v5564_v52, 0.0  ;;  %v5547_v29 = vmul.f32 %v9703_v16, %v9479_v9  ;;  %v5568_v47 = vmul.f32 %v9703_v16, %v9646_v46 }
 0x81b   : > { %v5578_v34 = vmax.f32 %v5546_v19, 0.0  ;;  %v5548_v17 = vmul.f32 %v9703_v16, %v9491_v55  ;;  %v5570_v40 = vmul.f32 %v9703_v16, %v9662_v63  ;;  %v5549_v9 = vmul.f32 %v9703_v16, %v9495_v3 }
 0x81c   : > { %v5598_v24 = vmax.f32 %v5566_v30, 0.0  ;;  %v5579_v62 = vmax.f32 %v5547_v29, 0.0  ;;  %v5600_v8 = vmax.f32 %v5568_v47, 0.0  ;;  %v5572_v57 = vmul.f32 %v9703_v16, %v9682_v44 }
 0x81d   : > { %v5580_v46 = vmax.f32 %v5548_v17, 0.0  ;;  %v5602_v45 = vmax.f32 %v5570_v40, 0.0  ;;  %v5550_v55 = vmul.f32 %v9703_v16, %v9507_v25  ;;  %v5581_v63 = vmax.f32 %v5549_v9, 0.0 }
 0x81e   : > { %5669 = vrot.lane.b32.xlu1 %v5590_v26, %s6234_s27  ;;  %5641 = vrot.lane.b32.xlu0 %v5576_v54, %s6234_s27  ;;  %v5574_v11 = vmul.f32 %v9703_v16, %v9691_v7  ;;  %v5604_v38 = vmax.f32 %v5572_v57, 0.0  ;;  %v5551_v3 = vmul.f32 %v9703_v16, %v9511_v27  ;;  %v5553_v25 = vmul.f32 %v9703_v16, %v9527_v21 }
 0x81f   : > { %v5582_v44 = vmax.f32 %v5550_v55, 0.0  ;;  %v5554_v7 = vmul.f32 %v9703_v16, %v9539_v20  ;;  %v5555_v27 = vmul.f32 %v9703_v16, %v9543_v60  ;;  %v5556_v2 = vmul.f32 %v9703_v16, %v9555_v61 }
 0x820   : > { %v5606_v0 = vmax.f32 %v5574_v11, 0.0  ;;  %v5583_v41 = vmax.f32 %v5551_v3, 0.0  ;;  %v5585_v31 = vmax.f32 %v5553_v25, 0.0  ;;  %v5557_v21 = vmul.f32 %v9703_v16, %v9559_v56 }
 0x821   : > { %v5586_v10 = vmax.f32 %v5554_v7, 0.0  ;;  %v5587_v33 = vmax.f32 %v5555_v27, 0.0  ;;  %v5588_v5 = vmax.f32 %v5556_v2, 0.0  ;;  %v5559_v20 = vmul.f32 %v9703_v16, %v9575_v58 }
 0x822   : > { %5673 = vrot.lane.b32.xlu1 %v5592_v53, %s6234_s27  ;;  %5643 = vrot.lane.b32.xlu0 %v5577_v48, %s6234_s27  ;;  %v5589_v42 = vmax.f32 %v5557_v21, 0.0  ;;  %v5561_v60 = vmul.f32 %v9703_v16, %v9591_v35  ;;  %v5563_v61 = vmul.f32 %v9703_v16, %v9607_v12  ;;  %v5565_v56 = vmul.f32 %v9703_v16, %v9623_v18 }
 0x823   : > { %v5591_v14 = vmax.f32 %v5559_v20, 0.0  ;;  %v5567_v58 = vmul.f32 %v9703_v16, %v9636_v51  ;;  %v5569_v12 = vmul.f32 %v9703_v16, %v9655_v6  ;;  %v5571_v18 = vmul.f32 %v9703_v16, %v9670_v4 }
 0x824   : > { %v5593_v13 = vmax.f32 %v5561_v60, 0.0  ;;  %v5595_v23 = vmax.f32 %v5563_v61, 0.0  ;;  %v5597_v35 = vmax.f32 %v5565_v56, 0.0  ;;  %v5573_v51 = vmul.f32 %v9703_v16, %v9679_v59 }
 0x825   : > { %v5599_v43 = vmax.f32 %v5567_v58, 0.0  ;;  %v5601_v15 = vmax.f32 %v5569_v12, 0.0  ;;  %v5603_v50 = vmax.f32 %v5571_v18, 0.0 }
 0x826   : > { %5677 = vrot.lane.b32.xlu1 %v5594_v49, %s6234_s27  ;;  %5645 = vrot.lane.b32.xlu0 %v5578_v34, %s6234_s27  ;;  %v5605_v6 = vmax.f32 %v5573_v51, 0.0 }
 0x82a   : > { %5681 = vrot.lane.b32.xlu1 %v5596_v39, %s6234_s27  ;;  %5647 = vrot.lane.b32.xlu0 %v5579_v62, %s6234_s27 }
 0x82e   : > { %5685 = vrot.lane.b32.xlu1 %v5598_v24, %s6234_s27  ;;  %5649 = vrot.lane.b32.xlu0 %v5580_v46, %s6234_s27 }
 0x832   : > { %5689 = vrot.lane.b32.xlu1 %v5600_v8, %s6234_s27  ;;  %5651 = vrot.lane.b32.xlu0 %v5581_v63, %s6234_s27 }
 0x836   : > { %5693 = vrot.lane.b32.xlu1 %v5602_v45, %s6234_s27  ;;  %5653 = vrot.lane.b32.xlu0 %v5582_v44, %s6234_s27 }
 0x83a   : > { %5697 = vrot.lane.b32.xlu1 %v5604_v38, %s6234_s27  ;;  %5655 = vrot.lane.b32.xlu0 %v5583_v41, %s6234_s27 }
 0x83e   : > { %5701 = vrot.lane.b32.xlu1 %v5606_v0, %s6234_s27  ;;  %5659 = vrot.lane.b32.xlu0 %v5585_v31, %s6234_s27 }
 0x842   : > { %5661 = vrot.lane.b32.xlu0 %v5586_v10, %s6234_s27 }
 0x846   : > { %5663 = vrot.lane.b32.xlu0 %v5587_v33, %s6234_s27 }
 0x84a   : > { %5665 = vrot.lane.b32.xlu0 %v5588_v5, %s6234_s27 }
 0x84e   : > { %5667 = vrot.lane.b32.xlu0 %v5589_v42, %s6234_s27 }
 0x852   : > { %5671 = vrot.lane.b32.xlu0 %v5591_v14, %s6234_s27 }
 0x856   : > { %5675 = vrot.lane.b32.xlu0 %v5593_v13, %s6234_s27 }
 0x85a   : > { %5679 = vrot.lane.b32.xlu0 %v5595_v23, %s6234_s27 }
 0x85e   : > { %5683 = vrot.lane.b32.xlu0 %v5597_v35, %s6234_s27 }
 0x862   : > { %5687 = vrot.lane.b32.xlu0 %v5599_v43, %s6234_s27 }
 0x866   : > { %5691 = vrot.lane.b32.xlu0 %v5601_v15, %s6234_s27 }
 0x86a   : > { %5695 = vrot.lane.b32.xlu0 %v5603_v50, %s6234_s27 }
 0x86e   : > { %5699 = vrot.lane.b32.xlu0 %v5605_v6, %s6234_s27  ;;  %s6170_s27 = scalar_lea.vmem %s6169_s26, 8192 }
 0x86f   : > { %p6172_p1 = scmp.lt.s32.totalorder %s6170_s27, %s6164_s13 }
 0x871   : > { %p6173_p2 = por %p6172_p1, %p6171_p0 }
 0x873   : > { %p6174_p3 = pnand %p6173_p2, %p6167_p13 }
 0x88c   : > { %v5658_v32 = vpop.permute.xlu1 %5657  ;;  %v5640_v28 = vpop.permute.xlu0 %5639 }
 0x88d   : > { %5745 = vst.msk [vmem:[%s6359_s17 + $0x48] sm:$0xff] %vm5735_vm13, %v5658_v32  ;;  %5736 = vst.msk [vmem:[%s6359_s17] sm:$0xff] %vm5735_vm13, %v5640_v28 }
 0x890   : > { %v5670_v4 = vpop.permute.xlu1 %5669  ;;  %v5642_v16 = vpop.permute.xlu0 %5641 }
 0x891   : > { %5751 = vst.msk [vmem:[%s6359_s17 + $0x78] sm:$0xff] %vm5735_vm13, %v5670_v4  ;;  %5737 = vst.msk [vmem:[%s6359_s17 + $0x8] sm:$0xff] %vm5735_vm13, %v5642_v16 }
 0x894   : > { %v5674_v59 = vpop.permute.xlu1 %5673  ;;  %v5644_v37 = vpop.permute.xlu0 %5643 }
 0x895   : > { %5753 = vst.msk [vmem:[%s6359_s17 + $0x88] sm:$0xff] %vm5735_vm13, %v5674_v59  ;;  %5738 = vst.msk [vmem:[%s6359_s17 + $0x10] sm:$0xff] %vm5735_vm13, %v5644_v37 }
 0x898   : > { %v5678_v26 = vpop.permute.xlu1 %5677  ;;  %v5646_v22 = vpop.permute.xlu0 %5645 }
 0x899   : > { %5755 = vst.msk [vmem:[%s6359_s17 + $0x98] sm:$0xff] %vm5735_vm13, %v5678_v26  ;;  %5739 = vst.msk [vmem:[%s6359_s17 + $0x18] sm:$0xff] %vm5735_vm13, %v5646_v22 }
 0x89c   : > { %v5682_v36 = vpop.permute.xlu1 %5681  ;;  %v5648_v1 = vpop.permute.xlu0 %5647 }
 0x89d   : > { %5757 = vst.msk [vmem:[%s6359_s17 + $0xa8] sm:$0xff] %vm5735_vm13, %v5682_v36  ;;  %5740 = vst.msk [vmem:[%s6359_s17 + $0x20] sm:$0xff] %vm5735_vm13, %v5648_v1 }
 0x8a0   : > { %v5686_v53 = vpop.permute.xlu1 %5685  ;;  %v5650_v52 = vpop.permute.xlu0 %5649 }
 0x8a1   : > { %5759 = vst.msk [vmem:[%s6359_s17 + $0xb8] sm:$0xff] %vm5735_vm13, %v5686_v53  ;;  %5741 = vst.msk [vmem:[%s6359_s17 + $0x28] sm:$0xff] %vm5735_vm13, %v5650_v52 }
 0x8a4   : > { %v5690_v54 = vpop.permute.xlu1 %5689  ;;  %v5652_v19 = vpop.permute.xlu0 %5651 }
 0x8a5   : > { %5761 = vst.msk [vmem:[%s6359_s17 + $0xc8] sm:$0xff] %vm5735_vm13, %v5690_v54  ;;  %5742 = vst.msk [vmem:[%s6359_s17 + $0x30] sm:$0xff] %vm5735_vm13, %v5652_v19 }
 0x8a8   : > { %v5694_v49 = vpop.permute.xlu1 %5693  ;;  %v5654_v30 = vpop.permute.xlu0 %5653 }
 0x8a9   : > { %5763 = vst.msk [vmem:[%s6359_s17 + $0xd8] sm:$0xff] %vm5735_vm13, %v5694_v49  ;;  %5743 = vst.msk [vmem:[%s6359_s17 + $0x38] sm:$0xff] %vm5735_vm13, %v5654_v30 }
 0x8ac   : > { %v5698_v48 = vpop.permute.xlu1 %5697  ;;  %v5656_v29 = vpop.permute.xlu0 %5655 }
 0x8ad   : > { %5765 = vst.msk [vmem:[%s6359_s17 + $0xe8] sm:$0xff] %vm5735_vm13, %v5698_v48  ;;  %5744 = vst.msk [vmem:[%s6359_s17 + $0x40] sm:$0xff] %vm5735_vm13, %v5656_v29 }
 0x8b0   : > { %v5702_v39 = vpop.permute.xlu1 %5701  ;;  %v5660_v34 = vpop.permute.xlu0 %5659 }
 0x8b1   : > { %5767 = vst.msk [vmem:[%s6359_s17 + $0xf8] sm:$0xff] %vm5735_vm13, %v5702_v39  ;;  %5746 = vst.msk [vmem:[%s6359_s17 + $0x50] sm:$0xff] %vm5735_vm13, %v5660_v34 }
 0x8b4   : > { %v5662_v47 = vpop.permute.xlu0 %5661 }
 0x8b5   : > { %5747 = vst.msk [vmem:[%s6359_s17 + $0x58] sm:$0xff] %vm5735_vm13, %v5662_v47 }
 0x8b8   : > { %v5664_v24 = vpop.permute.xlu0 %5663 }
 0x8b9   : > { %5748 = vst.msk [vmem:[%s6359_s17 + $0x60] sm:$0xff] %vm5735_vm13, %v5664_v24 }
 0x8bc   : > { %v5666_v17 = vpop.permute.xlu0 %5665 }
 0x8bd   : > { %5749 = vst.msk [vmem:[%s6359_s17 + $0x68] sm:$0xff] %vm5735_vm13, %v5666_v17 }
 0x8c0   : > { %v5668_v62 = vpop.permute.xlu0 %5667 }
 0x8c1   : > { %5750 = vst.msk [vmem:[%s6359_s17 + $0x70] sm:$0xff] %vm5735_vm13, %v5668_v62 }
 0x8c4   : > { %v5672_v40 = vpop.permute.xlu0 %5671 }
 0x8c5   : > { %5752 = vst.msk [vmem:[%s6359_s17 + $0x80] sm:$0xff] %vm5735_vm13, %v5672_v40 }
 0x8c8   : > { %v5676_v8 = vpop.permute.xlu0 %5675 }
 0x8c9   : > { %5754 = vst.msk [vmem:[%s6359_s17 + $0x90] sm:$0xff] %vm5735_vm13, %v5676_v8 }
 0x8cc   : > { %v5680_v9 = vpop.permute.xlu0 %5679 }
 0x8cd   : > { %5756 = vst.msk [vmem:[%s6359_s17 + $0xa0] sm:$0xff] %vm5735_vm13, %v5680_v9 }
 0x8d0   : > { %v5684_v46 = vpop.permute.xlu0 %5683 }
 0x8d1   : > { %5758 = vst.msk [vmem:[%s6359_s17 + $0xb0] sm:$0xff] %vm5735_vm13, %v5684_v46 }
 0x8d4   : > { %v5688_v57 = vpop.permute.xlu0 %5687 }
 0x8d5   : > { %5760 = vst.msk [vmem:[%s6359_s17 + $0xc0] sm:$0xff] %vm5735_vm13, %v5688_v57 }
 0x8d8   : > { %v5692_v45 = vpop.permute.xlu0 %5691 }
 0x8d9   : > { %5762 = vst.msk [vmem:[%s6359_s17 + $0xd0] sm:$0xff] %vm5735_vm13, %v5692_v45 }
 0x8dc   : > { %v5696_v55 = vpop.permute.xlu0 %5695 }
 0x8dd   : > { %5764 = vst.msk [vmem:[%s6359_s17 + $0xe0] sm:$0xff] %vm5735_vm13, %v5696_v55 }
 0x8e0   : > { %v5700_v63 = vpop.permute.xlu0 %5699 }
 0x8e1   : > { %5766 = vst.msk [vmem:[%s6359_s17 + $0xf0] sm:$0xff] %vm5735_vm13, %v5700_v63 }
 0x8e2   : > { %6177 = shalt.err (!%p6174_p3)
}
 0x8e3   : > { %s6178_s17 = scalar_lea.hbm %s9868_s22, 4096  ;;  %s6182_s21 = scalar_lea.hbm %s9927_s9, 8192 }
 0x8e4   : > { %p6179_p4 = scmp.ne.s32.totalorder %s9868_s22, %s6178_s17  ;;  %p6183_p9 = scmp.lt.u32.totalorder %s9868_s22, %s9927_s9 }
 0x8e5   : > { %p6184_p10 = scmp.lt.u32.totalorder %s6182_s21, %s6178_s17  ;;  %p6186_p12 = scmp.lt.u32.totalorder %s6178_s17, %s9868_s22 }
 0x8e6   : > { %p6180_p7 = pnand %p6179_p4, %p6325_p5 }
 0x8e7   : > { %p6185_p11 = por %p6184_p10, %p6183_p9 }
 0x8e8   : > { %p6181_p8 = pneg %p6180_p7 }
 0x8e9   : > { %p6187_p13 = por %p6186_p12, %p6185_p11 }
 0x8eb   : > { %p6188_p0 = pnand %p6187_p13, %p6181_p8 }
 0x8ed   : > { %6191 = shalt.err (!%p6188_p0)
}
 0x8ee   : > { %s6236_s13 = smov 128  }
 0x8ef   : > { %6050 = dma.vmem_to_hbm [thread:$0]  (%p6325_p5), %s9870_s29, 4096, %s9868_s22, %s9876_s25, %s6236_s13, %s6236_s13, %s6233_s16  }
 0x8f0 PF: > { %p6056_p1 = scmp.ge.s32.totalorder %s6226_s12, 2  ;;  %s5797_s26 = sand.u32 1, %s6214_s30  }
 0x8f1   : > { %s5798_s27 = scalar_lea.sflag [#allocation4], %s5797_s26 }
 0x8f2   : > { %p6053_p2 = pnand %p6056_p1, %p6329_p6 }
 0x8f4   : > { %6209 = dma.done.wait (!%p6053_p2), %s5798_s27, 4096  }
 0x8f5   : > { %6211 = vsyncadd (!%p6053_p2), %s5798_s27, 4294963200  ;;  %p19_p3 = scmp.ge.s32.totalorder %s6312_s15, 4   ;;  %s10544_s30 = smov %s6218_s10 }
 0x8f6   : > { %s10545_s10 = smov %s6222_s11  ;;  %s10546_s11 = smov %s6323_s18 }
 0x8f7   : > { %s10547_s12 = smov %s6312_s15  ;;  %21 = sbr.rel (!%p19_p3) target bundleno = 3 (0x3), region = 91 }
 0x8fe   :  { %5803 = vsyncpa [#allocation4], 1 }
 0x8ff   :  { %5805 = vsyncpa [#allocation4 + $0x1], 1 }

</bundles_post_ra>
